<compile_context>
chip_gen: v6e
topology: v6e:2x2x1
jax: 0.10.0
libtpu: 0.0.40
codegen_flags: <defaults>
</compile_context>

<pallas_src>
import math
from functools import partial

import jax
import jax.numpy as jnp
from jax.experimental import pallas as pl
from jax.experimental.pallas import tpu as pltpu


HD = 360  # FusionFeedForward hidden dim (= 40 channels x 3x3 fold kernel taps)


def _pick_block_batch(batch, n_tokens, target_rows=128):
    """Batch elements per grid step: fill >=128 matmul rows, keep the grid divisible."""
    bt = max(1, min(batch, max(1, target_rows // max(1, n_tokens))))
    while batch % bt:
        bt -= 1
    return max(bt, 1)


# ---------------------------------------------------------------------------
# Kernel 1: LN1 + MHA + residual + LN2 + FFN first Linear
# ---------------------------------------------------------------------------
def _make_part1_kernel(num_head, c, bt, n, hdp, eps=1e-5):
    c_h = c // num_head
    scale = 1.0 / math.sqrt(c_h)
    m = bt * n

    def kernel(x_ref, wqkv_ref, wo_ref, w1_ref, vec_ref, xres_ref, h_ref):
        # vec_ref packing (rows of a (4, W) f32 slab):
        #   row0 = [bq | bk | bv]      row1 = b1 (lane padded)
        #   row2 = [g1 | be1 | g2]     row3 = [be2 | bo | 0]
        x = x_ref[...].reshape(m, c)                                  # (M, C) f32

        # ---- LayerNorm 1 (f32 elementwise math) ----
        mu = jnp.mean(x, axis=-1, keepdims=True)
        xc = x - mu
        var = jnp.mean(xc * xc, axis=-1, keepdims=True)
        xn = xc * jax.lax.rsqrt(var + eps)
        xn = xn * vec_ref[2:3, 0:c] + vec_ref[2:3, c:2 * c]

        # ---- fused QKV projection: one (M, C) @ (C, 3C) MXU matmul ----
        qkv = jnp.dot(xn.astype(jnp.bfloat16), wqkv_ref[...],
                      preferred_element_type=jnp.float32) + vec_ref[0:1, 0:3 * c]
        qkv = qkv.astype(jnp.bfloat16)                                # single cast for all heads

        # ---- attention: heads processed with batched (over Bt) 3-D einsums,
        #      outputs concatenated so Wo is a single K=C matmul.
        #      attention-weight dropout = identity (eval). ----
        heads = []
        for hh in range(num_head):
            lo = hh * c_h
            qh = qkv[:, 0 * c + lo:0 * c + lo + c_h].reshape(bt, n, c_h)
            kh = qkv[:, 1 * c + lo:1 * c + lo + c_h].reshape(bt, n, c_h)
            vh = qkv[:, 2 * c + lo:2 * c + lo + c_h].reshape(bt, n, c_h)
            s = jnp.einsum('bqd,bkd->bqk', qh, kh,
                           preferred_element_type=jnp.float32) * scale
            s = s - jnp.max(s, axis=-1, keepdims=True)
            p = jnp.exp(s)
            p = p / jnp.sum(p, axis=-1, keepdims=True)
            heads.append(jnp.einsum('bqk,bkd->bqd', p.astype(jnp.bfloat16), vh,
                                    preferred_element_type=jnp.float32))
        att = jnp.concatenate(heads, axis=-1).reshape(m, c)           # (M, C) f32

        # ---- output projection (single K=C matmul) ----
        att = jnp.dot(att.astype(jnp.bfloat16), wo_ref[...],
                      preferred_element_type=jnp.float32) + vec_ref[3:4, c:2 * c]

        # ---- residual (dropout = identity in eval) ----
        xres = x + att
        xres_ref[...] = xres.reshape(bt, n, c)

        # ---- LayerNorm 2 ----
        mu2 = jnp.mean(xres, axis=-1, keepdims=True)
        xc2 = xres - mu2
        var2 = jnp.mean(xc2 * xc2, axis=-1, keepdims=True)
        y = xc2 * jax.lax.rsqrt(var2 + eps)
        y = y * vec_ref[2:3, 2 * c:3 * c] + vec_ref[3:4, 0:c]

        # ---- FFN first Linear: (M, C) @ (C, HDP), lane-dense bf16 output ----
        h1 = jnp.dot(y.astype(jnp.bfloat16), w1_ref[...],
                     preferred_element_type=jnp.float32) + vec_ref[1:2, 0:hdp]
        h_ref[...] = h1.reshape(bt, n, hdp).astype(jnp.bfloat16)

    return kernel


def _part1_call(x, wqkv, wo, w1, vec, *, num_head, bt):
    B, N, C = x.shape
    HDP = w1.shape[1]
    steps = B // bt

    flops = (2 * B * N * C * (3 * C) + 4 * B * N * N * C
             + 2 * B * N * C * C + 2 * B * N * C * HDP)
    cost = pl.CostEstimate(
        flops=int(flops),
        transcendentals=int(B * num_head * N * N + 4 * B * N),
        bytes_accessed=int(4 * B * N * C * 2 + 2 * B * N * HDP
                           + 2 * (wqkv.size + wo.size + w1.size) + 4 * vec.size))

    grid_spec = pltpu.PrefetchScalarGridSpec(
        num_scalar_prefetch=0,
        grid=(steps,),
        in_specs=[
            pl.BlockSpec((bt, N, C), lambda i: (i, 0, 0)),
            pl.BlockSpec(wqkv.shape, lambda i: (0, 0)),
            pl.BlockSpec(wo.shape, lambda i: (0, 0)),
            pl.BlockSpec(w1.shape, lambda i: (0, 0)),
            pl.BlockSpec(vec.shape, lambda i: (0, 0)),
        ],
        out_specs=(
            pl.BlockSpec((bt, N, C), lambda i: (i, 0, 0)),
            pl.BlockSpec((bt, N, HDP), lambda i: (i, 0, 0)),
        ),
    )
    return pl.pallas_call(
        _make_part1_kernel(num_head, C, bt, N, HDP),
        out_shape=(jax.ShapeDtypeStruct((B, N, C), jnp.float32),
                   jax.ShapeDtypeStruct((B, N, HDP), jnp.bfloat16)),
        grid_spec=grid_spec,
        compiler_params=pltpu.CompilerParams(dimension_semantics=("parallel",)),
        cost_estimate=cost,
    )(x, wqkv, wo, w1, vec)


# ---------------------------------------------------------------------------
# Kernel 2: ReLU + FFN second Linear + residual
# ---------------------------------------------------------------------------
def _make_part2_kernel(bt, n, c, hdp):
    m = bt * n

    def kernel(x_ref, h_ref, w2_ref, b2_ref, o_ref):
        h = jnp.maximum(h_ref[...].reshape(m, hdp), 0)                # ReLU, bf16
        y = jnp.dot(h, w2_ref[...], preferred_element_type=jnp.float32) + b2_ref[...]
        o_ref[...] = (x_ref[...].reshape(m, c) + y).reshape(bt, n, c)  # residual (dropout = id)

    return kernel


def _part2_call(x, h, w2, b2, *, bt):
    B, N, C = x.shape
    HDP = h.shape[-1]
    steps = B // bt
    cost = pl.CostEstimate(
        flops=int(2 * B * N * HDP * C),
        transcendentals=0,
        bytes_accessed=int(4 * B * N * C * 2 + 2 * B * N * HDP + 2 * w2.size + 4 * b2.size))
    grid_spec = pltpu.PrefetchScalarGridSpec(
        num_scalar_prefetch=0,
        grid=(steps,),
        in_specs=[
            pl.BlockSpec((bt, N, C), lambda i: (i, 0, 0)),
            pl.BlockSpec((bt, N, HDP), lambda i: (i, 0, 0)),
            pl.BlockSpec(w2.shape, lambda i: (0, 0)),
            pl.BlockSpec(b2.shape, lambda i: (0, 0)),
        ],
        out_specs=pl.BlockSpec((bt, N, C), lambda i: (i, 0, 0)),
    )
    return pl.pallas_call(
        _make_part2_kernel(bt, N, C, HDP),
        out_shape=jax.ShapeDtypeStruct((B, N, C), jnp.float32),
        grid_spec=grid_spec,
        compiler_params=pltpu.CompilerParams(dimension_semantics=("parallel",)),
        cost_estimate=cost,
    )(x, h, w2, b2)


# ---------------------------------------------------------------------------
# nn.Fold / nn.Unfold smoothing.
# TODO(synk): Fold's overlapping scatter-add / Unfold's strided gather have no clean Pallas
# equivalent at these tiny spatial sizes; since the smoothing is linear it is pre-computed once
# as a constant (n_vecs*9, n_vecs*9) operator and applied with one XLA einsum between the kernels.
# ---------------------------------------------------------------------------
def _fold(cols, output_size, kernel_size, stride, padding):
    B, CKK, _ = cols.shape
    kh, kw = kernel_size
    sh, sw = stride
    ph, pw = padding
    H, W = output_size
    C = CKK // (kh * kw)
    Lh = (H + 2 * ph - kh) // sh + 1
    Lw = (W + 2 * pw - kw) // sw + 1
    cols = cols.reshape(B, C, kh, kw, Lh, Lw)
    out = jnp.zeros((B, C, H + 2 * ph, W + 2 * pw), cols.dtype)
    for i in range(kh):
        for j in range(kw):
            out = out.at[:, :, i:i + sh * Lh:sh, j:j + sw * Lw:sw].add(cols[:, :, i, j])
    return out[:, :, ph:ph + H, pw:pw + W]


def _unfold(x, kernel_size, stride, padding):
    B, C, H, W = x.shape
    kh, kw = kernel_size
    sh, sw = stride
    ph, pw = padding
    xp = jnp.pad(x, ((0, 0), (0, 0), (ph, ph), (pw, pw)))
    Lh = (H + 2 * ph - kh) // sh + 1
    Lw = (W + 2 * pw - kw) // sw + 1
    patches = [xp[:, :, i:i + sh * Lh:sh, j:j + sw * Lw:sw]
               for i in range(kh) for j in range(kw)]
    col = jnp.stack(patches, axis=2)                 # (B, C, kh*kw, Lh, Lw)
    return col.reshape(B, C * kh * kw, Lh * Lw)


def _build_smoothing_operator(t2t_params, n_vecs):
    """Constant operator T[l, t, m, s] = response at (tap t, patch l) of Unfold(Fold(.)/Fold(1))
    to a unit input at (tap s, patch m)."""
    ksz = tuple(t2t_params["kernel_size"])
    stride = tuple(t2t_params["stride"])
    padding = tuple(t2t_params["padding"])
    out_size = tuple(t2t_params["output_size"])
    kk = ksz[0] * ksz[1]
    eye = jnp.eye(n_vecs * kk, dtype=jnp.float32)
    cols = eye.reshape(n_vecs * kk, n_vecs, kk).transpose(0, 2, 1)   # basis b=(m*kk+s): (B, kk, L)
    ones = jnp.ones((1, kk, n_vecs), jnp.float32)
    norm = _fold(ones, out_size, ksz, stride, padding)
    img = _fold(cols, out_size, ksz, stride, padding) / norm
    resp = _unfold(img, ksz, stride, padding)                        # (B, kk, L) = [b, t, l]
    return resp.reshape(n_vecs, kk, kk, n_vecs).transpose(3, 2, 0, 1)  # [l, t, m, s]


def _apply_smoothing(h, tsm, n_vecs, hd):
    """h: (B, N, HDP) bf16 FFN1 output (lane padded).  Returns smoothed, re-padded bf16."""
    B, N, HDP = h.shape
    kk = tsm.shape[1]
    c = hd // kk
    G = (B * N) // n_vecs
    hg = h[..., :hd].astype(jnp.float32).reshape(G, n_vecs, c, kk)   # [g, m, c, s]
    out = jnp.einsum('ltms,gmcs->glct', tsm, hg)                     # [g, l, c, t]
    out = out.reshape(B, N, hd)
    return jnp.pad(out, ((0, 0), (0, 0), (0, HDP - hd))).astype(jnp.bfloat16)


# ---------------------------------------------------------------------------
# Parameters, one-time weight preparation, full forward
# ---------------------------------------------------------------------------
def init_transformer_params(key, hidden, hd=HD):
    ks = jax.random.split(key, 12)

    def lin(kk, fan_in, shape):
        s = 1.0 / math.sqrt(fan_in)
        return jax.random.uniform(kk, shape, jnp.float32, -s, s)

    return {
        "wq": lin(ks[0], hidden, (hidden, hidden)), "bq": lin(ks[1], hidden, (hidden,)),
        "wk": lin(ks[2], hidden, (hidden, hidden)), "bk": lin(ks[3], hidden, (hidden,)),
        "wv": lin(ks[4], hidden, (hidden, hidden)), "bv": lin(ks[5], hidden, (hidden,)),
        "wo": lin(ks[6], hidden, (hidden, hidden)), "bo": lin(ks[7], hidden, (hidden,)),
        "w1": lin(ks[8], hidden, (hidden, hd)),     "b1": lin(ks[9], hidden, (hd,)),
        "w2": lin(ks[10], hd, (hd, hidden)),        "b2": lin(ks[11], hd, (hidden,)),
        "g1": jnp.ones((hidden,), jnp.float32),     "be1": jnp.zeros((hidden,), jnp.float32),
        "g2": jnp.ones((hidden,), jnp.float32),     "be2": jnp.zeros((hidden,), jnp.float32),
    }


def prepare_params(params, t2t_params, n_vecs):
    """One-time weight preparation (hoisted out of the per-step forward)."""
    C = params["wq"].shape[0]
    hd = params["w1"].shape[1]
    hdp = ((hd + 127) // 128) * 128
    width = max(3 * C, hdp)

    wqkv = jnp.concatenate([params["wq"], params["wk"], params["wv"]],
                           axis=1).astype(jnp.bfloat16)                     # (C, 3C)
    wo = params["wo"].astype(jnp.bfloat16)                                  # (C, C)
    w1 = jnp.pad(params["w1"], ((0, 0), (0, hdp - hd))).astype(jnp.bfloat16)  # (C, HDP)
    w2 = jnp.pad(params["w2"], ((0, hdp - hd), (0, 0))).astype(jnp.bfloat16)  # (HDP, C)
    b2 = params["b2"][None, :].astype(jnp.float32)                          # (1, C)

    def row(v):
        v = jnp.asarray(v, jnp.float32).reshape(-1)
        return jnp.pad(v, (0, width - v.shape[0]))

    vec = jnp.stack([
        row(jnp.concatenate([params["bq"], params["bk"], params["bv"]])),
        row(params["b1"]),
        row(jnp.concatenate([params["g1"], params["be1"], params["g2"]])),
        row(jnp.concatenate([params["be2"], params["bo"]])),
    ], axis=0)                                                               # (4, width) f32

    tsm = _build_smoothing_operator(t2t_params, n_vecs)
    return {"wqkv": wqkv, "wo": wo, "w1": w1, "w2": w2, "b2": b2, "vec": vec, "tsm": tsm}


def transformer_block_forward(x, prep, *, num_head, n_vecs, hd):
    """x: (B, N, hidden) with N = frames * n_vecs.  Dropout layers are identity (eval)."""
    B, N, C = x.shape
    bt = _pick_block_batch(B, N)
    x = x.astype(jnp.float32)

    x_res, h = _part1_call(x, prep["wqkv"], prep["wo"], prep["w1"], prep["vec"],
                           num_head=num_head, bt=bt)
    h_s = _apply_smoothing(h, prep["tsm"], n_vecs, hd)
    return _part2_call(x_res, h_s, prep["w2"], prep["b2"], bt=bt)


if __name__ == "__main__":
    key = jax.random.PRNGKey(0)
    kx, kp = jax.random.split(key)

    hidden, num_head = 128, 4
    t2t_params = {"kernel_size": (3, 3), "stride": (2, 2),
                  "padding": (1, 1), "output_size": (8, 8)}
    n_vecs = 16                     # ((8 + 2*1 - 3)//2 + 1)^2
    frames = 4
    B, N = 4, frames * n_vecs       # (4, 64, 128) tokens -> 2 parallel grid steps of 128 rows

    x = jax.random.normal(kx, (B, N, hidden), dtype=jnp.float32)
    params = init_transformer_params(kp, hidden)
    prep = prepare_params(params, t2t_params, n_vecs)   # one-time weight prep (outside the jit)

    fwd = jax.jit(partial(transformer_block_forward, num_head=num_head,
                          n_vecs=n_vecs, hd=params["w1"].shape[1]))
    out = jax.block_until_ready(fwd(x, prep))

    assert out.shape == (B, N, hidden), out.shape
    assert out.dtype == jnp.float32
    print("KERNEL_OK")
</pallas_src>

<mosaic_0001>
module attributes {stable_mosaic.version = 11 : i64} {
  func.func @kernel(%arg0: i32, %arg1: memref<2x64x128xf32, #tpu.memory_space<vmem>>, %arg2: memref<128x384xbf16, #tpu.memory_space<vmem>>, %arg3: memref<128x128xbf16, #tpu.memory_space<vmem>>, %arg4: memref<128x384xbf16, #tpu.memory_space<vmem>>, %arg5: memref<4x384xf32, #tpu.memory_space<vmem>>, %arg6: memref<2x64x128xf32, #tpu.memory_space<vmem>>, %arg7: memref<2x64x384xbf16, #tpu.memory_space<vmem>>) attributes {dimension_semantics = [#tpu.dimension_semantics<parallel>], iteration_bounds = array<i64: 2>, scalar_prefetch = 0 : i64, scratch_operands = 0 : i64, tpu.core_type = #tpu.core_type<tc>, window_params = [{transform_indices = @transform_0, window_bounds = array<i64: 2, 64, 128>}, {pipeline_mode = #tpu.pipeline_mode<synchronous>, transform_indices = @transform_1, window_bounds = array<i64: 128, 384>}, {pipeline_mode = #tpu.pipeline_mode<synchronous>, transform_indices = @transform_2, window_bounds = array<i64: 128, 128>}, {pipeline_mode = #tpu.pipeline_mode<synchronous>, transform_indices = @transform_3, window_bounds = array<i64: 128, 384>}, {pipeline_mode = #tpu.pipeline_mode<synchronous>, transform_indices = @transform_4, window_bounds = array<i64: 4, 384>}, {transform_indices = @transform_5, window_bounds = array<i64: 2, 64, 128>}, {transform_indices = @transform_6, window_bounds = array<i64: 2, 64, 384>}]} {
    %c0 = arith.constant 0 : index
    %c0_0 = arith.constant 0 : index
    %c0_1 = arith.constant 0 : index
    %0 = vector.load %arg1[%c0, %c0_0, %c0_1] : memref<2x64x128xf32, #tpu.memory_space<vmem>>, vector<2x64x128xf32>
    %1 = vector.shape_cast %0 : vector<2x64x128xf32> to vector<128x128xf32>
    %cst = arith.constant dense<0.000000e+00> : vector<128xf32>
    %2 = vector.multi_reduction <add>, %1, %cst [1] : vector<128x128xf32> to vector<128xf32>
    %3 = vector.shape_cast %2 : vector<128xf32> to vector<128x1xf32>
    %cst_2 = arith.constant 1.280000e+02 : f32
    %4 = vector.broadcast %cst_2 : f32 to vector<128x1xf32>
    %5 = arith.divf %3, %4 : vector<128x1xf32>
    %6 = vector.broadcast %5 : vector<128x1xf32> to vector<128x128xf32>
    %7 = arith.subf %1, %6 : vector<128x128xf32>
    %8 = arith.mulf %7, %7 : vector<128x128xf32>
    %cst_3 = arith.constant dense<0.000000e+00> : vector<128xf32>
    %9 = vector.multi_reduction <add>, %8, %cst_3 [1] : vector<128x128xf32> to vector<128xf32>
    %10 = vector.shape_cast %9 : vector<128xf32> to vector<128x1xf32>
    %cst_4 = arith.constant 1.280000e+02 : f32
    %11 = vector.broadcast %cst_4 : f32 to vector<128x1xf32>
    %12 = arith.divf %10, %11 : vector<128x1xf32>
    %cst_5 = arith.constant 9.99999974E-6 : f32
    %13 = vector.broadcast %cst_5 : f32 to vector<128x1xf32>
    %14 = arith.addf %12, %13 : vector<128x1xf32>
    %15 = math.rsqrt %14 : vector<128x1xf32>
    %16 = vector.broadcast %15 : vector<128x1xf32> to vector<128x128xf32>
    %17 = arith.mulf %7, %16 : vector<128x128xf32>
    %c2 = arith.constant 2 : index
    %c0_6 = arith.constant 0 : index
    %18 = vector.load %arg5[%c2, %c0_6] : memref<4x384xf32, #tpu.memory_space<vmem>>, vector<1x128xf32>
    %19 = vector.broadcast %18 : vector<1x128xf32> to vector<128x128xf32>
    %20 = arith.mulf %17, %19 : vector<128x128xf32>
    %c2_7 = arith.constant 2 : index
    %c128 = arith.constant 128 : index
    %21 = vector.load %arg5[%c2_7, %c128] : memref<4x384xf32, #tpu.memory_space<vmem>>, vector<1x128xf32>
    %22 = vector.broadcast %21 : vector<1x128xf32> to vector<128x128xf32>
    %23 = arith.addf %20, %22 : vector<128x128xf32>
    %24 = arith.truncf %23 : vector<128x128xf32> to vector<128x128xbf16>
    %c0_8 = arith.constant 0 : index
    %c0_9 = arith.constant 0 : index
    %25 = vector.load %arg2[%c0_8, %c0_9] : memref<128x384xbf16, #tpu.memory_space<vmem>>, vector<128x384xbf16>
    %cst_10 = arith.constant dense<0.000000e+00> : vector<128x384xf32>
    %26 = tpu.matmul %24, %25, %cst_10 {dimension_numbers = #tpu.dot_dimension_numbers<[1], [0], [0], [1], [0, 0, 1, 1], [], []>} : vector<128x128xbf16>, vector<128x384xbf16>, vector<128x384xf32> -> vector<128x384xf32>
    %c0_11 = arith.constant 0 : index
    %c0_12 = arith.constant 0 : index
    %27 = vector.load %arg5[%c0_11, %c0_12] : memref<4x384xf32, #tpu.memory_space<vmem>>, vector<1x384xf32>
    %28 = vector.broadcast %27 : vector<1x384xf32> to vector<128x384xf32>
    %29 = arith.addf %26, %28 : vector<128x384xf32>
    %30 = arith.truncf %29 : vector<128x384xf32> to vector<128x384xbf16>
    %31 = vector.extract_strided_slice %30 {offsets = [0, 0], sizes = [128, 32], strides = [1, 1]} : vector<128x384xbf16> to vector<128x32xbf16>
    %32 = vector.shape_cast %31 : vector<128x32xbf16> to vector<2x64x32xbf16>
    %33 = vector.extract_strided_slice %30 {offsets = [0, 128], sizes = [128, 32], strides = [1, 1]} : vector<128x384xbf16> to vector<128x32xbf16>
    %34 = vector.shape_cast %33 : vector<128x32xbf16> to vector<2x64x32xbf16>
    %35 = vector.extract_strided_slice %30 {offsets = [0, 256], sizes = [128, 32], strides = [1, 1]} : vector<128x384xbf16> to vector<128x32xbf16>
    %36 = vector.shape_cast %35 : vector<128x32xbf16> to vector<2x64x32xbf16>
    "tpu.trace_start"() <{level = 10 : i32, message = "bqd,bkd->bqk"}> : () -> ()
    %cst_13 = arith.constant dense<0.000000e+00> : vector<2x64x64xf32>
    %37 = tpu.matmul %32, %34, %cst_13 {dimension_numbers = #tpu.dot_dimension_numbers<[2], [2], [1], [1], [0, 0, 0, 1, 1, 1], [0], [0]>} : vector<2x64x32xbf16>, vector<2x64x32xbf16>, vector<2x64x64xf32> -> vector<2x64x64xf32>
    "tpu.trace_stop"() : () -> ()
    %cst_14 = arith.constant 0.176776692 : f32
    %38 = vector.broadcast %cst_14 : f32 to vector<2x64x64xf32>
    %39 = arith.mulf %37, %38 : vector<2x64x64xf32>
    %cst_15 = arith.constant dense<0xFF800000> : vector<2x64xf32>
    %40 = vector.multi_reduction <maximumf>, %39, %cst_15 [2] : vector<2x64x64xf32> to vector<2x64xf32>
    %41 = vector.shape_cast %40 : vector<2x64xf32> to vector<2x64x1xf32>
    %42 = vector.broadcast %41 : vector<2x64x1xf32> to vector<2x64x64xf32>
    %43 = arith.subf %39, %42 : vector<2x64x64xf32>
    %44 = math.exp %43 : vector<2x64x64xf32>
    %cst_16 = arith.constant dense<0.000000e+00> : vector<2x64xf32>
    %45 = vector.multi_reduction <add>, %44, %cst_16 [2] : vector<2x64x64xf32> to vector<2x64xf32>
    %46 = vector.shape_cast %45 : vector<2x64xf32> to vector<2x64x1xf32>
    %47 = vector.broadcast %46 : vector<2x64x1xf32> to vector<2x64x64xf32>
    %48 = arith.divf %44, %47 : vector<2x64x64xf32>
    %49 = arith.truncf %48 : vector<2x64x64xf32> to vector<2x64x64xbf16>
    "tpu.trace_start"() <{level = 10 : i32, message = "bqk,bkd->bqd"}> : () -> ()
    %cst_17 = arith.constant dense<0.000000e+00> : vector<2x64x32xf32>
    %50 = tpu.matmul %49, %36, %cst_17 {dimension_numbers = #tpu.dot_dimension_numbers<[2], [1], [1], [2], [0, 0, 0, 1, 1, 2], [0], [0]>} : vector<2x64x64xbf16>, vector<2x64x32xbf16>, vector<2x64x32xf32> -> vector<2x64x32xf32>
    "tpu.trace_stop"() : () -> ()
    %51 = vector.extract_strided_slice %30 {offsets = [0, 32], sizes = [128, 32], strides = [1, 1]} : vector<128x384xbf16> to vector<128x32xbf16>
    %52 = vector.shape_cast %51 : vector<128x32xbf16> to vector<2x64x32xbf16>
    %53 = vector.extract_strided_slice %30 {offsets = [0, 160], sizes = [128, 32], strides = [1, 1]} : vector<128x384xbf16> to vector<128x32xbf16>
    %54 = vector.shape_cast %53 : vector<128x32xbf16> to vector<2x64x32xbf16>
    %55 = vector.extract_strided_slice %30 {offsets = [0, 288], sizes = [128, 32], strides = [1, 1]} : vector<128x384xbf16> to vector<128x32xbf16>
    %56 = vector.shape_cast %55 : vector<128x32xbf16> to vector<2x64x32xbf16>
    "tpu.trace_start"() <{level = 10 : i32, message = "bqd,bkd->bqk"}> : () -> ()
    %cst_18 = arith.constant dense<0.000000e+00> : vector<2x64x64xf32>
    %57 = tpu.matmul %52, %54, %cst_18 {dimension_numbers = #tpu.dot_dimension_numbers<[2], [2], [1], [1], [0, 0, 0, 1, 1, 1], [0], [0]>} : vector<2x64x32xbf16>, vector<2x64x32xbf16>, vector<2x64x64xf32> -> vector<2x64x64xf32>
    "tpu.trace_stop"() : () -> ()
    %cst_19 = arith.constant 0.176776692 : f32
    %58 = vector.broadcast %cst_19 : f32 to vector<2x64x64xf32>
    %59 = arith.mulf %57, %58 : vector<2x64x64xf32>
    %cst_20 = arith.constant dense<0xFF800000> : vector<2x64xf32>
    %60 = vector.multi_reduction <maximumf>, %59, %cst_20 [2] : vector<2x64x64xf32> to vector<2x64xf32>
    %61 = vector.shape_cast %60 : vector<2x64xf32> to vector<2x64x1xf32>
    %62 = vector.broadcast %61 : vector<2x64x1xf32> to vector<2x64x64xf32>
    %63 = arith.subf %59, %62 : vector<2x64x64xf32>
    %64 = math.exp %63 : vector<2x64x64xf32>
    %cst_21 = arith.constant dense<0.000000e+00> : vector<2x64xf32>
    %65 = vector.multi_reduction <add>, %64, %cst_21 [2] : vector<2x64x64xf32> to vector<2x64xf32>
    %66 = vector.shape_cast %65 : vector<2x64xf32> to vector<2x64x1xf32>
    %67 = vector.broadcast %66 : vector<2x64x1xf32> to vector<2x64x64xf32>
    %68 = arith.divf %64, %67 : vector<2x64x64xf32>
    %69 = arith.truncf %68 : vector<2x64x64xf32> to vector<2x64x64xbf16>
    "tpu.trace_start"() <{level = 10 : i32, message = "bqk,bkd->bqd"}> : () -> ()
    %cst_22 = arith.constant dense<0.000000e+00> : vector<2x64x32xf32>
    %70 = tpu.matmul %69, %56, %cst_22 {dimension_numbers = #tpu.dot_dimension_numbers<[2], [1], [1], [2], [0, 0, 0, 1, 1, 2], [0], [0]>} : vector<2x64x64xbf16>, vector<2x64x32xbf16>, vector<2x64x32xf32> -> vector<2x64x32xf32>
    "tpu.trace_stop"() : () -> ()
    %71 = vector.extract_strided_slice %30 {offsets = [0, 64], sizes = [128, 32], strides = [1, 1]} : vector<128x384xbf16> to vector<128x32xbf16>
    %72 = vector.shape_cast %71 : vector<128x32xbf16> to vector<2x64x32xbf16>
    %73 = vector.extract_strided_slice %30 {offsets = [0, 192], sizes = [128, 32], strides = [1, 1]} : vector<128x384xbf16> to vector<128x32xbf16>
    %74 = vector.shape_cast %73 : vector<128x32xbf16> to vector<2x64x32xbf16>
    %75 = vector.extract_strided_slice %30 {offsets = [0, 320], sizes = [128, 32], strides = [1, 1]} : vector<128x384xbf16> to vector<128x32xbf16>
    %76 = vector.shape_cast %75 : vector<128x32xbf16> to vector<2x64x32xbf16>
    "tpu.trace_start"() <{level = 10 : i32, message = "bqd,bkd->bqk"}> : () -> ()
    %cst_23 = arith.constant dense<0.000000e+00> : vector<2x64x64xf32>
    %77 = tpu.matmul %72, %74, %cst_23 {dimension_numbers = #tpu.dot_dimension_numbers<[2], [2], [1], [1], [0, 0, 0, 1, 1, 1], [0], [0]>} : vector<2x64x32xbf16>, vector<2x64x32xbf16>, vector<2x64x64xf32> -> vector<2x64x64xf32>
    "tpu.trace_stop"() : () -> ()
    %cst_24 = arith.constant 0.176776692 : f32
    %78 = vector.broadcast %cst_24 : f32 to vector<2x64x64xf32>
    %79 = arith.mulf %77, %78 : vector<2x64x64xf32>
    %cst_25 = arith.constant dense<0xFF800000> : vector<2x64xf32>
    %80 = vector.multi_reduction <maximumf>, %79, %cst_25 [2] : vector<2x64x64xf32> to vector<2x64xf32>
    %81 = vector.shape_cast %80 : vector<2x64xf32> to vector<2x64x1xf32>
    %82 = vector.broadcast %81 : vector<2x64x1xf32> to vector<2x64x64xf32>
    %83 = arith.subf %79, %82 : vector<2x64x64xf32>
    %84 = math.exp %83 : vector<2x64x64xf32>
    %cst_26 = arith.constant dense<0.000000e+00> : vector<2x64xf32>
    %85 = vector.multi_reduction <add>, %84, %cst_26 [2] : vector<2x64x64xf32> to vector<2x64xf32>
    %86 = vector.shape_cast %85 : vector<2x64xf32> to vector<2x64x1xf32>
    %87 = vector.broadcast %86 : vector<2x64x1xf32> to vector<2x64x64xf32>
    %88 = arith.divf %84, %87 : vector<2x64x64xf32>
    %89 = arith.truncf %88 : vector<2x64x64xf32> to vector<2x64x64xbf16>
    "tpu.trace_start"() <{level = 10 : i32, message = "bqk,bkd->bqd"}> : () -> ()
    %cst_27 = arith.constant dense<0.000000e+00> : vector<2x64x32xf32>
    %90 = tpu.matmul %89, %76, %cst_27 {dimension_numbers = #tpu.dot_dimension_numbers<[2], [1], [1], [2], [0, 0, 0, 1, 1, 2], [0], [0]>} : vector<2x64x64xbf16>, vector<2x64x32xbf16>, vector<2x64x32xf32> -> vector<2x64x32xf32>
    "tpu.trace_stop"() : () -> ()
    %91 = vector.extract_strided_slice %30 {offsets = [0, 96], sizes = [128, 32], strides = [1, 1]} : vector<128x384xbf16> to vector<128x32xbf16>
    %92 = vector.shape_cast %91 : vector<128x32xbf16> to vector<2x64x32xbf16>
    %93 = vector.extract_strided_slice %30 {offsets = [0, 224], sizes = [128, 32], strides = [1, 1]} : vector<128x384xbf16> to vector<128x32xbf16>
    %94 = vector.shape_cast %93 : vector<128x32xbf16> to vector<2x64x32xbf16>
    %95 = vector.extract_strided_slice %30 {offsets = [0, 352], sizes = [128, 32], strides = [1, 1]} : vector<128x384xbf16> to vector<128x32xbf16>
    %96 = vector.shape_cast %95 : vector<128x32xbf16> to vector<2x64x32xbf16>
    "tpu.trace_start"() <{level = 10 : i32, message = "bqd,bkd->bqk"}> : () -> ()
    %cst_28 = arith.constant dense<0.000000e+00> : vector<2x64x64xf32>
    %97 = tpu.matmul %92, %94, %cst_28 {dimension_numbers = #tpu.dot_dimension_numbers<[2], [2], [1], [1], [0, 0, 0, 1, 1, 1], [0], [0]>} : vector<2x64x32xbf16>, vector<2x64x32xbf16>, vector<2x64x64xf32> -> vector<2x64x64xf32>
    "tpu.trace_stop"() : () -> ()
    %cst_29 = arith.constant 0.176776692 : f32
    %98 = vector.broadcast %cst_29 : f32 to vector<2x64x64xf32>
    %99 = arith.mulf %97, %98 : vector<2x64x64xf32>
    %cst_30 = arith.constant dense<0xFF800000> : vector<2x64xf32>
    %100 = vector.multi_reduction <maximumf>, %99, %cst_30 [2] : vector<2x64x64xf32> to vector<2x64xf32>
    %101 = vector.shape_cast %100 : vector<2x64xf32> to vector<2x64x1xf32>
    %102 = vector.broadcast %101 : vector<2x64x1xf32> to vector<2x64x64xf32>
    %103 = arith.subf %99, %102 : vector<2x64x64xf32>
    %104 = math.exp %103 : vector<2x64x64xf32>
    %cst_31 = arith.constant dense<0.000000e+00> : vector<2x64xf32>
    %105 = vector.multi_reduction <add>, %104, %cst_31 [2] : vector<2x64x64xf32> to vector<2x64xf32>
    %106 = vector.shape_cast %105 : vector<2x64xf32> to vector<2x64x1xf32>
    %107 = vector.broadcast %106 : vector<2x64x1xf32> to vector<2x64x64xf32>
    %108 = arith.divf %104, %107 : vector<2x64x64xf32>
    %109 = arith.truncf %108 : vector<2x64x64xf32> to vector<2x64x64xbf16>
    "tpu.trace_start"() <{level = 10 : i32, message = "bqk,bkd->bqd"}> : () -> ()
    %cst_32 = arith.constant dense<0.000000e+00> : vector<2x64x32xf32>
    %110 = tpu.matmul %109, %96, %cst_32 {dimension_numbers = #tpu.dot_dimension_numbers<[2], [1], [1], [2], [0, 0, 0, 1, 1, 2], [0], [0]>} : vector<2x64x64xbf16>, vector<2x64x32xbf16>, vector<2x64x32xf32> -> vector<2x64x32xf32>
    "tpu.trace_stop"() : () -> ()
    %111 = tpu.concatenate %50, %70, %90, %110 in 2 : vector<2x64x32xf32>, vector<2x64x32xf32>, vector<2x64x32xf32>, vector<2x64x32xf32> -> vector<2x64x128xf32>
    %112 = vector.shape_cast %111 : vector<2x64x128xf32> to vector<128x128xf32>
    %113 = arith.truncf %112 : vector<128x128xf32> to vector<128x128xbf16>
    %c0_33 = arith.constant 0 : index
    %c0_34 = arith.constant 0 : index
    %114 = vector.load %arg3[%c0_33, %c0_34] : memref<128x128xbf16, #tpu.memory_space<vmem>>, vector<128x128xbf16>
    %cst_35 = arith.constant dense<0.000000e+00> : vector<128x128xf32>
    %115 = tpu.matmul %113, %114, %cst_35 {dimension_numbers = #tpu.dot_dimension_numbers<[1], [0], [0], [1], [0, 0, 1, 1], [], []>} : vector<128x128xbf16>, vector<128x128xbf16>, vector<128x128xf32> -> vector<128x128xf32>
    %c3 = arith.constant 3 : index
    %c128_36 = arith.constant 128 : index
    %116 = vector.load %arg5[%c3, %c128_36] : memref<4x384xf32, #tpu.memory_space<vmem>>, vector<1x128xf32>
    %117 = vector.broadcast %116 : vector<1x128xf32> to vector<128x128xf32>
    %118 = arith.addf %115, %117 : vector<128x128xf32>
    %119 = arith.addf %1, %118 : vector<128x128xf32>
    %120 = vector.shape_cast %119 : vector<128x128xf32> to vector<2x64x128xf32>
    %c0_37 = arith.constant 0 : index
    %c0_38 = arith.constant 0 : index
    %c0_39 = arith.constant 0 : index
    %121 = vector.load %arg6[%c0_37, %c0_38, %c0_39] : memref<2x64x128xf32, #tpu.memory_space<vmem>>, vector<2x64x128xf32>
    tpu.vector_store %arg6[%c0_37, %c0_38, %c0_39], %120 {strides = array<i32>} : memref<2x64x128xf32, #tpu.memory_space<vmem>>, vector<2x64x128xf32>,
    %cst_40 = arith.constant dense<0.000000e+00> : vector<128xf32>
    %122 = vector.multi_reduction <add>, %119, %cst_40 [1] : vector<128x128xf32> to vector<128xf32>
    %123 = vector.shape_cast %122 : vector<128xf32> to vector<128x1xf32>
    %cst_41 = arith.constant 1.280000e+02 : f32
    %124 = vector.broadcast %cst_41 : f32 to vector<128x1xf32>
    %125 = arith.divf %123, %124 : vector<128x1xf32>
    %126 = vector.broadcast %125 : vector<128x1xf32> to vector<128x128xf32>
    %127 = arith.subf %119, %126 : vector<128x128xf32>
    %128 = arith.mulf %127, %127 : vector<128x128xf32>
    %cst_42 = arith.constant dense<0.000000e+00> : vector<128xf32>
    %129 = vector.multi_reduction <add>, %128, %cst_42 [1] : vector<128x128xf32> to vector<128xf32>
    %130 = vector.shape_cast %129 : vector<128xf32> to vector<128x1xf32>
    %cst_43 = arith.constant 1.280000e+02 : f32
    %131 = vector.broadcast %cst_43 : f32 to vector<128x1xf32>
    %132 = arith.divf %130, %131 : vector<128x1xf32>
    %cst_44 = arith.constant 9.99999974E-6 : f32
    %133 = vector.broadcast %cst_44 : f32 to vector<128x1xf32>
    %134 = arith.addf %132, %133 : vector<128x1xf32>
    %135 = math.rsqrt %134 : vector<128x1xf32>
    %136 = vector.broadcast %135 : vector<128x1xf32> to vector<128x128xf32>
    %137 = arith.mulf %127, %136 : vector<128x128xf32>
    %c2_45 = arith.constant 2 : index
    %c256 = arith.constant 256 : index
    %138 = vector.load %arg5[%c2_45, %c256] : memref<4x384xf32, #tpu.memory_space<vmem>>, vector<1x128xf32>
    %139 = vector.broadcast %138 : vector<1x128xf32> to vector<128x128xf32>
    %140 = arith.mulf %137, %139 : vector<128x128xf32>
    %c3_46 = arith.constant 3 : index
    %c0_47 = arith.constant 0 : index
    %141 = vector.load %arg5[%c3_46, %c0_47] : memref<4x384xf32, #tpu.memory_space<vmem>>, vector<1x128xf32>
    %142 = vector.broadcast %141 : vector<1x128xf32> to vector<128x128xf32>
    %143 = arith.addf %140, %142 : vector<128x128xf32>
    %144 = arith.truncf %143 : vector<128x128xf32> to vector<128x128xbf16>
    %c0_48 = arith.constant 0 : index
    %c0_49 = arith.constant 0 : index
    %145 = vector.load %arg4[%c0_48, %c0_49] : memref<128x384xbf16, #tpu.memory_space<vmem>>, vector<128x384xbf16>
    %cst_50 = arith.constant dense<0.000000e+00> : vector<128x384xf32>
    %146 = tpu.matmul %144, %145, %cst_50 {dimension_numbers = #tpu.dot_dimension_numbers<[1], [0], [0], [1], [0, 0, 1, 1], [], []>} : vector<128x128xbf16>, vector<128x384xbf16>, vector<128x384xf32> -> vector<128x384xf32>
    %c1 = arith.constant 1 : index
    %c0_51 = arith.constant 0 : index
    %147 = vector.load %arg5[%c1, %c0_51] : memref<4x384xf32, #tpu.memory_space<vmem>>, vector<1x384xf32>
    %148 = vector.broadcast %147 : vector<1x384xf32> to vector<128x384xf32>
    %149 = arith.addf %146, %148 : vector<128x384xf32>
    %150 = vector.shape_cast %149 : vector<128x384xf32> to vector<2x64x384xf32>
    %151 = arith.truncf %150 : vector<2x64x384xf32> to vector<2x64x384xbf16>
    %c0_52 = arith.constant 0 : index
    %c0_53 = arith.constant 0 : index
    %c0_54 = arith.constant 0 : index
    %152 = vector.load %arg7[%c0_52, %c0_53, %c0_54] : memref<2x64x384xbf16, #tpu.memory_space<vmem>>, vector<2x64x384xbf16>
    tpu.vector_store %arg7[%c0_52, %c0_53, %c0_54], %151 {strides = array<i32>} : memref<2x64x384xbf16, #tpu.memory_space<vmem>>, vector<2x64x384xbf16>,
    return
  }
  func.func @transform_0(%arg0: i32) -> (i32, i32, i32) {
    %c0_i32 = arith.constant 0 : i32
    %c0_i32_0 = arith.constant 0 : i32
    %c0_i32_1 = arith.constant 0 : i32
    return %arg0, %c0_i32, %c0_i32_0 : i32, i32, i32
  }
  func.func @transform_1(%arg0: i32) -> (i32, i32) {
    %c0_i32 = arith.constant 0 : i32
    %c0_i32_0 = arith.constant 0 : i32
    %c0_i32_1 = arith.constant 0 : i32
    return %c0_i32, %c0_i32_0 : i32, i32
  }
  func.func @transform_2(%arg0: i32) -> (i32, i32) {
    %c0_i32 = arith.constant 0 : i32
    %c0_i32_0 = arith.constant 0 : i32
    %c0_i32_1 = arith.constant 0 : i32
    return %c0_i32, %c0_i32_0 : i32, i32
  }
  func.func @transform_3(%arg0: i32) -> (i32, i32) {
    %c0_i32 = arith.constant 0 : i32
    %c0_i32_0 = arith.constant 0 : i32
    %c0_i32_1 = arith.constant 0 : i32
    return %c0_i32, %c0_i32_0 : i32, i32
  }
  func.func @transform_4(%arg0: i32) -> (i32, i32) {
    %c0_i32 = arith.constant 0 : i32
    %c0_i32_0 = arith.constant 0 : i32
    %c0_i32_1 = arith.constant 0 : i32
    return %c0_i32, %c0_i32_0 : i32, i32
  }
  func.func @transform_5(%arg0: i32) -> (i32, i32, i32) {
    %c0_i32 = arith.constant 0 : i32
    %c0_i32_0 = arith.constant 0 : i32
    %c0_i32_1 = arith.constant 0 : i32
    return %arg0, %c0_i32, %c0_i32_0 : i32, i32, i32
  }
  func.func @transform_6(%arg0: i32) -> (i32, i32, i32) {
    %c0_i32 = arith.constant 0 : i32
    %c0_i32_0 = arith.constant 0 : i32
    %c0_i32_1 = arith.constant 0 : i32
    return %arg0, %c0_i32, %c0_i32_0 : i32, i32, i32
  }
}

module attributes {stable_mosaic.version = 11 : i64} {
  func.func @kernel(%arg0: i32, %arg1: memref<2x64x128xf32, #tpu.memory_space<vmem>>, %arg2: memref<2x64x384xbf16, #tpu.memory_space<vmem>>, %arg3: memref<384x128xbf16, #tpu.memory_space<vmem>>, %arg4: memref<1x128xf32, #tpu.memory_space<vmem>>, %arg5: memref<2x64x128xf32, #tpu.memory_space<vmem>>) attributes {dimension_semantics = [#tpu.dimension_semantics<parallel>], iteration_bounds = array<i64: 2>, scalar_prefetch = 0 : i64, scratch_operands = 0 : i64, tpu.core_type = #tpu.core_type<tc>, window_params = [{transform_indices = @transform_0, window_bounds = array<i64: 2, 64, 128>}, {transform_indices = @transform_1, window_bounds = array<i64: 2, 64, 384>}, {pipeline_mode = #tpu.pipeline_mode<synchronous>, transform_indices = @transform_2, window_bounds = array<i64: 384, 128>}, {pipeline_mode = #tpu.pipeline_mode<synchronous>, transform_indices = @transform_3, window_bounds = array<i64: 1, 128>}, {transform_indices = @transform_4, window_bounds = array<i64: 2, 64, 128>}]} {
    %c0 = arith.constant 0 : index
    %c0_0 = arith.constant 0 : index
    %c0_1 = arith.constant 0 : index
    %0 = vector.load %arg2[%c0, %c0_0, %c0_1] : memref<2x64x384xbf16, #tpu.memory_space<vmem>>, vector<2x64x384xbf16>
    %1 = vector.shape_cast %0 : vector<2x64x384xbf16> to vector<128x384xbf16>
    %cst = arith.constant 0.000000e+00 : bf16
    %2 = vector.broadcast %cst : bf16 to vector<128x384xbf16>
    %3 = arith.maximumf %1, %2 : vector<128x384xbf16>
    %c0_2 = arith.constant 0 : index
    %c0_3 = arith.constant 0 : index
    %4 = vector.load %arg3[%c0_2, %c0_3] : memref<384x128xbf16, #tpu.memory_space<vmem>>, vector<384x128xbf16>
    %cst_4 = arith.constant dense<0.000000e+00> : vector<128x128xf32>
    %5 = tpu.matmul %3, %4, %cst_4 {dimension_numbers = #tpu.dot_dimension_numbers<[1], [0], [0], [1], [0, 0, 1, 1], [], []>} : vector<128x384xbf16>, vector<384x128xbf16>, vector<128x128xf32> -> vector<128x128xf32>
    %c0_5 = arith.constant 0 : index
    %c0_6 = arith.constant 0 : index
    %6 = vector.load %arg4[%c0_5, %c0_6] : memref<1x128xf32, #tpu.memory_space<vmem>>, vector<1x128xf32>
    %7 = vector.broadcast %6 : vector<1x128xf32> to vector<128x128xf32>
    %8 = arith.addf %5, %7 : vector<128x128xf32>
    %c0_7 = arith.constant 0 : index
    %c0_8 = arith.constant 0 : index
    %c0_9 = arith.constant 0 : index
    %9 = vector.load %arg1[%c0_7, %c0_8, %c0_9] : memref<2x64x128xf32, #tpu.memory_space<vmem>>, vector<2x64x128xf32>
    %10 = vector.shape_cast %9 : vector<2x64x128xf32> to vector<128x128xf32>
    %11 = arith.addf %10, %8 : vector<128x128xf32>
    %12 = vector.shape_cast %11 : vector<128x128xf32> to vector<2x64x128xf32>
    %c0_10 = arith.constant 0 : index
    %c0_11 = arith.constant 0 : index
    %c0_12 = arith.constant 0 : index
    %13 = vector.load %arg5[%c0_10, %c0_11, %c0_12] : memref<2x64x128xf32, #tpu.memory_space<vmem>>, vector<2x64x128xf32>
    tpu.vector_store %arg5[%c0_10, %c0_11, %c0_12], %12 {strides = array<i32>} : memref<2x64x128xf32, #tpu.memory_space<vmem>>, vector<2x64x128xf32>,
    return
  }
  func.func @transform_0(%arg0: i32) -> (i32, i32, i32) {
    %c0_i32 = arith.constant 0 : i32
    %c0_i32_0 = arith.constant 0 : i32
    %c0_i32_1 = arith.constant 0 : i32
    return %arg0, %c0_i32, %c0_i32_0 : i32, i32, i32
  }
  func.func @transform_1(%arg0: i32) -> (i32, i32, i32) {
    %c0_i32 = arith.constant 0 : i32
    %c0_i32_0 = arith.constant 0 : i32
    %c0_i32_1 = arith.constant 0 : i32
    return %arg0, %c0_i32, %c0_i32_0 : i32, i32, i32
  }
  func.func @transform_2(%arg0: i32) -> (i32, i32) {
    %c0_i32 = arith.constant 0 : i32
    %c0_i32_0 = arith.constant 0 : i32
    %c0_i32_1 = arith.constant 0 : i32
    return %c0_i32, %c0_i32_0 : i32, i32
  }
  func.func @transform_3(%arg0: i32) -> (i32, i32) {
    %c0_i32 = arith.constant 0 : i32
    %c0_i32_0 = arith.constant 0 : i32
    %c0_i32_1 = arith.constant 0 : i32
    return %c0_i32, %c0_i32_0 : i32, i32
  }
  func.func @transform_4(%arg0: i32) -> (i32, i32, i32) {
    %c0_i32 = arith.constant 0 : i32
    %c0_i32_0 = arith.constant 0 : i32
    %c0_i32_1 = arith.constant 0 : i32
    return %arg0, %c0_i32, %c0_i32_0 : i32, i32, i32
  }
}

</mosaic_0001>

<bundles_post_ra>
// kernel: transformer_block_forward.2
= control target key start
LH: loop header
LB: loop body
LE: loop exit
PB: predicated region body
PF: predicated region fallthrough
CT: control target
= control target key end

     0   :  { %12 = vsyncpa [#allocation3], 0  ;;  %s8436_s0 = inlined_call_operand.hbm [shape: f32[4,64,128], index: 0, kind: input, shape index: {}]   ;;  %s8437_s1 = inlined_call_operand.hbm [shape: bf16[128,384], index: 1, kind: input, shape index: {}]   ;;  %s8438_s2 = inlined_call_operand.hbm [shape: bf16[128,128], index: 2, kind: input, shape index: {}]   ;;  %s8439_s3 = inlined_call_operand.hbm [shape: bf16[128,384], index: 3, kind: input, shape index: {}]   ;;  %s8440_s4 = inlined_call_operand.hbm [shape: f32[4,384], index: 4, kind: input, shape index: {}]   ;;  %s8441_s5 = inlined_call_operand.vmem [shape: f32[4,64,128], index: 5, kind: output, shape index: {0}]   ;;  %s8442_s6 = inlined_call_operand.vmem [shape: bf16[4,64,384], index: 6, kind: output, shape index: {1}]  }
   0x1   :  { %14 = vsyncpa [#allocation3 + $0x1], 0 }
   0x2   :  { %15 = vsyncpa [#allocation5], 0 }
   0x3   :  { %16 = vsyncpa [#allocation8], 0  ;;  %s6344_s21 = smov 0   ;;  %s6346_s22 = smov 0  }
   0x4   :  { %s6348_s23 = smov 0   ;;  %s6350_s24 = smov 0  }
   0x5 LB: > { %s4722_s25 = sadd.s32 4294967295, %s6292_s24   ;;  %p42_p0 = scmp.ne.s32.totalorder %s6284_s22, %s6280_s21  ;;  %s6292_s24 = sphi %s6350_s24, %s8538_s24   ;;  %s6288_s23 = sphi %s6348_s23, %s8537_s23   ;;  %s6284_s22 = sphi %s6346_s22, %s8536_s22   ;;  %s6280_s21 = sphi %s6344_s21, %s8535_s21  }
   0x6   : > { %p6366_p1 = scmp.eq.s32.totalorder %s4722_s25, 0  ;;  %p4724_p2 = scmp.ge.s32.totalorder %s6292_s24, 1 }
   0x7   : > { %p189_p3 = scmp.lt.s32.totalorder %s6292_s24, 3  ;;  %s6294_s29 = smov [#allocation4]  }
   0x8   : > { %s8462_s26 = scalar_select %p6366_p1, 1, 0 }
   0x9   : > { %p6374_p4 = por %p6366_p1, %p42_p0  ;;  %p6378_p5 = pnand %p4724_p2, %p189_p3 }
   0xa   : > { %s201_s30 = sshll.u32 %s6294_s29, 4  ;;  %s6295_s8 = smov [#allocation7]   ;;  %s202_s30 = int_to_ptr.vmem [resolvable:$true] %s201_s30 }
   0xb   : > { %s8463_s27 = scalar_select %p6374_p4, 1, 0 }
   0xc   : > { %s8464_s28 = scalar_select %p6378_p5, 1, 0 }
   0xd   : > { %p5518_p6 = pneg %p6378_p5  ;;  %s227_s9 = sshll.u32 %s6295_s8, 4  ;;  %s228_s9 = int_to_ptr.vmem [resolvable:$true] %s227_s9 }
   0xe   : > { %s6296_s10 = smov [#allocation6]   ;;  %s6129_s12 = scalar_lea.vmem %s202_s30, 3072 }
   0xf   : > { %p6386_p7 = pnand %p5518_p6, %p6366_p1  ;;  %s214_s11 = sshll.u32 %s6296_s10, 4  ;;  %s215_s11 = int_to_ptr.vmem [resolvable:$true] %s214_s11 }
  0x10   : > { %p6130_p9 = scmp.ne.s32.totalorder %s202_s30, %s6129_s12  ;;  %p6137_p12 = scmp.lt.s32.totalorder %s202_s30, %s202_s30 }
  0x11   : > { %p6120_p8 = pneg %p6386_p7  ;;  %p6138_p13 = scmp.lt.s32.totalorder %s6129_s12, %s6129_s12 }
  0x13   : > { %p6132_p10 = pnand %p6130_p9, %p6120_p8  ;;  %p6139_p0 = por %p6138_p13, %p6137_p12 }
  0x15   : > { %p6133_p11 = pneg %p6132_p10 }
  0x17   : > { %p6140_p2 = pnand %p6139_p0, %p6133_p11 }
  0x19   : > { %6143 = shalt.err (!%p6140_p2)
}
  0x1a   : > { %s6297_s13 = smov 192   ;;  %s6298_s14 = smov 12  }
  0x1b   : > { %5521 = dma.hbm_to_vmem [thread:$0]  (!%p6386_p7), %s8437_s1, 3072, %s202_s30, [#allocation5], %s6297_s13, %s6297_s13, %s6298_s14  }
  0x1c   : > { %s6155_s17 = scalar_lea.vmem %s228_s9, 3072  ;;  %p6163_p10 = scmp.lt.s32.totalorder %s228_s9, %s228_s9 }
  0x1d   : > { %p6156_p3 = scmp.ne.s32.totalorder %s228_s9, %s6155_s17  ;;  %p6164_p1 = scmp.lt.s32.totalorder %s6155_s17, %s6155_s17 }
  0x1f   : > { %p6158_p6 = pnand %p6156_p3, %p6120_p8  ;;  %p6165_p12 = por %p6164_p1, %p6163_p10 }
  0x21   : > { %p6159_p9 = pneg %p6158_p6 }
  0x23   : > { %p6166_p11 = pnand %p6165_p12, %p6159_p9 }
  0x25   : > { %6169 = shalt.err (!%p6166_p11)
}
  0x26   : > { %5527 = dma.hbm_to_vmem [thread:$0]  (!%p6386_p7), %s8439_s3, 3072, %s228_s9, [#allocation8], %s6297_s13, %s6297_s13, %s6298_s14  }
  0x27   : > { %s6181_s20 = scalar_lea.vmem %s215_s11, 1024  ;;  %p6189_p3 = scmp.lt.s32.totalorder %s215_s11, %s215_s11 }
  0x28   : > { %p6182_p13 = scmp.ne.s32.totalorder %s215_s11, %s6181_s20  ;;  %p6190_p6 = scmp.lt.s32.totalorder %s6181_s20, %s6181_s20 }
  0x2a   : > { %p6184_p0 = pnand %p6182_p13, %p6120_p8  ;;  %p6191_p4 = por %p6190_p6, %p6189_p3 }
  0x2c   : > { %p6185_p2 = pneg %p6184_p0 }
  0x2e   : > { %p6192_p1 = pnand %p6191_p4, %p6185_p2 }
  0x30   : > { %6195 = shalt.err (!%p6192_p1)
}
  0x31   : > { %s6299_s21 = smov 64   ;;  %s6300_s29 = smov 4  }
  0x32   : > { %5524 = dma.hbm_to_vmem [thread:$0]  (!%p6386_p7), %s8438_s2, 1024, %s215_s11, [#allocation5], %s6299_s21, %s6299_s21, %s6300_s29  }
  0x33   : > { %s6301_s9 = smov [#allocation9]  }
  0x34   : > { %s241_s10 = sshll.u32 %s6301_s9, 4  ;;  %s242_s10 = int_to_ptr.vmem [resolvable:$true] %s241_s10 }
  0x35   : > { %s6207_s12 = scalar_lea.vmem %s242_s10, 192  ;;  %p6215_p4 = scmp.lt.s32.totalorder %s242_s10, %s242_s10 }
  0x36   : > { %p6208_p9 = scmp.ne.s32.totalorder %s242_s10, %s6207_s12  ;;  %p6216_p11 = scmp.lt.s32.totalorder %s6207_s12, %s6207_s12 }
  0x38   : > { %p6210_p10 = pnand %p6208_p9, %p6120_p8  ;;  %p6217_p13 = por %p6216_p11, %p6215_p4 }
  0x3a   : > { %p6211_p12 = pneg %p6210_p10 }
  0x3c   : > { %p6218_p0 = pnand %p6217_p13, %p6211_p12 }
  0x3e   : > { %6221 = shalt.err (!%p6218_p0)
}
  0x3f   : > { %5530 = dma.hbm_to_vmem [thread:$0]  (!%p6386_p7), %s8440_s4, 192, %s242_s10, [#allocation8]  }
  0x40   : > { %s6425_s11 = sadd.s32 1, %s6292_s24   ;;  %s29_s15 = sadd.s32 1, %s6288_s23 }
  0x41   : > { %s26_s16 = ssub.s32 %s6292_s24, %s6425_s11  ;;  %p36_p8 = scmp.ne.s32.totalorder %s6288_s23, %s6284_s22 }
  0x42   : > { %p27_p2 = scmp.eq.s32.totalorder %s26_s16, 0  ;;  %p37_p3 = scmp.eq.s32.totalorder %s6292_s24, 0 }
  0x43   : > { %p5539_p6 = scmp.lt.s32.totalorder %s6292_s24, 2  ;;  %s252_s7 = sand.u32 1, %s6288_s23  }
  0x44   : > { %s6436_s17 = scalar_select %p27_p2, %s6288_s23, %s29_s15  }
  0x45   : > { %p38_p1 = por %p37_p3, %p36_p8  ;;  %s4730_s18 = sshll.u32 %s252_s7, 7 }
  0x46   : > { %s4905_s19 = sshll.u32 %s6292_s24, 11  ;;  %s256_s30 = scalar_lea.vmem [#allocation2], %s4730_s18 }
  0x47   : > { %s6442_s29 = scalar_lea.hbm %s8436_s0, %s4905_s19  ;;  %s264_s8 = sshll.u32 %s256_s30, 4  ;;  %s6448_s8 = int_to_ptr.vmem [resolvable:$true] %s264_s8 }
  0x48   : > { %p6444_p7 = pnand %p5539_p6, %p38_p1  ;;  %s6450_s10 = scalar_lea.sflag [#allocation3], %s252_s7 }
  0x49   : > { %s6222_s12 = scalar_lea.hbm %s6442_s29, 2048  ;;  %s6227_s15 = scalar_lea.hbm %s8436_s0, 4096 }
  0x4a   : > { %p6223_p9 = scmp.ne.s32.totalorder %s6442_s29, %s6222_s12  ;;  %p6224_p10 = pneg %p6444_p7 }
  0x4b   : > { %p6228_p11 = scmp.lt.s32.totalorder %s6442_s29, %s8436_s0  ;;  %p6229_p13 = scmp.lt.s32.totalorder %s6227_s15, %s6222_s12 }
  0x4c   : > { %p6225_p12 = pnand %p6224_p10, %p6223_p9 }
  0x4d   : > { %p6230_p0 = por %p6229_p13, %p6228_p11 }
  0x4e   : > { %p6226_p4 = pneg %p6225_p12 }
  0x50   : > { %p6231_p8 = pnand %p6230_p0, %p6226_p4 }
  0x52   : > { %6234 = shalt.err (!%p6231_p8)
}
  0x53   : > { %s6235_s7 = scalar_lea.vmem %s6448_s8, 2048  ;;  %s6302_s19 = smov [#allocation2]  }
  0x54   : > { %p6236_p2 = scmp.ne.s32.totalorder %s6448_s8, %s6235_s7  ;;  %s6240_s20 = sshll.u32 %s6302_s19, 4  ;;  %s6241_s20 = int_to_ptr.vmem [resolvable:$false] %s6240_s20 }
  0x55   : > { %s6242_s21 = scalar_lea.vmem %s6241_s20, 4096  ;;  %p6243_p1 = scmp.lt.s32.totalorder %s6448_s8, %s6241_s20 }
  0x56   : > { %p6238_p3 = pnand %p6236_p2, %p6224_p10  ;;  %p6244_p9 = scmp.lt.s32.totalorder %s6242_s21, %s6235_s7 }
  0x58   : > { %p6239_p6 = pneg %p6238_p3  ;;  %p6245_p12 = por %p6244_p9, %p6243_p1 }
  0x5a   : > { %p6246_p5 = pnand %p6245_p12, %p6239_p6 }
  0x5c   : > { %6249 = shalt.err (!%p6246_p5)
}
  0x5d   : > { %s6303_s30 = smov 128   ;;  %s6304_s12 = smov 8  }
  0x5e   : > { %5534 = dma.hbm_to_vmem [thread:$0]  (!%p6444_p7), %s6442_s29, 2048, %s6448_s8, %s6450_s10, %s6303_s30, %s6303_s30, %s6304_s12  }
  0x5f   : > { %p8467_p10 = scmp.ne.s32.totalorder %s8464_s28, 0 }
  0x61   : > { %276 = sbr.rel (%p8467_p10) target bundleno = 4440 (0x1158), region = 40 }
  0x66   : > { %s278_s13 = sand.u32 1, %s6284_s22   ;;  %p8468_p4 = scmp.ne.s32.totalorder %s8463_s27, 0 }
  0x67   : > { %s4735_s14 = sshll.u32 %s278_s13, 7  ;;  %s279_s15 = scalar_lea.sflag [#allocation3], %s278_s13 }
  0x68   : > { %s6474_s16 = scalar_lea.vmem [#allocation2], %s4735_s14 }
  0x69   : > { %6267 = dma.done.wait (%p8468_p4), %s279_s15, 2048  }
  0x6a   : > { %6269 = vsyncadd (%p8468_p4), %s279_s15, 4294965248  ;;  %p8469_p5 = scmp.ne.s32.totalorder %s8462_s26, 0 }
  0x6c   : > { %6271 = dma.done.wait (%p8469_p5), [#allocation5], 4096  }
  0x6d   : > { %6273 = vsyncadd (%p8469_p5), [#allocation5], 4294963200 }
  0x6e   : > { %6275 = dma.done.wait (%p8469_p5), [#allocation8], 3264  }
  0x6f   : > { %6277 = vsyncadd (%p8469_p5), [#allocation8], 4294964032  ;;  %v350_v0 = vld [vmem:[%s6474_s16] sm:$0xff]  ;;  %v352_v1 = vld [vmem:[%s6474_s16 + $0x10] sm:$0xff]  ;;  %vm1004_vm0 = vcmask 261120   ;;  %s6306_s26 = smov 96  }
  0x70   : > { %366 = vadd.xlane.f32.xlu0 %v350_v0  ;;  %370 = vadd.xlane.f32.xlu1 %v352_v1  ;;  %v351_v2 = vld [vmem:[%s6474_s16 + $0x8] sm:$0xff]  ;;  %v353_v3 = vld [vmem:[%s6474_s16 + $0x18] sm:$0xff]  ;;  %v354_v4 = vld [vmem:[%s6474_s16 + $0x20] sm:$0xff]  ;;  %vm1199_vm1 = vcmask 523264   ;;  %s6307_s27 = smov 64   ;;  %s6308_s28 = smov 32  }
  0x71   : > { %v355_v5 = vld [vmem:[%s6474_s16 + $0x28] sm:$0xff]  ;;  %v356_v6 = vld [vmem:[%s6474_s16 + $0x30] sm:$0xff]  ;;  %v357_v7 = vld [vmem:[%s6474_s16 + $0x38] sm:$0xff]  ;;  %vm3550_vm2 = vcmask 785408   ;;  %s4740_s29 = sshll.u32 %s4722_s25, 1 }
  0x72   : > { %v6497_v8 = vld [vmem:[%s6474_s16 + $0x40] sm:$0xff]  ;;  %v6500_v9 = vld [vmem:[%s6474_s16 + $0x48] sm:$0xff]  ;;  %v6503_v10 = vld [vmem:[%s6474_s16 + $0x50] sm:$0xff]  ;;  %p336_p7 = scmp.lt.s32.totalorder %s4740_s29, 3 }
  0x73   : > { %v6506_v11 = vld [vmem:[%s6474_s16 + $0x58] sm:$0xff]  ;;  %v6511_v12 = vld [vmem:[%s6474_s16 + $0x60] sm:$0xff]  ;;  %v6514_v13 = vld [vmem:[%s6474_s16 + $0x68] sm:$0xff] }
  0x74   : > { %368 = vadd.xlane.f32.xlu0 %v351_v2  ;;  %372 = vadd.xlane.f32.xlu1 %v353_v3  ;;  %v6519_v14 = vld [vmem:[%s6474_s16 + $0x70] sm:$0xff]  ;;  %v6522_v15 = vld [vmem:[%s6474_s16 + $0x78] sm:$0xff]  ;;  %s8540_s29 = smov (!%p336_p7, %s4740_s29), 3 }
  0x75   : > { %v5710_v16 = vld [vmem:[#allocation4 + $0xac] ss:$12 sps:$4 sm:$0xff]   ;;  %v5712_v17 = vld [vmem:[#allocation4 + $0xa8] ss:$12 sps:$4 sm:$0xff]   ;;  %v5715_v54 = vld [vmem:[#allocation4 + $0xb0] ss:$12 sps:$4 sm:$0xff]  }
  0x76   : > { %770 = vmatprep.subr.bf16.mxu0 %v5710_v16  ;;  %v5713_v53 = vld [vmem:[#allocation4 + $0x94] ss:$12 sps:$4 sm:$0xff]   ;;  %v5716_v55 = vld [vmem:[#allocation4 + $0x90] ss:$12 sps:$4 sm:$0xff]   ;;  %5115 = vmatprep.subr.bf16.mxu1 %v5715_v54  ;;  %s4906_s8 = sshll.u32 %s8540_s29, 6  ;;  %s5499_s24 = smul.u32 96, %s8540_s29 }
  0x77   : > { %771 = vmatpush1.bf16.msra.mxu0 %v5712_v17  ;;  %5116 = vmatpush3.bf16.msra.mxu1 %v5715_v54  ;;  %v5721_v17 = vld [vmem:[#allocation4 + $0x64] ss:$12 sps:$4 sm:$0xff]   ;;  %s8073_s18 = scalar_lea.vmem %s8441_s5, %s4906_s8 }
  0x78   : > { %374 = vadd.xlane.f32.xlu0 %v354_v4  ;;  %376 = vadd.xlane.f32.xlu1 %v355_v5  ;;  %s8343_s19 = scalar_lea.vmem %s8442_s6, %s5499_s24 }
  0x79   : > { %772 = vmatprep.subr.bf16.mxu0 %v5713_v53 }
  0x7b   : > { %773 = vmatpush1.bf16.msra.mxu0 %v5716_v55 }
  0x7c   : > { %378 = vadd.xlane.f32.xlu0 %v356_v6  ;;  %380 = vadd.xlane.f32.xlu1 %v357_v7 }
  0x80   : > { %382 = vadd.xlane.f32.xlu0 %v6497_v8  ;;  %384 = vadd.xlane.f32.xlu1 %v6500_v9 }
  0x84   : > { %386 = vadd.xlane.f32.xlu0 %v6503_v10  ;;  %388 = vadd.xlane.f32.xlu1 %v6506_v11 }
  0x88   : > { %390 = vadd.xlane.f32.xlu0 %v6511_v12  ;;  %392 = vadd.xlane.f32.xlu1 %v6514_v13 }
  0x8c   : > { %394 = vadd.xlane.f32.xlu0 %v6519_v14  ;;  %396 = vadd.xlane.f32.xlu1 %v6522_v15 }
  0xf9   : > { %v367_v18 = vpop.xlane.xlu0 %366  ;;  %v371_v19 = vpop.xlane.xlu1 %370 }
  0xfa   : > { %v399_v20 = vmul.f32 0.0078125, %v367_v18  ;;  %v401_v21 = vmul.f32 0.0078125, %v371_v19  ;;  %v5723_v18 = vld [vmem:[#allocation4 + $0x80] ss:$12 sps:$4 sm:$0xff]  }
  0xfc   : > { %v6528_v22 = vsub.f32 %v350_v0, %v399_v20  ;;  %v6530_v23 = vsub.f32 %v352_v1, %v401_v21  ;;  %v5717_v0 = vld [vmem:[#allocation4 + $0x7c] ss:$12 sps:$4 sm:$0xff]   ;;  %v5719_v1 = vld [vmem:[#allocation4 + $0x98] ss:$12 sps:$4 sm:$0xff]   ;;  %v5724_v20 = vld [vmem:[#allocation4 + $0x60] ss:$12 sps:$4 sm:$0xff]  }
  0xfd   : > { %v369_v24 = vpop.xlane.xlu0 %368  ;;  %v373_v25 = vpop.xlane.xlu1 %372  ;;  %774 = vmatprep.subr.bf16.mxu0 %v5717_v0  ;;  %5117 = vmatprep.subr.bf16.mxu1 %v5719_v1 }
  0xfe   : > { %v400_v26 = vmul.f32 0.0078125, %v369_v24  ;;  %v431_v27 = vmul.f32 %v6528_v22, %v6528_v22  ;;  %v402_v28 = vmul.f32 0.0078125, %v373_v25  ;;  %v433_v29 = vmul.f32 %v6530_v23, %v6530_v23  ;;  %5118 = vmatpush3.bf16.msra.mxu1 %v5719_v1 }
  0xff   : > { %5119 = vmatprep.subr.bf16.mxu1 %v5723_v18 }
 0x100   : > { %447 = vadd.xlane.f32.xlu0 %v431_v27  ;;  %v6536_v30 = vsub.f32 %v351_v2, %v400_v26  ;;  %v6538_v31 = vsub.f32 %v353_v3, %v402_v28  ;;  %v5725_v28 = vld [vmem:[#allocation4 + $0x4c] ss:$12 sps:$4 sm:$0xff]  }
 0x101   : > { %v375_v32 = vpop.xlane.xlu0 %374  ;;  %v377_v33 = vpop.xlane.xlu1 %376 }
 0x102   : > { %v403_v34 = vmul.f32 0.0078125, %v375_v32  ;;  %v432_v35 = vmul.f32 %v6536_v30, %v6536_v30  ;;  %v404_v36 = vmul.f32 0.0078125, %v377_v33  ;;  %v434_v37 = vmul.f32 %v6538_v31, %v6538_v31  ;;  %5120 = vmatpush3.bf16.msra.mxu1 %v5723_v18  ;;  %v5728_v33 = vld [vmem:[#allocation4 + $0x48] ss:$12 sps:$4 sm:$0xff]  }
 0x104   : > { %451 = vadd.xlane.f32.xlu0 %v433_v29  ;;  %449 = vadd.xlane.f32.xlu1 %v432_v35  ;;  %v6544_v38 = vsub.f32 %v354_v4, %v403_v34  ;;  %v6546_v39 = vsub.f32 %v355_v5, %v404_v36  ;;  %v5720_v5 = vld [vmem:[#allocation4 + $0x78] ss:$12 sps:$4 sm:$0xff]   ;;  %v5727_v29 = vld [vmem:[#allocation4 + $0x68] ss:$12 sps:$4 sm:$0xff]   ;;  %v5731_v36 = vld [vmem:[#allocation4 + $0x50] ss:$12 sps:$4 sm:$0xff]  }
 0x105   : > { %v379_v40 = vpop.xlane.xlu0 %378  ;;  %v381_v41 = vpop.xlane.xlu1 %380  ;;  %775 = vmatpush1.bf16.msra.mxu0 %v5720_v5  ;;  %5121 = vmatprep.subr.bf16.mxu1 %v5727_v29  ;;  %v5729_v35 = vld [vmem:[#allocation4 + $0x34] ss:$12 sps:$4 sm:$0xff]  }
 0x106   : > { %v405_v42 = vmul.f32 0.0078125, %v379_v40  ;;  %v435_v43 = vmul.f32 %v6544_v38, %v6544_v38  ;;  %v406_v44 = vmul.f32 0.0078125, %v381_v41  ;;  %v436_v45 = vmul.f32 %v6546_v39, %v6546_v39  ;;  %776 = vmatprep.subr.bf16.mxu0 %v5721_v17  ;;  %5122 = vmatpush3.bf16.msra.mxu1 %v5727_v29  ;;  %v5735_v40 = vld [vmem:[#allocation4 + $0x38] ss:$12 sps:$4 sm:$0xff]  }
 0x107   : > { %5123 = vmatprep.subr.bf16.mxu1 %v5731_v36  ;;  %v5736_v41 = vld [vmem:[#allocation4 + $0x18] ss:$12 sps:$4 sm:$0xff]  }
 0x108   : > { %453 = vadd.xlane.f32.xlu1 %v434_v37  ;;  %455 = vadd.xlane.f32.xlu0 %v435_v43  ;;  %v6552_v46 = vsub.f32 %v356_v6, %v405_v42  ;;  %v6554_v47 = vsub.f32 %v357_v7, %v406_v44  ;;  %v5737_v42 = vld [vmem:[#allocation4 + $0x4] ss:$12 sps:$4 sm:$0xff]   ;;  %v5739_v43 = vld [vmem:[#allocation4 + $0x20] ss:$12 sps:$4 sm:$0xff]  }
 0x109   : > { %v383_v48 = vpop.xlane.xlu0 %382  ;;  %v385_v49 = vpop.xlane.xlu1 %384  ;;  %777 = vmatpush1.bf16.msra.mxu0 %v5724_v20  ;;  %v5740_v44 = vld [vmem:[#allocation4] ss:$12 sps:$4 sm:$0xff]  }
 0x10a   : > { %v407_v50 = vmul.f32 0.0078125, %v383_v48  ;;  %v437_v51 = vmul.f32 %v6552_v46, %v6552_v46  ;;  %v408_v52 = vmul.f32 0.0078125, %v385_v49  ;;  %v438_v56 = vmul.f32 %v6554_v47, %v6554_v47  ;;  %778 = vmatprep.subr.bf16.mxu0 %v5725_v28  ;;  %5124 = vmatpush3.bf16.msra.mxu1 %v5731_v36 }
 0x10b   : > { %5125 = vmatprep.subr.bf16.mxu1 %v5735_v40  ;;  %v8450_v48 = vmov 0  }
 0x10c   : > { %457 = vadd.xlane.f32.xlu1 %v436_v45  ;;  %459 = vadd.xlane.f32.xlu0 %v437_v51  ;;  %v6561_v57 = vsub.f32 %v6497_v8, %v407_v50  ;;  %v6564_v58 = vsub.f32 %v6500_v9, %v408_v52  ;;  %v5741_v45 = vld [vmem:[#allocation4 + $0x8] ss:$12 sps:$4 sm:$0xff]  }
 0x10d   : > { %v387_v59 = vpop.xlane.xlu0 %386  ;;  %v389_v60 = vpop.xlane.xlu1 %388  ;;  %779 = vmatpush1.bf16.msra.mxu0 %v5728_v33  ;;  %802 = vmatprep.mubr.bf16.mxu0 %v8450_v48 }
 0x10e   : > { %v409_v61 = vmul.f32 0.0078125, %v387_v59  ;;  %v439_v62 = vmul.f32 %v6561_v57, %v6561_v57  ;;  %v410_v63 = vmul.f32 0.0078125, %v389_v60  ;;  %v440_v2 = vmul.f32 %v6564_v58, %v6564_v58  ;;  %780 = vmatprep.subr.bf16.mxu0 %v5729_v35  ;;  %5126 = vmatpush3.bf16.msra.mxu1 %v5735_v40 }
 0x10f   : > { %5127 = vmatprep.subr.bf16.mxu1 %v5739_v43 }
 0x110   : > { %461 = vadd.xlane.f32.xlu1 %v438_v56  ;;  %463 = vadd.xlane.f32.xlu0 %v439_v62  ;;  %v6571_v3 = vsub.f32 %v6503_v10, %v409_v61  ;;  %v6574_v4 = vsub.f32 %v6506_v11, %v410_v63 }
 0x111   : > { %v391_v6 = vpop.xlane.xlu0 %390  ;;  %v393_v7 = vpop.xlane.xlu1 %392 }
 0x112   : > { %v411_v8 = vmul.f32 0.0078125, %v391_v6  ;;  %v441_v9 = vmul.f32 %v6571_v3, %v6571_v3  ;;  %v412_v16 = vmul.f32 0.0078125, %v393_v7  ;;  %v442_v10 = vmul.f32 %v6574_v4, %v6574_v4  ;;  %5128 = vmatpush3.bf16.msra.mxu1 %v5739_v43 }
 0x113   : > { %5129 = vmatprep.subr.bf16.mxu1 %v5741_v45 }
 0x114   : > { %465 = vadd.xlane.f32.xlu1 %v440_v2  ;;  %467 = vadd.xlane.f32.xlu0 %v441_v9  ;;  %v6581_v11 = vsub.f32 %v6511_v12, %v411_v8  ;;  %v6584_v19 = vsub.f32 %v6514_v13, %v412_v16 }
 0x115   : > { %v395_v21 = vpop.xlane.xlu0 %394  ;;  %v397_v24 = vpop.xlane.xlu1 %396 }
 0x116   : > { %v413_v25 = vmul.f32 0.0078125, %v395_v21  ;;  %v443_v26 = vmul.f32 %v6581_v11, %v6581_v11  ;;  %v414_v27 = vmul.f32 0.0078125, %v397_v24  ;;  %v444_v12 = vmul.f32 %v6584_v19, %v6584_v19  ;;  %5130 = vmatpush3.bf16.msra.mxu1 %v5741_v45 }
 0x118   : > { %469 = vadd.xlane.f32.xlu1 %v442_v10  ;;  %471 = vadd.xlane.f32.xlu0 %v443_v26  ;;  %v6591_v13 = vsub.f32 %v6519_v14, %v413_v25  ;;  %v6594_v32 = vsub.f32 %v6522_v15, %v414_v27  ;;  %v5732_v14 = vld [vmem:[#allocation4 + $0x30] ss:$12 sps:$4 sm:$0xff]   ;;  %v6602_v26 = vld [vmem:[#allocation9 + $0x2] ss:$0 sm:$0xff] }
 0x119   : > { %781 = vmatpush1.bf16.msra.mxu0 %v5732_v14  ;;  %v5733_v15 = vld [vmem:[#allocation4 + $0x1c] ss:$12 sps:$4 sm:$0xff]  }
 0x11a   : > { %v445_v34 = vmul.f32 %v6591_v13, %v6591_v13  ;;  %v446_v37 = vmul.f32 %v6594_v32, %v6594_v32  ;;  %782 = vmatprep.subr.bf16.mxu0 %v5733_v15  ;;  %v6606_v15 = vld [vmem:[#allocation9 + $0x6] ss:$0 sm:$0xff] }
 0x11c   : > { %473 = vadd.xlane.f32.xlu1 %v444_v12  ;;  %475 = vadd.xlane.f32.xlu0 %v445_v34 }
 0x11d   : > { %783 = vmatpush1.bf16.msra.mxu0 %v5736_v41 }
 0x11e   : > { %784 = vmatprep.subr.bf16.mxu0 %v5737_v42 }
 0x120   : > { %477 = vadd.xlane.f32.xlu1 %v446_v37 }
 0x121   : > { %785 = vmatpush1.bf16.msra.mxu0 %v5740_v44 }
 0x189   : > { %v448_v49 = vpop.xlane.xlu0 %447 }
 0x18a   : > { %v479_v50 = vmul.f32 0.0078125, %v448_v49 }
 0x18c   : > { %v495_v51 = vadd.f32 1e-05, %v479_v50 }
 0x18d   : > { %v450_v52 = vpop.xlane.xlu1 %449  ;;  %v452_v53 = vpop.xlane.xlu0 %451 }
 0x18e   : > { %5782 = vrsqrt.f32 %v495_v51  ;;  %v480_v54 = vmul.f32 0.0078125, %v450_v52  ;;  %v481_v55 = vmul.f32 0.0078125, %v452_v53 }
 0x190   : > { %v496_v56 = vadd.f32 1e-05, %v480_v54  ;;  %v497_v59 = vadd.f32 1e-05, %v481_v55 }
 0x191   : > { %v454_v60 = vpop.xlane.xlu1 %453  ;;  %v456_v61 = vpop.xlane.xlu0 %455 }
 0x192   : > { %5784 = vrsqrt.f32 %v496_v56  ;;  %v482_v62 = vmul.f32 0.0078125, %v454_v60  ;;  %v483_v63 = vmul.f32 0.0078125, %v456_v61 }
 0x193   : > { %5786 = vrsqrt.f32 %v497_v59 }
 0x194   : > { %v498_v0 = vadd.f32 1e-05, %v482_v62  ;;  %v499_v1 = vadd.f32 1e-05, %v483_v63 }
 0x195   : > { %v458_v2 = vpop.xlane.xlu1 %457  ;;  %v460_v5 = vpop.xlane.xlu0 %459 }
 0x196   : > { %5788 = vrsqrt.f32 %v498_v0  ;;  %v484_v6 = vmul.f32 0.0078125, %v458_v2  ;;  %v485_v7 = vmul.f32 0.0078125, %v460_v5 }
 0x197   : > { %5790 = vrsqrt.f32 %v499_v1 }
 0x198   : > { %v500_v8 = vadd.f32 1e-05, %v484_v6  ;;  %v501_v9 = vadd.f32 1e-05, %v485_v7 }
 0x199   : > { %v462_v16 = vpop.xlane.xlu1 %461  ;;  %v464_v17 = vpop.xlane.xlu0 %463 }
 0x19a   : > { %5792 = vrsqrt.f32 %v500_v8  ;;  %v486_v18 = vmul.f32 0.0078125, %v462_v16  ;;  %v487_v10 = vmul.f32 0.0078125, %v464_v17 }
 0x19b   : > { %v5783_v20 = vpop.eup %5782  ;;  %5794 = vrsqrt.f32 %v501_v9 }
 0x19c   : > { %v502_v21 = vadd.f32 1e-05, %v486_v18  ;;  %v503_v24 = vadd.f32 1e-05, %v487_v10  ;;  %v527_v25 = vmul.f32 %v5783_v20, %v6528_v22 }
 0x19d   : > { %v466_v27 = vpop.xlane.xlu1 %465  ;;  %v468_v28 = vpop.xlane.xlu0 %467 }
 0x19e   : > { %5796 = vrsqrt.f32 %v502_v21  ;;  %v488_v29 = vmul.f32 0.0078125, %v466_v27  ;;  %v489_v12 = vmul.f32 0.0078125, %v468_v28  ;;  %v548_v34 = vmul.f32 %v6602_v26, %v527_v25 }
 0x19f   : > { %v5785_v33 = vpop.eup %5784  ;;  %5798 = vrsqrt.f32 %v503_v24 }
 0x1a0   : > { %v5787_v35 = vpop.eup %5786  ;;  %v504_v36 = vadd.f32 1e-05, %v488_v29  ;;  %v505_v37 = vadd.f32 1e-05, %v489_v12  ;;  %v528_v14 = vmul.f32 %v5785_v33, %v6536_v30  ;;  %v569_v49 = vadd.f32 %v6606_v15, %v548_v34 }
 0x1a1   : > { %v470_v40 = vpop.xlane.xlu1 %469  ;;  %v472_v22 = vpop.xlane.xlu0 %471  ;;  %v529_v41 = vmul.f32 %v5787_v35, %v6530_v23 }
 0x1a2   : > { %5800 = vrsqrt.f32 %v504_v36  ;;  %v490_v42 = vmul.f32 0.0078125, %v470_v40  ;;  %v491_v43 = vmul.f32 0.0078125, %v472_v22  ;;  %v549_v44 = vmul.f32 %v6602_v26, %v528_v14 }
 0x1a3   : > { %v5789_v45 = vpop.eup %5788  ;;  %5802 = vrsqrt.f32 %v505_v37  ;;  %v550_v23 = vmul.f32 %v6602_v26, %v529_v41 }
 0x1a4   : > { %v5791_v50 = vpop.eup %5790  ;;  %v506_v51 = vadd.f32 1e-05, %v490_v42  ;;  %v507_v52 = vadd.f32 1e-05, %v491_v43  ;;  %v570_v30 = vadd.f32 %v6606_v15, %v549_v44  ;;  %v530_v53 = vmul.f32 %v5789_v45, %v6538_v31 }
 0x1a5   : > { %v474_v54 = vpop.xlane.xlu1 %473  ;;  %v476_v55 = vpop.xlane.xlu0 %475  ;;  %v531_v56 = vmul.f32 %v5791_v50, %v6544_v38  ;;  %v571_v38 = vadd.f32 %v6606_v15, %v550_v23 }
 0x1a6   : > { %5804 = vrsqrt.f32 %v506_v51  ;;  %v492_v59 = vmul.f32 0.0078125, %v474_v54  ;;  %v493_v60 = vmul.f32 0.0078125, %v476_v55  ;;  %v585_v61 = vpack.c.bf16 %v570_v30, %v569_v49 }
 0x1a7   : > { %v5793_v62 = vpop.eup %5792  ;;  %5806 = vrsqrt.f32 %v507_v52  ;;  %v551_v63 = vmul.f32 %v6602_v26, %v530_v53  ;;  %v552_v5 = vmul.f32 %v6602_v26, %v531_v56 }
 0x1a8   : > { %v5795_v0 = vpop.eup %5794  ;;  %v508_v1 = vadd.f32 1e-05, %v492_v59  ;;  %v509_v2 = vadd.f32 1e-05, %v493_v60  ;;  %803 = vmatmul.mubr.bf16.vlgmr.msra.gmra.mxu0 %v585_v61  ;;  %5131 = vmatprep.mubr.bf16.mxu1 %v585_v61  ;;  %v532_v31 = vmul.f32 %v5793_v62, %v6546_v39 }
 0x1a9   : > { %v478_v6 = vpop.xlane.xlu1 %477  ;;  %v572_v7 = vadd.f32 %v6606_v15, %v551_v63  ;;  %812 = vmatprep.mubr.bf16.mxu0 %v8450_v48  ;;  %v533_v8 = vmul.f32 %v5795_v0, %v6552_v46  ;;  %v573_v21 = vadd.f32 %v6606_v15, %v552_v5 }
 0x1aa   : > { %5808 = vrsqrt.f32 %v508_v1  ;;  %v494_v9 = vmul.f32 0.0078125, %v478_v6  ;;  %v553_v16 = vmul.f32 %v6602_v26, %v532_v31 }
 0x1ab   : > { %v5797_v17 = vpop.eup %5796  ;;  %5810 = vrsqrt.f32 %v509_v2  ;;  %v586_v18 = vpack.c.bf16 %v572_v7, %v571_v38  ;;  %v554_v39 = vmul.f32 %v6602_v26, %v533_v8 }
 0x1ac   : > { %v5799_v10 = vpop.eup %5798  ;;  %v510_v20 = vadd.f32 1e-05, %v494_v9  ;;  %v574_v24 = vadd.f32 %v6606_v15, %v553_v16  ;;  %v534_v25 = vmul.f32 %v5797_v17, %v6554_v47 }
 0x1ad   : > { %5132 = vmatmul.mubr.bf16.vlgmr.msra.gmra.mxu1 %v586_v18  ;;  %v535_v46 = vmul.f32 %v5799_v10, %v6561_v57  ;;  %v575_v12 = vadd.f32 %v6606_v15, %v554_v39 }
 0x1ae   : > { %5812 = vrsqrt.f32 %v510_v20  ;;  %v587_v27 = vpack.c.bf16 %v574_v24, %v573_v21  ;;  %v555_v28 = vmul.f32 %v6602_v26, %v534_v25 }
 0x1af   : > { %v5801_v29 = vpop.eup %5800  ;;  %v556_v36 = vmul.f32 %v6602_v26, %v535_v46 }
 0x1b0   : > { %v5803_v33 = vpop.eup %5802  ;;  %813 = vmatmul.mubr.bf16.gmra.mxu0 %v586_v18  ;;  %5135 = vmatprep.mubr.bf16.mxu1 %v587_v27  ;;  %v576_v34 = vadd.f32 %v6606_v15, %v555_v28  ;;  %v536_v35 = vmul.f32 %v5801_v29, %v6564_v58 }
 0x1b1   : > { %822 = vmatprep.mubr.bf16.mxu0 %v8450_v48  ;;  %v537_v47 = vmul.f32 %v5803_v33, %v6571_v3  ;;  %v577_v41 = vadd.f32 %v6606_v15, %v556_v36 }
 0x1b2   : > { %v588_v57 = vpack.c.bf16 %v576_v34, %v575_v12  ;;  %v557_v37 = vmul.f32 %v6602_v26, %v536_v35 }
 0x1b3   : > { %v5805_v14 = vpop.eup %5804  ;;  %v558_v40 = vmul.f32 %v6602_v26, %v537_v47 }
 0x1b4   : > { %v5807_v22 = vpop.eup %5806  ;;  %v578_v42 = vadd.f32 %v6606_v15, %v557_v37  ;;  %v538_v43 = vmul.f32 %v5805_v14, %v6574_v4 }
 0x1b5   : > { %5136 = vmatmul.mubr.bf16.gmra.mxu1 %v588_v57  ;;  %v539_v58 = vmul.f32 %v5807_v22, %v6581_v11  ;;  %v579_v49 = vadd.f32 %v6606_v15, %v558_v40 }
 0x1b6   : > { %v589_v44 = vpack.c.bf16 %v578_v42, %v577_v41  ;;  %v559_v45 = vmul.f32 %v6602_v26, %v538_v43 }
 0x1b7   : > { %v5809_v3 = vpop.eup %5808  ;;  %v560_v30 = vmul.f32 %v6602_v26, %v539_v58 }
 0x1b8   : > { %v5811_v50 = vpop.eup %5810  ;;  %823 = vmatmul.mubr.bf16.gmra.mxu0 %v587_v27  ;;  %5139 = vmatprep.mubr.bf16.mxu1 %v589_v44  ;;  %v580_v51 = vadd.f32 %v6606_v15, %v559_v45  ;;  %v540_v52 = vmul.f32 %v5809_v3, %v6584_v19 }
 0x1b9   : > { %832 = vmatprep.mubr.bf16.mxu0 %v8450_v48  ;;  %v541_v4 = vmul.f32 %v5811_v50, %v6591_v13  ;;  %v581_v55 = vadd.f32 %v6606_v15, %v560_v30 }
 0x1ba   : > { %v590_v11 = vpack.c.bf16 %v580_v51, %v579_v49  ;;  %v561_v53 = vmul.f32 %v6602_v26, %v540_v52 }
 0x1bb   : > { %v5813_v54 = vpop.eup %5812  ;;  %v562_v59 = vmul.f32 %v6602_v26, %v541_v4 }
 0x1bc   : > { %v582_v23 = vadd.f32 %v6606_v15, %v561_v53  ;;  %v542_v56 = vmul.f32 %v5813_v54, %v6594_v32  ;;  %v627_v32 = vlaneseq }
 0x1bd   : > { %5140 = vmatmul.mubr.bf16.gmra.mxu1 %v590_v11  ;;  %v583_v13 = vadd.f32 %v6606_v15, %v562_v59 }
 0x1be   : > { %v591_v19 = vpack.c.bf16 %v582_v23, %v581_v55  ;;  %v563_v60 = vmul.f32 %v6602_v26, %v542_v56  ;;  %v6660_v26 = vshrl.u32 %v627_v32, 7 }
 0x1c0   : > { %833 = vmatmul.mubr.bf16.gmra.mxu0 %v588_v57  ;;  %5143 = vmatprep.mubr.bf16.mxu1 %v591_v19  ;;  %v584_v61 = vadd.f32 %v6606_v15, %v563_v60  ;;  %8470 = vst [vmem:[#allocation13_spill] sm:$0xff] %v6660_v26  ;;  %v8449_v63 = vsub.s32 0, %v6660_v26  ;;  %v625_v15 = vld [vmem:[#allocation9] ss:$4 sm:$0x7]  ;;  %v8448_v0 = vsub.s32 1, %v6660_v26 }
 0x1c1   : > { %842 = vmatprep.mubr.bf16.mxu0 %v8450_v48  ;;  %v8447_v34 = vsub.s32 2, %v6660_v26 }
 0x1c2   : > { %v592_v62 = vpack.c.bf16 %v584_v61, %v583_v13  ;;  %v6666_v2 = vrot.slane %v625_v15, %v8449_v63  ;;  %v6670_v5 = vrot.slane %v625_v15, %v8448_v0 }
 0x1c3   : > { %v6713_v14 = vrot.slane %v625_v15, %v8447_v34 }
 0x1c5   : > { %5144 = vmatmul.mubr.bf16.gmra.mxu1 %v592_v62 }
 0x1c8   : > { %843 = vmatmul.mubr.bf16.gmra.mxu0 %v589_v44 }
 0x1c9   : > { %852 = vmatprep.mubr.bf16.mxu0 %v8450_v48 }
 0x1d0   : > { %853 = vmatmul.mubr.bf16.gmra.mxu0 %v590_v11 }
 0x1d1   : > { %862 = vmatprep.mubr.bf16.mxu0 %v8450_v48 }
 0x1d8   : > { %863 = vmatmul.mubr.bf16.gmra.mxu0 %v591_v19 }
 0x1d9   : > { %872 = vmatprep.mubr.bf16.mxu0 %v8450_v48 }
 0x1e0   : > { %873 = vmatmul.mubr.bf16.gmra.mxu0 %v592_v62 }
 0x268   : > { %v804_v1 = vpop.f32.mrf.mxu0 }
 0x269   : > { %v805_v38 = vadd.f32 %v804_v1, %v6666_v2 }
 0x26a   : > { %v806_v31 = vpop.f32.mrf.mxu0 }
 0x26b   : > { %v807_v16 = vadd.f32 %v806_v31, %v6670_v5 }
 0x26c   : > { %v808_v6 = vpop.f32.mrf.mxu0 }
 0x26d   : > { %v809_v7 = vadd.f32 %v808_v6, %v6666_v2  ;;  %v6674_v8 = vpop.f32.mrf.mxu1 }
 0x26e   : > { %v810_v9 = vpop.f32.mrf.mxu0 }
 0x26f   : > { %v6677_v17 = vpack.c.bf16 %v809_v7, %v805_v38  ;;  %v811_v18 = vadd.f32 %v810_v9, %v6670_v5  ;;  %v6680_v39 = vpop.f32.mrf.mxu1 }
 0x270   : > { %v6682_v10 = vpop.f32.mrf.mxu0 }
 0x271   : > { %v6684_v20 = vpack.c.bf16 %v811_v18, %v807_v16  ;;  %v6686_v21 = vpop.f32.mrf.mxu1  ;;  %5155 = vmatprep.mubr.msk.bf16.mxu1 %vm1004_vm0, %v6677_v17 }
 0x272   : > { %v816_v24 = vpop.f32.mrf.mxu0 }
 0x273   : > { %v6690_v25 = vpop.f32.mrf.mxu1  ;;  %1554 = vrot.lane.b32.xlu0 %v6684_v20, %s6306_s26  ;;  %v817_v29 = vadd.f32 %v816_v24, %v6670_v5 }
 0x274   : > { %v6694_v46 = vpop.f32.mrf.mxu0 }
 0x275   : > { %v6696_v27 = vpop.f32.mrf.mxu1 }
 0x276   : > { %v820_v28 = vpop.f32.mrf.mxu0 }
 0x277   : > { %v821_v12 = vadd.f32 %v820_v28, %v6670_v5  ;;  %v6700_v33 = vpop.f32.mrf.mxu1 }
 0x278   : > { %v6703_v35 = vpop.f32.mrf.mxu0 }
 0x279   : > { %v6705_v36 = vpack.c.bf16 %v821_v12, %v817_v29  ;;  %v5138_v47 = vpop.f32.mrf.mxu1 }
 0x27a   : > { %v826_v57 = vpop.f32.mrf.mxu0 }
 0x27b   : > { %v6707_v37 = vpop.f32.mrf.mxu1  ;;  %1556 = vrot.lane.b32.xlu0 %v6705_v36, %s6306_s26  ;;  %v827_v43 = vadd.f32 %v826_v57, %v6670_v5 }
 0x27c   : > { %v6715_v40 = vpop.f32.mrf.mxu0 }
 0x27d   : > { %v5141_v22 = vpop.f32.mrf.mxu1 }
 0x27e   : > { %v958_v41 = vadd.f32 %v5141_v22, %v6713_v14  ;;  %v830_v42 = vpop.f32.mrf.mxu0 }
 0x27f   : > { %v831_v58 = vadd.f32 %v830_v42, %v6670_v5  ;;  %v949_v44 = vpop.f32.mrf.mxu1  ;;  %v1021_v42 = vsel %vm1004_vm0, %v6705_v36, 0 }
 0x280   : > { %v950_v45 = vadd.f32 %v949_v44, %v6713_v14  ;;  %v6721_v3 = vpop.f32.mrf.mxu0  ;;  %v945_v44 = vadd.f32 %v5138_v47, %v6713_v14  ;;  %v829_v47 = vadd.f32 %v6715_v40, %v6666_v2 }
 0x281   : > { %v6723_v49 = vpack.c.bf16 %v831_v58, %v827_v43  ;;  %v5142_v50 = vpop.f32.mrf.mxu1 }
 0x282   : > { %v961_v51 = vadd.f32 %v5142_v50, %v6713_v14  ;;  %v836_v52 = vpop.f32.mrf.mxu0  ;;  %v942_v50 = vadd.f32 %v6696_v27, %v6713_v14  ;;  %v815_v27 = vadd.f32 %v6682_v10, %v6666_v2  ;;  %v934_v10 = vadd.f32 %v6700_v33, %v6713_v14 }
 0x283   : > { %v952_v30 = vpop.f32.mrf.mxu1  ;;  %1558 = vrot.lane.b32.xlu1 %v6723_v49, %s6306_s26  ;;  %v837_v56 = vadd.f32 %v836_v52, %v6670_v5  ;;  %v1024_v29 = vsel %vm1004_vm0, %v6723_v49, 0 }
 0x284   : > { %v6728_v4 = vpack.c.bf16 %v961_v51, %v958_v41  ;;  %v953_v11 = vadd.f32 %v952_v30, %v6713_v14  ;;  %v6731_v53 = vpop.f32.mrf.mxu0  ;;  %v6786_v52 = vpack.c.bf16 %v945_v44, %v942_v50  ;;  %v1018_v30 = vsel %vm1004_vm0, %v6684_v20, 0 }
 0x285   : > { %v6733_v54 = vpop.f32.mrf.mxu1  ;;  %v839_v33 = vadd.f32 %v6731_v53, %v6666_v2  ;;  %v921_v53 = vadd.f32 %v6690_v25, %v6713_v14 }
 0x286   : > { %v6735_v55 = vpack.c.bf16 %v953_v11, %v950_v45  ;;  %v840_v23 = vpop.f32.mrf.mxu0 }
 0x287   : > { %v841_v59 = vadd.f32 %v840_v23, %v6670_v5  ;;  %v965_v19 = vpop.f32.mrf.mxu1  ;;  %v819_v23 = vadd.f32 %v6694_v46, %v6666_v2  ;;  %v937_v46 = vadd.f32 %v6707_v37, %v6713_v14  ;;  %v929_v37 = vadd.f32 %v6686_v21, %v6713_v14 }
 0x288   : > { %v966_v60 = vadd.f32 %v965_v19, %v6713_v14  ;;  %v844_v13 = vpop.f32.mrf.mxu0  ;;  %v835_v21 = vadd.f32 %v6721_v3, %v6666_v2 }
 0x289   : > { %v6740_v61 = vpack.c.bf16 %v841_v59, %v837_v56  ;;  %v6742_v62 = vpop.f32.mrf.mxu1  ;;  %v845_v38 = vadd.f32 %v844_v13, %v6666_v2  ;;  %v825_v13 = vadd.f32 %v6703_v35, %v6666_v2 }
 0x28a   : > { %v6744_v32 = vpop.f32.mrf.mxu0 }
 0x28b   : > { %v968_v15 = vpop.f32.mrf.mxu1  ;;  %1560 = vrot.lane.b32.xlu0 %v6740_v61, %s6306_s26  ;;  %5467 = vmatprep.subr.msk.bf16.mxu1 %vm1004_vm0, %v6740_v61  ;;  %v1027_v1 = vsel %vm1004_vm0, %v6740_v61, 0 }
 0x28c   : > { %v969_v31 = vadd.f32 %v968_v15, %v6713_v14  ;;  %v848_v6 = vpop.f32.mrf.mxu0  ;;  %5148 = vmatpush3.bf16.xpose.msra.mxu1 %v1027_v1  ;;  %v6806_v15 = vpack.c.bf16 %v819_v23, %v815_v27 }
 0x28d   : > { %v849_v7 = vadd.f32 %v848_v6, %v6666_v2  ;;  %5468 = vmatprep.subr.msk.bf16.mxu1 %vm1004_vm0, %v6723_v49 }
 0x28e   : > { %v6757_v9 = vpack.c.bf16 %v969_v31, %v966_v60  ;;  %v6759_v16 = vpop.f32.mrf.mxu0  ;;  %v6813_v31 = vpack.c.bf16 %v829_v47, %v825_v13 }
 0x28f   : > { %v6761_v18 = vpack.c.bf16 %v849_v7, %v845_v38  ;;  %v6825_v38 = vpack.c.bf16 %v937_v46, %v934_v10  ;;  %v926_v7 = vadd.f32 %v6674_v8, %v6713_v14  ;;  %v918_v8 = vadd.f32 %v6680_v39, %v6713_v14 }
 0x290   : > { %v6763_v24 = vpop.f32.mrf.mxu0  ;;  %v974_v39 = vadd.f32 %v6733_v54, %v6713_v14 }
 0x291   : > { %5171 = vmatprep.mubr.msk.bf16.mxu0 %vm1004_vm0, %v6761_v18  ;;  %v6857_v25 = vpack.c.bf16 %v921_v53, %v918_v8 }
 0x292   : > { %v856_v28 = vpop.f32.mrf.mxu0 }
 0x294   : > { %v6769_v12 = vpop.f32.mrf.mxu0  ;;  %5150 = vmatpush3.bf16.xpose.msra.mxu1 %v1024_v29 }
 0x295   : > { %5469 = vmatprep.subr.msk.bf16.mxu1 %vm1004_vm0, %v6705_v36 }
 0x296   : > { %v860_v57 = vpop.f32.mrf.mxu0 }
 0x297   : > { %v861_v29 = vadd.f32 %v860_v57, %v6670_v5  ;;  %v851_v57 = vadd.f32 %v6759_v16, %v6670_v5 }
 0x298   : > { %v6773_v22 = vpop.f32.mrf.mxu0 }
 0x299   : > { %v865_v16 = vadd.f32 %v6773_v22, %v6666_v2 }
 0x29a   : > { %v866_v41 = vpop.f32.mrf.mxu0 }
 0x29b   : > { %v867_v40 = vadd.f32 %v866_v41, %v6670_v5  ;;  %v6840_v41 = vpack.c.bf16 %v929_v37, %v926_v7 }
 0x29c   : > { %v6777_v43 = vpop.f32.mrf.mxu0  ;;  %5152 = vmatpush3.bf16.xpose.msra.mxu1 %v1021_v42  ;;  %v6844_v42 = vpack.c.bf16 %v839_v33, %v835_v21 }
 0x29d   : > { %5470 = vmatprep.subr.msk.bf16.mxu1 %vm1004_vm0, %v6684_v20  ;;  %v869_v54 = vadd.f32 %v6777_v43, %v6666_v2 }
 0x29e   : > { %v870_v58 = vpop.f32.mrf.mxu0 }
 0x29f   : > { %v871_v59 = vadd.f32 %v870_v58, %v6670_v5  ;;  %v857_v58 = vadd.f32 %v856_v28, %v6670_v5  ;;  %v977_v28 = vadd.f32 %v6742_v62, %v6713_v14  ;;  %v6893_v47 = vpack.c.bf16 %v869_v54, %v865_v16 }
 0x2a0   : > { %v6782_v45 = vpop.f32.mrf.mxu0 }
 0x2a1   : > { %v6815_v6 = vpack.c.bf16 %v871_v59, %v867_v40  ;;  %v6851_v44 = vpack.c.bf16 %v861_v29, %v857_v58  ;;  %v6869_v50 = vpack.c.bf16 %v977_v28, %v974_v39  ;;  %v875_v43 = vadd.f32 %v6782_v45, %v6666_v2 }
 0x2a2   : > { %v876_v51 = vpop.f32.mrf.mxu0 }
 0x2a3   : > { %v877_v19 = vadd.f32 %v876_v51, %v6670_v5  ;;  %v1113_v3 = vsel %vm1004_vm0, %v6815_v6, 0  ;;  %v847_v51 = vadd.f32 %v6744_v32, %v6670_v5  ;;  %v855_v32 = vadd.f32 %v6763_v24, %v6666_v2 }
 0x2a4   : > { %v6790_v11 = vpop.f32.mrf.mxu0  ;;  %5154 = vmatpush3.bf16.xpose.msra.mxu1 %v1018_v30  ;;  %v1110_v30 = vsel %vm1004_vm0, %v6851_v44, 0 }
 0x2a5   : > { %5179 = vmatprep.subr.bf16.mxu1 %v6786_v52  ;;  %v6875_v62 = vpack.c.bf16 %v851_v57, %v847_v51 }
 0x2a6   : > { %v880_v56 = vpop.f32.mrf.mxu0 }
 0x2a7   : > { %v881_v60 = vadd.f32 %v880_v56, %v6670_v5  ;;  %v1107_v14 = vsel %vm1004_vm0, %v6875_v62, 0  ;;  %v859_v5 = vadd.f32 %v6769_v12, %v6666_v2  ;;  %v879_v12 = vadd.f32 %v6790_v11, %v6666_v2 }
 0x2a9   : > { %v6809_v1 = vpack.c.bf16 %v881_v60, %v877_v19  ;;  %v6891_v23 = vpack.c.bf16 %v859_v5, %v855_v32  ;;  %v6903_v24 = vpack.c.bf16 %v879_v12, %v875_v43 }
 0x2ab   : > { %5156 = vmatmul.mubr.msk.bf16.vlgmr.msra.gmra.mxu1 %vm1004_vm0, %v6806_v15  ;;  %5471 = vmatprep.subr.msk.bf16.mxu0 %vm1004_vm0, %v6809_v1  ;;  %v1116_v35 = vsel %vm1004_vm0, %v6809_v1, 0 }
 0x2ac   : > { %5159 = vmatprep.mubr.msk.bf16.mxu1 %vm1004_vm0, %v6813_v31  ;;  %5164 = vmatpush3.bf16.xpose.msra.mxu0 %v1116_v35 }
 0x2ad   : > { %5180 = vmatpush3.bf16.msra.mxu1 %v6786_v52  ;;  %5472 = vmatprep.subr.msk.bf16.mxu0 %vm1004_vm0, %v6815_v6 }
 0x2ae   : > { %5181 = vmatprep.subr.bf16.mxu1 %v6825_v38 }
 0x2b1   : > { %5182 = vmatpush3.bf16.msra.mxu1 %v6825_v38 }
 0x2b2   : > { %5183 = vmatprep.subr.bf16.mxu1 %v6840_v41 }
 0x2b3   : > { %5160 = vmatmul.mubr.msk.bf16.gmra.mxu1 %vm1004_vm0, %v6844_v42 }
 0x2b4   : > { %5166 = vmatpush3.bf16.xpose.msra.mxu0 %v1113_v3 }
 0x2b5   : > { %5184 = vmatpush3.bf16.msra.mxu1 %v6840_v41  ;;  %5473 = vmatprep.subr.msk.bf16.mxu0 %vm1004_vm0, %v6851_v44 }
 0x2b6   : > { %5185 = vmatprep.subr.bf16.mxu1 %v6857_v25 }
 0x2b9   : > { %5186 = vmatpush3.bf16.msra.mxu1 %v6857_v25 }
 0x2ba   : > { %5195 = vmatprep.subr.bf16.mxu1 %v6869_v50 }
 0x2bc   : > { %5168 = vmatpush3.bf16.xpose.msra.mxu0 %v1110_v30 }
 0x2bd   : > { %5474 = vmatprep.subr.msk.bf16.mxu0 %vm1004_vm0, %v6875_v62 }
 0x2c4   : > { %5170 = vmatpush3.bf16.xpose.msra.mxu0 %v1107_v14 }
 0x2cb   : > { %5172 = vmatmul.mubr.msk.bf16.vlgmr.msra.gmra.mxu0 %vm1004_vm0, %v6891_v23 }
 0x2cc   : > { %5175 = vmatprep.mubr.msk.bf16.mxu0 %vm1004_vm0, %v6893_v47 }
 0x2d3   : > { %5176 = vmatmul.mubr.msk.bf16.gmra.mxu0 %vm1004_vm0, %v6903_v24 }
 0x2e5   : > { %v1555_v22 = vpop.permute.xlu0 %1554 }
 0x2e6   : > { %v1575_v45 = vsel %vm1004_vm0, %v1555_v22, 0 }
 0x2ed   : > { %v1557_v56 = vpop.permute.xlu0 %1556 }
 0x2ee   : > { %v1578_v2 = vsel %vm1004_vm0, %v1557_v56, 0 }
 0x2f5   : > { %v1559_v19 = vpop.permute.xlu1 %1558 }
 0x2f6   : > { %v1581_v11 = vsel %vm1004_vm0, %v1559_v19, 0 }
 0x2fd   : > { %v1561_v27 = vpop.permute.xlu0 %1560 }
 0x2fe   : > { %5475 = vmatprep.subr.msk.bf16.mxu0 %vm1004_vm0, %v1561_v27  ;;  %v1584_v59 = vsel %vm1004_vm0, %v1561_v27, 0 }
 0x2ff   : > { %5212 = vmatpush3.bf16.xpose.msra.mxu0 %v1584_v59 }
 0x300   : > { %5476 = vmatprep.subr.msk.bf16.mxu0 %vm1004_vm0, %v1559_v19 }
 0x307   : > { %5214 = vmatpush3.bf16.xpose.msra.mxu0 %v1581_v11 }
 0x308   : > { %5477 = vmatprep.subr.msk.bf16.mxu0 %vm1004_vm0, %v1557_v56 }
 0x30f   : > { %5216 = vmatpush3.bf16.xpose.msra.mxu0 %v1578_v2 }
 0x310   : > { %5478 = vmatprep.subr.msk.bf16.mxu0 %vm1004_vm0, %v1555_v22 }
 0x317   : > { %5218 = vmatpush3.bf16.xpose.msra.mxu0 %v1575_v45 }
 0x36b   : > { %v5157_v60 = vpop.f32.mrf.mxu1 }
 0x36c   : > { %v6915_v13 = vmul.f32 0.17677669, %v5157_v60 }
 0x36d   : > { %v1063_v46 = vpop.f32.mrf.mxu1 }
 0x36e   : > { %v6917_v40 = vmul.f32 0.17677669, %v1063_v46  ;;  %v1206_v10 = vsel %vm1199_vm1, %v6915_v13, -inf }
 0x36f   : > { %1207 = vmax.xlane.f32.xlu0 %v1206_v10  ;;  %v5158_v35 = vpop.f32.mrf.mxu1 }
 0x370   : > { %v6921_v37 = vmul.f32 0.17677669, %v5158_v35  ;;  %v1200_v21 = vsel %vm1199_vm1, %v6917_v40, -inf }
 0x371   : > { %v1066_v33 = vpop.f32.mrf.mxu1 }
 0x372   : > { %v6923_v7 = vmul.f32 0.17677669, %v1066_v33  ;;  %v1209_v29 = vsel %vm1199_vm1, %v6921_v37, -inf }
 0x373   : > { %1201 = vmax.xlane.f32.xlu0 %v1200_v21  ;;  %1210 = vmax.xlane.f32.xlu1 %v1209_v29  ;;  %v5161_v53 = vpop.f32.mrf.mxu1 }
 0x374   : > { %v6929_v58 = vmul.f32 0.17677669, %v5161_v53  ;;  %v1203_v28 = vsel %vm1199_vm1, %v6923_v7, -inf }
 0x375   : > { %v1079_v8 = vpop.f32.mrf.mxu1 }
 0x376   : > { %v6931_v3 = vmul.f32 0.17677669, %v1079_v8  ;;  %v1218_v39 = vsel %vm1199_vm1, %v6929_v58, -inf }
 0x377   : > { %1204 = vmax.xlane.f32.xlu1 %v1203_v28  ;;  %1219 = vmax.xlane.f32.xlu0 %v1218_v39  ;;  %v5162_v57 = vpop.f32.mrf.mxu1 }
 0x378   : > { %v6937_v51 = vmul.f32 0.17677669, %v5162_v57  ;;  %v1212_v5 = vsel %vm1199_vm1, %v6931_v3, -inf }
 0x379   : > { %v1082_v30 = vpop.f32.mrf.mxu1 }
 0x37a   : > { %v6939_v14 = vmul.f32 0.17677669, %v1082_v30  ;;  %v1221_v54 = vsel %vm1199_vm1, %v6937_v51, -inf }
 0x37b   : > { %1213 = vmax.xlane.f32.xlu0 %v1212_v5  ;;  %1222 = vmax.xlane.f32.xlu1 %v1221_v54 }
 0x37c   : > { %v1215_v32 = vsel %vm1199_vm1, %v6939_v14, -inf }
 0x37f   : > { %1216 = vmax.xlane.f32.xlu1 %v1215_v32 }
 0x38b   : > { %v5173_v16 = vpop.f32.mrf.mxu0 }
 0x38c   : > { %v6947_v12 = vmul.f32 0.17677669, %v5173_v16 }
 0x38d   : > { %v1152_v43 = vpop.f32.mrf.mxu0 }
 0x38e   : > { %v6949_v22 = vmul.f32 0.17677669, %v1152_v43  ;;  %v1230_v56 = vsel %vm1199_vm1, %v6947_v12, -inf }
 0x38f   : > { %1231 = vmax.xlane.f32.xlu0 %v1230_v56  ;;  %v5174_v27 = vpop.f32.mrf.mxu0 }
 0x390   : > { %v6953_v59 = vmul.f32 0.17677669, %v5174_v27  ;;  %v1224_v2 = vsel %vm1199_vm1, %v6949_v22, -inf }
 0x391   : > { %v1155_v19 = vpop.f32.mrf.mxu0 }
 0x392   : > { %v6955_v11 = vmul.f32 0.17677669, %v1155_v19  ;;  %v1233_v45 = vsel %vm1199_vm1, %v6953_v59, -inf }
 0x393   : > { %1225 = vmax.xlane.f32.xlu0 %v1224_v2  ;;  %1234 = vmax.xlane.f32.xlu1 %v1233_v45  ;;  %v5177_v60 = vpop.f32.mrf.mxu0 }
 0x394   : > { %v6961_v46 = vmul.f32 0.17677669, %v5177_v60  ;;  %v1227_v33 = vsel %vm1199_vm1, %v6955_v11, -inf }
 0x395   : > { %v1168_v10 = vpop.f32.mrf.mxu0 }
 0x396   : > { %v6963_v35 = vmul.f32 0.17677669, %v1168_v10  ;;  %v1242_v21 = vsel %vm1199_vm1, %v6961_v46, -inf }
 0x397   : > { %1228 = vmax.xlane.f32.xlu1 %v1227_v33  ;;  %1243 = vmax.xlane.f32.xlu0 %v1242_v21  ;;  %v5178_v53 = vpop.f32.mrf.mxu0 }
 0x398   : > { %v1236_v29 = vsel %vm1199_vm1, %v6963_v35, -inf  ;;  %v6979_v8 = vmul.f32 0.17677669, %v5178_v53 }
 0x399   : > { %v1171_v28 = vpop.f32.mrf.mxu0 }
 0x39a   : > { %v6981_v39 = vmul.f32 0.17677669, %v1171_v28  ;;  %v1245_v57 = vsel %vm1199_vm1, %v6979_v8, -inf }
 0x39b   : > { %1237 = vmax.xlane.f32.xlu0 %v1236_v29 }
 0x39c   : > { %v1239_v30 = vsel %vm1199_vm1, %v6981_v39, -inf }
 0x3a8   : > { %1544 = vrot.lane.b32.xlu1 %v6806_v15, %s6306_s26 }
 0x3ac   : > { %1673 = vrot.lane.b32.xlu1 %v6809_v1, %s6306_s26 }
 0x3b0   : > { %1671 = vrot.lane.b32.xlu1 %v6815_v6, %s6306_s26 }
 0x3b1   : > { %1542 = vrot.lane.b32.xlu0 %v6677_v17, %s6306_s26 }
 0x3d4   : > { %1246 = vmax.xlane.f32.xlu1 %v1245_v57 }
 0x3d8   : > { %1240 = vmax.xlane.f32.xlu1 %v1239_v30 }
 0x3f8   : > { %v1208_v5 = vpop.xlane.xlu0 %1207 }
 0x3f9   : > { %v1250_v54 = vsub.f32 %v6915_v13, %v1208_v5 }
 0x3fb   : > { %v1268_v32 = vmul.f32 1.442695, %v1250_v54 }
 0x3fc   : > { %v1211_v16 = vpop.xlane.xlu1 %1210  ;;  %v1202_v43 = vpop.xlane.xlu0 %1201 }
 0x3fd   : > { %5814 = vpow2.f32 %v1268_v32  ;;  %v1251_v56 = vsub.f32 %v6921_v37, %v1211_v16  ;;  %v1248_v27 = vsub.f32 %v6917_v40, %v1202_v43 }
 0x3ff   : > { %v1270_v19 = vmul.f32 1.442695, %v1251_v56  ;;  %v1264_v2 = vmul.f32 1.442695, %v1248_v27 }
 0x400   : > { %v1205_v45 = vpop.xlane.xlu1 %1204  ;;  %v1220_v60 = vpop.xlane.xlu0 %1219 }
 0x401   : > { %5816 = vpow2.f32 %v1270_v19  ;;  %v1249_v10 = vsub.f32 %v6923_v7, %v1205_v45  ;;  %v1254_v33 = vsub.f32 %v6929_v58, %v1220_v60 }
 0x402   : > { %5818 = vpow2.f32 %v1264_v2 }
 0x403   : > { %v1266_v21 = vmul.f32 1.442695, %v1249_v10  ;;  %v1276_v13 = vmul.f32 1.442695, %v1254_v33 }
 0x404   : > { %v1223_v29 = vpop.xlane.xlu1 %1222  ;;  %v1214_v53 = vpop.xlane.xlu0 %1213 }
 0x405   : > { %5820 = vpow2.f32 %v1266_v21  ;;  %v1255_v28 = vsub.f32 %v6937_v51, %v1223_v29  ;;  %v1252_v37 = vsub.f32 %v6931_v3, %v1214_v53 }
 0x406   : > { %5822 = vpow2.f32 %v1276_v13 }
 0x407   : > { %v1278_v40 = vmul.f32 1.442695, %v1255_v28  ;;  %v1272_v57 = vmul.f32 1.442695, %v1252_v37 }
 0x408   : > { %v1217_v30 = vpop.xlane.xlu1 %1216 }
 0x409   : > { %5824 = vpow2.f32 %v1278_v40  ;;  %v1253_v5 = vsub.f32 %v6939_v14, %v1217_v30 }
 0x40a   : > { %v6995_v7 = vpop.eup %5814  ;;  %5826 = vpow2.f32 %v1272_v57 }
 0x40b   : > { %v1274_v58 = vmul.f32 1.442695, %v1253_v5  ;;  %v1302_v54 = vsel %vm1199_vm1, %v6995_v7, 0.0 }
 0x40c   : > { %1303 = vadd.xlane.f32.xlu0 %v1302_v54 }
 0x40d   : > { %5828 = vpow2.f32 %v1274_v58 }
 0x40e   : > { %v6999_v32 = vpop.eup %5816 }
 0x40f   : > { %v7001_v51 = vpop.eup %5818  ;;  %v1305_v3 = vsel %vm1199_vm1, %v6999_v32, 0.0 }
 0x410   : > { %1306 = vadd.xlane.f32.xlu1 %v1305_v3  ;;  %v1296_v14 = vsel %vm1199_vm1, %v7001_v51, 0.0 }
 0x411   : > { %1297 = vadd.xlane.f32.xlu0 %v1296_v14 }
 0x412   : > { %v7007_v16 = vpop.eup %5820 }
 0x413   : > { %v7009_v43 = vpop.eup %5822  ;;  %v1299_v56 = vsel %vm1199_vm1, %v7007_v16, 0.0 }
 0x414   : > { %1300 = vadd.xlane.f32.xlu1 %v1299_v56  ;;  %v1314_v27 = vsel %vm1199_vm1, %v7009_v43, 0.0 }
 0x415   : > { %1315 = vadd.xlane.f32.xlu0 %v1314_v27 }
 0x416   : > { %v7015_v19 = vpop.eup %5824 }
 0x417   : > { %v7017_v2 = vpop.eup %5826  ;;  %v1317_v45 = vsel %vm1199_vm1, %v7015_v19, 0.0 }
 0x418   : > { %1318 = vadd.xlane.f32.xlu1 %v1317_v45  ;;  %v1308_v60 = vsel %vm1199_vm1, %v7017_v2, 0.0  ;;  %v1232_v10 = vpop.xlane.xlu0 %1231 }
 0x419   : > { %1309 = vadd.xlane.f32.xlu0 %v1308_v60  ;;  %v1258_v33 = vsub.f32 %v6947_v12, %v1232_v10 }
 0x41a   : > { %v7024_v21 = vpop.eup %5828 }
 0x41b   : > { %v1284_v13 = vmul.f32 1.442695, %v1258_v33  ;;  %v1311_v29 = vsel %vm1199_vm1, %v7024_v21, 0.0 }
 0x41c   : > { %v1235_v53 = vpop.xlane.xlu1 %1234  ;;  %1312 = vadd.xlane.f32.xlu1 %v1311_v29  ;;  %v1226_v28 = vpop.xlane.xlu0 %1225 }
 0x41d   : > { %5830 = vpow2.f32 %v1284_v13  ;;  %v1259_v37 = vsub.f32 %v6953_v59, %v1235_v53  ;;  %v1256_v40 = vsub.f32 %v6949_v22, %v1226_v28 }
 0x41f   : > { %v1280_v57 = vmul.f32 1.442695, %v1256_v40  ;;  %v1286_v30 = vmul.f32 1.442695, %v1259_v37 }
 0x420   : > { %v1229_v5 = vpop.xlane.xlu1 %1228  ;;  %v1244_v58 = vpop.xlane.xlu0 %1243 }
 0x421   : > { %v1257_v12 = vsub.f32 %v6955_v11, %v1229_v5  ;;  %5832 = vpow2.f32 %v1280_v57  ;;  %v1262_v33 = vsub.f32 %v6961_v46, %v1244_v58 }
 0x422   : > { %5834 = vpow2.f32 %v1286_v30 }
 0x423   : > { %v1282_v54 = vmul.f32 1.442695, %v1257_v12  ;;  %v1292_v29 = vmul.f32 1.442695, %v1262_v33 }
 0x424   : > { %v1238_v3 = vpop.xlane.xlu0 %1237  ;;  %v1545_v56 = vpop.permute.xlu1 %1544 }
 0x425   : > { %5836 = vpow2.f32 %v1282_v54  ;;  %v1260_v53 = vsub.f32 %v6963_v35, %v1238_v3 }
 0x426   : > { %5838 = vpow2.f32 %v1292_v29 }
 0x427   : > { %v1288_v28 = vmul.f32 1.442695, %v1260_v53 }
 0x428   : > { %v1543_v14 = vpop.permute.xlu0 %1542  ;;  %v7063_v35 = vpop.permute.xlu1 %1673 }
 0x429   : > { %5219 = vmatprep.mubr.msk.bf16.mxu0 %vm1004_vm0, %v1543_v14  ;;  %5840 = vpow2.f32 %v1288_v28 }
 0x42a   : > { %v7032_v27 = vpop.eup %5830  ;;  %5220 = vmatmul.mubr.msk.bf16.vlgmr.msra.gmra.mxu0 %vm1004_vm0, %v1545_v56 }
 0x42b   : > { %v1326_v22 = vsel %vm1199_vm1, %v7032_v27, 0.0 }
 0x42c   : > { %1327 = vadd.xlane.f32.xlu1 %v1326_v22  ;;  %v7065_v30 = vpop.permute.xlu1 %1671 }
 0x42e   : > { %v7037_v59 = vpop.eup %5832 }
 0x42f   : > { %1669 = vrot.lane.b32.xlu0 %v6851_v44, %s6306_s26  ;;  %v1320_v11 = vsel %vm1199_vm1, %v7037_v59, 0.0  ;;  %v7043_v45 = vpop.eup %5834 }
 0x430   : > { %1321 = vadd.xlane.f32.xlu1 %v1320_v11  ;;  %v1329_v60 = vsel %vm1199_vm1, %v7043_v45, 0.0 }
 0x432   : > { %v7047_v10 = vpop.eup %5836 }
 0x433   : > { %v1323_v13 = vsel %vm1199_vm1, %v7047_v10, 0.0  ;;  %v7053_v37 = vpop.eup %5838 }
 0x434   : > { %1330 = vadd.xlane.f32.xlu1 %v1329_v60  ;;  %v1338_v40 = vsel %vm1199_vm1, %v7053_v37, 0.0 }
 0x436   : > { %v7059_v46 = vpop.eup %5840 }
 0x437   : > { %v1332_v57 = vsel %vm1199_vm1, %v7059_v46, 0.0 }
 0x438   : > { %1324 = vadd.xlane.f32.xlu1 %v1323_v13 }
 0x449   : > { %1546 = vrot.lane.b32.xlu1 %v6813_v31, %s6306_s26 }
 0x44e   : > { %1339 = vadd.xlane.f32.xlu0 %v1338_v40 }
 0x452   : > { %1333 = vadd.xlane.f32.xlu0 %v1332_v57 }
 0x45d   : > { %v1247_v5 = vpop.xlane.xlu1 %1246 }
 0x45e   : > { %v1263_v58 = vsub.f32 %v6979_v8, %v1247_v5 }
 0x460   : > { %v1294_v12 = vmul.f32 1.442695, %v1263_v58 }
 0x461   : > { %v1241_v54 = vpop.xlane.xlu1 %1240 }
 0x462   : > { %5842 = vpow2.f32 %v1294_v12  ;;  %v1261_v3 = vsub.f32 %v6981_v39, %v1241_v54 }
 0x464   : > { %v1290_v14 = vmul.f32 1.442695, %v1261_v3 }
 0x466   : > { %5844 = vpow2.f32 %v1290_v14 }
 0x46f   : > { %v7069_v56 = vpop.eup %5842 }
 0x470   : > { %v1341_v22 = vsel %vm1199_vm1, %v7069_v56, 0.0 }
 0x471   : > { %1342 = vadd.xlane.f32.xlu0 %v1341_v22 }
 0x473   : > { %v7073_v11 = vpop.eup %5844 }
 0x474   : > { %v1335_v60 = vsel %vm1199_vm1, %v7073_v11, 0.0 }
 0x475   : > { %1336 = vadd.xlane.f32.xlu1 %v1335_v60 }
 0x486   : > { %1667 = vrot.lane.b32.xlu1 %v6875_v62, %s6306_s26 }
 0x487   : > { %1548 = vrot.lane.b32.xlu0 %v6844_v42, %s6306_s26 }
 0x48a   : > { %1657 = vrot.lane.b32.xlu1 %v6891_v23, %s6306_s26 }
 0x48b   : > { %1655 = vrot.lane.b32.xlu0 %v6761_v18, %s6306_s26 }
 0x48e   : > { %1661 = vrot.lane.b32.xlu1 %v6903_v24, %s6306_s26 }
 0x48f   : > { %1659 = vrot.lane.b32.xlu0 %v6893_v47, %s6306_s26 }
 0x495   : > { %v1304_v8 = vpop.xlane.xlu0 %1303 }
 0x499   : > { %v1307_v39 = vpop.xlane.xlu1 %1306 }
 0x49a   : > { %v1298_v33 = vpop.xlane.xlu0 %1297  ;;  %5846 = vrcp.f32 %v1307_v39 }
 0x49b   : > { %5848 = vrcp.f32 %v1298_v33 }
 0x49c   : > { %5850 = vrcp.f32 %v1304_v8 }
 0x49d   : > { %v1301_v13 = vpop.xlane.xlu1 %1300 }
 0x49e   : > { %5852 = vrcp.f32 %v1301_v13  ;;  %v1316_v29 = vpop.xlane.xlu0 %1315 }
 0x4a1   : > { %v1319_v53 = vpop.xlane.xlu1 %1318 }
 0x4a2   : > { %v1310_v28 = vpop.xlane.xlu0 %1309  ;;  %5854 = vrcp.f32 %v1319_v53 }
 0x4a3   : > { %5856 = vrcp.f32 %v1310_v28 }
 0x4a4   : > { %5858 = vrcp.f32 %v1316_v29 }
 0x4a5   : > { %v1313_v40 = vpop.xlane.xlu1 %1312 }
 0x4a6   : > { %5860 = vrcp.f32 %v1313_v40 }
 0x4a7   : > { %v5847_v57 = vpop.eup %5846 }
 0x4a8   : > { %v5849_v5 = vpop.eup %5848  ;;  %v1351_v54 = vmul.f32 %v5847_v57, %v6999_v32 }
 0x4a9   : > { %v5851_v58 = vpop.eup %5850  ;;  %v1345_v3 = vmul.f32 %v5849_v5, %v7001_v51 }
 0x4aa   : > { %v1349_v22 = vmul.f32 %v5851_v58, %v6995_v7 }
 0x4ab   : > { %v5853_v12 = vpop.eup %5852 }
 0x4ac   : > { %v1347_v14 = vmul.f32 %v5853_v12, %v7007_v16  ;;  %v1377_v8 = vpack.c.bf16 %v1351_v54, %v1349_v22 }
 0x4ae   : > { %v1376_v60 = vpack.c.bf16 %v1347_v14, %v1345_v3 }
 0x4af   : > { %v5855_v39 = vpop.eup %5854 }
 0x4b0   : > { %5187 = vmatprep.mubr.msk.bf16.mxu1 %vm1199_vm1, %v1376_v60  ;;  %v5857_v33 = vpop.eup %5856  ;;  %v1359_v32 = vmul.f32 %v5855_v39, %v7015_v19  ;;  %v1697_v39 = vsel %vm1004_vm0, %v7063_v35, 0 }
 0x4b1   : > { %5188 = vmatmul.mubr.msk.bf16.vlgmr.msra.gmra.mxu1 %vm1199_vm1, %v1377_v8  ;;  %v5859_v13 = vpop.eup %5858  ;;  %v1353_v51 = vmul.f32 %v5857_v33, %v7017_v2 }
 0x4b2   : > { %5196 = vmatpush3.bf16.msra.mxu1 %v6869_v50  ;;  %v1357_v53 = vmul.f32 %v5859_v13, %v7009_v43 }
 0x4b3   : > { %v5861_v29 = vpop.eup %5860  ;;  %5197 = vmatprep.subr.bf16.mxu1 %v6757_v9 }
 0x4b4   : > { %v1355_v7 = vmul.f32 %v5861_v29, %v7024_v21  ;;  %v1379_v40 = vpack.c.bf16 %v1359_v32, %v1357_v53 }
 0x4b5   : > { %v1328_v16 = vpop.xlane.xlu1 %1327 }
 0x4b6   : > { %5198 = vmatpush3.bf16.msra.mxu1 %v6757_v9  ;;  %v1378_v28 = vpack.c.bf16 %v1355_v7, %v1353_v51 }
 0x4b7   : > { %5199 = vmatprep.subr.bf16.mxu1 %v6728_v4 }
 0x4b8   : > { %5191 = vmatprep.mubr.msk.bf16.mxu1 %vm1199_vm1, %v1378_v28 }
 0x4b9   : > { %5192 = vmatmul.mubr.msk.bf16.gmra.mxu1 %vm1199_vm1, %v1379_v40  ;;  %v1322_v57 = vpop.xlane.xlu1 %1321 }
 0x4ba   : > { %5200 = vmatpush3.bf16.msra.mxu1 %v6728_v4 }
 0x4bb   : > { %5201 = vmatprep.subr.bf16.mxu1 %v6735_v55 }
 0x4bd   : > { %v1331_v19 = vpop.xlane.xlu1 %1330 }
 0x4be   : > { %5202 = vmatpush3.bf16.msra.mxu1 %v6735_v55  ;;  %5862 = vrcp.f32 %v1331_v19 }
 0x4bf   : > { %5479 = vmatprep.subr.msk.bf16.mxu1 %vm1004_vm0, %v7063_v35  ;;  %5864 = vrcp.f32 %v1322_v57 }
 0x4c0   : > { %5866 = vrcp.f32 %v1328_v16 }
 0x4c1   : > { %v1325_v43 = vpop.xlane.xlu1 %1324 }
 0x4c2   : > { %5868 = vrcp.f32 %v1325_v43 }
 0x4c5   : > { %v1547_v2 = vpop.permute.xlu1 %1546 }
 0x4c6   : > { %5223 = vmatprep.mubr.msk.bf16.mxu0 %vm1004_vm0, %v1547_v2 }
 0x4cb   : > { %v5863_v21 = vpop.eup %5862 }
 0x4cc   : > { %v5865_v5 = vpop.eup %5864  ;;  %v1367_v54 = vmul.f32 %v5863_v21, %v7043_v45  ;;  %v1670_v45 = vpop.permute.xlu0 %1669 }
 0x4cd   : > { %v5867_v58 = vpop.eup %5866  ;;  %v1361_v3 = vmul.f32 %v5865_v5, %v7037_v59  ;;  %v1694_v59 = vsel %vm1004_vm0, %v7065_v30, 0 }
 0x4ce   : > { %v1365_v22 = vmul.f32 %v5867_v58, %v7032_v27  ;;  %v1691_v27 = vsel %vm1004_vm0, %v1670_v45, 0 }
 0x4cf   : > { %v5869_v12 = vpop.eup %5868 }
 0x4d0   : > { %v1363_v14 = vmul.f32 %v5869_v12, %v7047_v10  ;;  %v1381_v8 = vpack.c.bf16 %v1367_v54, %v1365_v22 }
 0x4d2   : > { %v1380_v60 = vpack.c.bf16 %v1363_v14, %v1361_v3 }
 0x4d4   : > { %5203 = vmatprep.mubr.msk.bf16.mxu1 %vm1199_vm1, %v1380_v60 }
 0x4d5   : > { %5204 = vmatmul.mubr.msk.bf16.vlgmr.msra.gmra.mxu1 %vm1199_vm1, %v1381_v8 }
 0x4d6   : > { %5228 = vmatpush3.bf16.xpose.msra.mxu1 %v1697_v39 }
 0x4d7   : > { %5480 = vmatprep.subr.msk.bf16.mxu1 %vm1004_vm0, %v7065_v30  ;;  %v1340_v51 = vpop.xlane.xlu0 %1339 }
 0x4db   : > { %v1334_v40 = vpop.xlane.xlu0 %1333 }
 0x4de   : > { %5230 = vmatpush3.bf16.xpose.msra.mxu1 %v1694_v59 }
 0x4df   : > { %5481 = vmatprep.subr.msk.bf16.mxu1 %vm1004_vm0, %v1670_v45 }
 0x4e6   : > { %5232 = vmatpush3.bf16.xpose.msra.mxu1 %v1691_v27 }
 0x4ea   : > { %v5221_v10 = vpop.f32.mrf.mxu0 }
 0x4eb   : > { %v7127_v35 = vmul.f32 0.17677669, %v5221_v10 }
 0x4ec   : > { %v1620_v33 = vpop.f32.mrf.mxu0 }
 0x4ed   : > { %v7125_v13 = vmul.f32 0.17677669, %v1620_v33  ;;  %v1786_v53 = vsel %vm1199_vm1, %v7127_v35, -inf }
 0x4ee   : > { %v5222_v29 = vpop.f32.mrf.mxu0 }
 0x4ef   : > { %v1780_v32 = vsel %vm1199_vm1, %v7125_v13, -inf  ;;  %v7133_v16 = vmul.f32 0.17677669, %v5222_v29 }
 0x4f0   : > { %1781 = vmax.xlane.f32.xlu0 %v1780_v32  ;;  %v1623_v30 = vpop.f32.mrf.mxu0 }
 0x4f1   : > { %v7131_v7 = vmul.f32 0.17677669, %v1623_v30  ;;  %v1789_v57 = vsel %vm1199_vm1, %v7133_v16, -inf }
 0x4f3   : > { %v1783_v28 = vsel %vm1199_vm1, %v7131_v7, -inf }
 0x4f4   : > { %1787 = vmax.xlane.f32.xlu0 %v1786_v53  ;;  %1784 = vmax.xlane.f32.xlu1 %v1783_v28 }
 0x4f8   : > { %1790 = vmax.xlane.f32.xlu0 %v1789_v57 }
 0x4fa   : > { %v1343_v19 = vpop.xlane.xlu0 %1342 }
 0x4fb   : > { %5870 = vrcp.f32 %v1343_v19 }
 0x4fc   : > { %5872 = vrcp.f32 %v1334_v40 }
 0x4fd   : > { %5874 = vrcp.f32 %v1340_v51 }
 0x4fe   : > { %v1337_v43 = vpop.xlane.xlu1 %1336  ;;  %v1549_v2 = vpop.permute.xlu0 %1548 }
 0x4ff   : > { %5876 = vrcp.f32 %v1337_v43  ;;  %5224 = vmatmul.mubr.msk.bf16.gmra.mxu0 %vm1004_vm0, %v1549_v2 }
 0x502   : > { %v1668_v21 = vpop.permute.xlu1 %1667  ;;  %v1656_v45 = vpop.permute.xlu0 %1655 }
 0x503   : > { %5482 = vmatprep.subr.msk.bf16.mxu1 %vm1004_vm0, %v1668_v21  ;;  %v1688_v5 = vsel %vm1004_vm0, %v1668_v21, 0 }
 0x504   : > { %5234 = vmatpush3.bf16.xpose.msra.mxu1 %v1688_v5 }
 0x506   : > { %v1658_v27 = vpop.permute.xlu1 %1657  ;;  %v1660_v10 = vpop.permute.xlu0 %1659 }
 0x508   : > { %v5871_v58 = vpop.eup %5870 }
 0x509   : > { %v5873_v12 = vpop.eup %5872  ;;  %v1375_v14 = vmul.f32 %v5871_v58, %v7069_v56 }
 0x50a   : > { %v5875_v54 = vpop.eup %5874  ;;  %v1369_v22 = vmul.f32 %v5873_v12, %v7059_v46  ;;  %v1662_v46 = vpop.permute.xlu1 %1661 }
 0x50b   : > { %v1373_v8 = vmul.f32 %v5875_v54, %v7053_v37 }
 0x50c   : > { %v5877_v3 = vpop.eup %5876 }
 0x50d   : > { %v1371_v60 = vmul.f32 %v5877_v3, %v7073_v11  ;;  %v1383_v59 = vpack.c.bf16 %v1375_v14, %v1373_v8 }
 0x50f   : > { %v1382_v39 = vpack.c.bf16 %v1371_v60, %v1369_v22 }
 0x511   : > { %5207 = vmatprep.mubr.msk.bf16.mxu1 %vm1199_vm1, %v1382_v39 }
 0x512   : > { %5208 = vmatmul.mubr.msk.bf16.gmra.mxu1 %vm1199_vm1, %v1383_v59 }
 0x513   : > { %5235 = vmatprep.mubr.msk.bf16.mxu1 %vm1004_vm0, %v1656_v45 }
 0x51a   : > { %5236 = vmatmul.mubr.msk.bf16.vlgmr.msra.gmra.mxu1 %vm1004_vm0, %v1658_v27 }
 0x51b   : > { %5239 = vmatprep.mubr.msk.bf16.mxu1 %vm1004_vm0, %v1660_v10 }
 0x522   : > { %5240 = vmatmul.mubr.msk.bf16.gmra.mxu1 %vm1004_vm0, %v1662_v46 }
 0x579   : > { %v1782_v19 = vpop.xlane.xlu0 %1781 }
 0x57a   : > { %v1828_v21 = vsub.f32 %v7125_v13, %v1782_v19 }
 0x57c   : > { %v1844_v58 = vmul.f32 1.442695, %v1828_v21 }
 0x57d   : > { %v1788_v43 = vpop.xlane.xlu0 %1787 }
 0x57e   : > { %v1830_v2 = vsub.f32 %v7127_v35, %v1788_v43  ;;  %v1785_v35 = vpop.xlane.xlu1 %1784 }
 0x57f   : > { %v1829_v14 = vsub.f32 %v7131_v7, %v1785_v35 }
 0x580   : > { %v1848_v5 = vmul.f32 1.442695, %v1830_v2 }
 0x581   : > { %v1791_v12 = vpop.xlane.xlu0 %1790  ;;  %v1846_v8 = vmul.f32 1.442695, %v1829_v14 }
 0x582   : > { %5878 = vpow2.f32 %v1848_v5  ;;  %v1831_v54 = vsub.f32 %v7133_v16, %v1791_v12  ;;  %v7206_v16 = vpop.f32.mrf.mxu1 }
 0x583   : > { %5880 = vpow2.f32 %v1844_v58  ;;  %8471 = vst [vmem:[#allocation14_spill] sm:$0xff] %v7206_v16 }
 0x584   : > { %v1850_v22 = vmul.f32 1.442695, %v1831_v54  ;;  %v7210_v45 = vpop.f32.mrf.mxu1 }
 0x586   : > { %5882 = vpow2.f32 %v1850_v22  ;;  %v7216_v10 = vpop.f32.mrf.mxu1 }
 0x587   : > { %5884 = vpow2.f32 %v1846_v8  ;;  %8472 = vst [vmem:[#allocation15_spill] sm:$0xff] %v7216_v10 }
 0x58f   : > { %v7197_v3 = vpop.eup %5878 }
 0x590   : > { %v1882_v13 = vsel %vm1199_vm1, %v7197_v3, 0.0  ;;  %v7202_v60 = vpop.eup %5880 }
 0x591   : > { %v1876_v39 = vsel %vm1199_vm1, %v7202_v60, 0.0 }
 0x593   : > { %v7208_v59 = vpop.eup %5882 }
 0x594   : > { %v1885_v7 = vsel %vm1199_vm1, %v7208_v59, 0.0  ;;  %v7214_v27 = vpop.eup %5884 }
 0x595   : > { %v1879_v46 = vsel %vm1199_vm1, %v7214_v27, 0.0 }
 0x5bf   : > { %v5225_v56 = vpop.f32.mrf.mxu0 }
 0x5c0   : > { %v7156_v29 = vmul.f32 0.17677669, %v5225_v56  ;;  %v7220_v56 = vpop.f32.mrf.mxu1 }
 0x5c1   : > { %v1636_v37 = vpop.f32.mrf.mxu0 }
 0x5c2   : > { %v7154_v11 = vmul.f32 0.17677669, %v1636_v37  ;;  %v1798_v28 = vsel %vm1199_vm1, %v7156_v29, -inf  ;;  %v7222_v37 = vpop.f32.mrf.mxu1 }
 0x5c3   : > { %v5226_v33 = vpop.f32.mrf.mxu0  ;;  %8473 = vst [vmem:[#allocation16_spill] sm:$0xff] %v7222_v37 }
 0x5c4   : > { %v1792_v32 = vsel %vm1199_vm1, %v7154_v11, -inf  ;;  %v7162_v53 = vmul.f32 0.17677669, %v5226_v33  ;;  %v7224_v33 = vpop.f32.mrf.mxu1 }
 0x5c5   : > { %1793 = vmax.xlane.f32.xlu0 %v1792_v32  ;;  %v1639_v51 = vpop.f32.mrf.mxu0  ;;  %8474 = vst [vmem:[#allocation17_spill] sm:$0xff] %v7224_v33 }
 0x5c6   : > { %v7160_v30 = vmul.f32 0.17677669, %v1639_v51  ;;  %v1801_v57 = vsel %vm1199_vm1, %v7162_v53, -inf  ;;  %v7226_v32 = vpop.f32.mrf.mxu1 }
 0x5c7   : > { %8475 = vst [vmem:[#allocation18_spill] sm:$0xff] %v7226_v32 }
 0x5c8   : > { %v1795_v40 = vsel %vm1199_vm1, %v7160_v30, -inf  ;;  %v7228_v51 = vpop.f32.mrf.mxu1 }
 0x5c9   : > { %1799 = vmax.xlane.f32.xlu0 %v1798_v28  ;;  %1796 = vmax.xlane.f32.xlu1 %v1795_v40  ;;  %8476 = vst [vmem:[#allocation19_spill] sm:$0xff] %v7228_v51 }
 0x5ca   : > { %v7230_v28 = vpop.f32.mrf.mxu1 }
 0x5cb   : > { %8477 = vst [vmem:[#allocation20_spill] sm:$0xff] %v7230_v28 }
 0x5cc   : > { %v7232_v40 = vpop.f32.mrf.mxu1 }
 0x5cd   : > { %1802 = vmax.xlane.f32.xlu1 %v1801_v57  ;;  %8478 = vst [vmem:[#allocation21_spill] sm:$0xff] %v7232_v40 }
 0x5ce   : > { %v7234_v57 = vpop.f32.mrf.mxu1 }
 0x5cf   : > { %8479 = vst [vmem:[#allocation22_spill] sm:$0xff] %v7234_v57 }
 0x5d0   : > { %v7236_v19 = vpop.f32.mrf.mxu1 }
 0x5d1   : > { %8480 = vst [vmem:[#allocation23_spill] sm:$0xff] %v7236_v19 }
 0x5d2   : > { %v7238_v43 = vpop.f32.mrf.mxu1 }
 0x5d3   : > { %8481 = vst [vmem:[#allocation24_spill] sm:$0xff] %v7238_v43 }
 0x5d4   : > { %v7240_v2 = vpop.f32.mrf.mxu1 }
 0x5d5   : > { %8482 = vst [vmem:[#allocation25_spill] sm:$0xff] %v7240_v2 }
 0x5d6   : > { %v7242_v21 = vpop.f32.mrf.mxu1 }
 0x5d7   : > { %8483 = vst [vmem:[#allocation26_spill] sm:$0xff] %v7242_v21 }
 0x5d8   : > { %v7245_v12 = vpop.f32.mrf.mxu1 }
 0x5d9   : > { %8484 = vst [vmem:[#allocation27_spill] sm:$0xff] %v7245_v12 }
 0x5de   : > { %1972 = vrot.lane.b32.xlu1 %v6825_v38, %s6306_s26 }
 0x5df   : > { %1974 = vrot.lane.b32.xlu0 %v6786_v52, %s6306_s26 }
 0x5e2   : > { %1970 = vrot.lane.b32.xlu1 %v6840_v41, %s6306_s26 }
 0x5e3   : > { %2164 = vrot.lane.b32.xlu0 %v6740_v61, %s6307_s27 }
 0x5e6   : > { %1968 = vrot.lane.b32.xlu1 %v6857_v25, %s6306_s26 }
 0x5e7   : > { %2067 = vrot.lane.b32.xlu0 %v6869_v50, %s6306_s26 }
 0x5ea   : > { %2162 = vrot.lane.b32.xlu1 %v6723_v49, %s6307_s27 }
 0x5eb   : > { %2158 = vrot.lane.b32.xlu0 %v6684_v20, %s6307_s27 }
 0x5ee   : > { %2160 = vrot.lane.b32.xlu1 %v6705_v36, %s6307_s27 }
 0x5f2   : > { %2065 = vrot.lane.b32.xlu1 %v6757_v9, %s6306_s26 }
 0x5f6   : > { %2063 = vrot.lane.b32.xlu1 %v6728_v4, %s6306_s26 }
 0x5fa   : > { %2061 = vrot.lane.b32.xlu1 %v6735_v55, %s6306_s26 }
 0x60a   : > { %1883 = vadd.xlane.f32.xlu0 %v1882_v13  ;;  %v5237_v13 = vpop.f32.mrf.mxu1 }
 0x60e   : > { %1877 = vadd.xlane.f32.xlu0 %v1876_v39 }
 0x61e   : > { %1886 = vadd.xlane.f32.xlu1 %v1885_v7 }
 0x622   : > { %1880 = vadd.xlane.f32.xlu1 %v1879_v46 }
 0x64e   : > { %v1794_v5 = vpop.xlane.xlu0 %1793 }
 0x64f   : > { %v1832_v58 = vsub.f32 %v7154_v11, %v1794_v5  ;;  %v1733_v11 = vpop.f32.mrf.mxu1 }
 0x651   : > { %v1852_v54 = vmul.f32 1.442695, %v1832_v58 }
 0x652   : > { %v1797_v35 = vpop.xlane.xlu1 %1796  ;;  %v1800_v14 = vpop.xlane.xlu0 %1799 }
 0x653   : > { %5886 = vpow2.f32 %v1852_v54  ;;  %v1834_v22 = vsub.f32 %v7156_v29, %v1800_v14  ;;  %v1833_v39 = vsub.f32 %v7160_v30, %v1797_v35  ;;  %v5238_v29 = vpop.f32.mrf.mxu1 }
 0x655   : > { %v1856_v8 = vmul.f32 1.442695, %v1834_v22  ;;  %v1854_v0 = vmul.f32 1.442695, %v1833_v39  ;;  %v1736_v14 = vpop.f32.mrf.mxu1 }
 0x656   : > { %v1803_v7 = vpop.xlane.xlu1 %1802  ;;  %v1975_v46 = vpop.permute.xlu0 %1974 }
 0x657   : > { %v1835_v34 = vsub.f32 %v7162_v53, %v1803_v7  ;;  %5243 = vmatprep.subr.bf16.mxu0 %v1975_v46  ;;  %5888 = vpow2.f32 %v1856_v8  ;;  %v7254_v53 = vmul.f32 0.17677669, %v5238_v29  ;;  %v5241_v26 = vpop.f32.mrf.mxu1 }
 0x658   : > { %5244 = vmatpush3.bf16.msra.mxu0 %v1975_v46 }
 0x659   : > { %v1858_v5 = vmul.f32 1.442695, %v1835_v34  ;;  %v1813_v39 = vsel %vm1199_vm1, %v7254_v53, -inf  ;;  %v1749_v2 = vpop.f32.mrf.mxu1 }
 0x65a   : > { %v1973_v58 = vpop.permute.xlu1 %1972  ;;  %v7250_v63 = vpop.permute.xlu0 %2164 }
 0x65b   : > { %5890 = vpow2.f32 %v1858_v5  ;;  %5245 = vmatprep.subr.bf16.mxu0 %v1973_v58 }
 0x65c   : > { %5246 = vmatpush3.bf16.msra.mxu0 %v1973_v58  ;;  %5892 = vpow2.f32 %v1854_v0  ;;  %v7260_v0 = vmul.f32 0.17677669, %v1736_v14 }
 0x65e   : > { %v1971_v54 = vpop.permute.xlu1 %1970  ;;  %v2068_v30 = vpop.permute.xlu0 %2067  ;;  %v1807_v58 = vsel %vm1199_vm1, %v7260_v0, -inf }
 0x65f   : > { %5247 = vmatprep.subr.bf16.mxu0 %v1971_v54  ;;  %5259 = vmatprep.subr.bf16.mxu1 %v2068_v30 }
 0x660   : > { %v7252_v35 = vpop.eup %5886  ;;  %5248 = vmatpush3.bf16.msra.mxu0 %v1971_v54  ;;  %5260 = vmatpush3.bf16.msra.mxu1 %v2068_v30 }
 0x661   : > { %v1888_v34 = vsel %vm1199_vm1, %v7252_v35, 0.0 }
 0x662   : > { %v1969_v22 = vpop.permute.xlu1 %1968  ;;  %1889 = vadd.xlane.f32.xlu1 %v1888_v34  ;;  %v7280_v34 = vmul.f32 0.17677669, %v5237_v13 }
 0x663   : > { %5249 = vmatprep.subr.bf16.mxu0 %v1969_v22 }
 0x664   : > { %5250 = vmatpush3.bf16.msra.mxu0 %v1969_v22  ;;  %v7258_v8 = vpop.eup %5888  ;;  %v1810_v48 = vsel %vm1199_vm1, %v7280_v34, -inf }
 0x665   : > { %5483 = vmatprep.subr.msk.bf16.mxu0 %vm1004_vm0, %v7250_v63  ;;  %v1894_v46 = vsel %vm1199_vm1, %v7258_v8, 0.0 }
 0x666   : > { %v7266_v7 = vpop.permute.xlu1 %2162  ;;  %1814 = vmax.xlane.f32.xlu1 %v1813_v39  ;;  %1895 = vadd.xlane.f32.xlu0 %v1894_v46  ;;  %v7284_v39 = vmul.f32 0.17677669, %v1733_v11  ;;  %v7292_v11 = vmul.f32 0.17677669, %v1749_v2  ;;  %v2159_v2 = vpop.permute.xlu0 %2158 }
 0x668   : > { %v7270_v5 = vpop.eup %5890 }
 0x669   : > { %v1897_v29 = vsel %vm1199_vm1, %v7270_v5, 0.0  ;;  %v7278_v30 = vpop.eup %5892 }
 0x66a   : > { %v7276_v54 = vpop.permute.xlu1 %2160  ;;  %1808 = vmax.xlane.f32.xlu1 %v1807_v58  ;;  %1898 = vadd.xlane.f32.xlu0 %v1897_v29  ;;  %v1891_v22 = vsel %vm1199_vm1, %v7278_v30, 0.0  ;;  %v7288_v58 = vmul.f32 0.17677669, %v5241_v26  ;;  %v1804_v29 = vsel %vm1199_vm1, %v7284_v39, -inf  ;;  %v5242_v26 = vpop.f32.mrf.mxu1 }
 0x66e   : > { %v2066_v14 = vpop.permute.xlu1 %2065  ;;  %1892 = vadd.xlane.f32.xlu0 %v1891_v22  ;;  %v7304_v22 = vmul.f32 0.17677669, %v5242_v26 }
 0x66f   : > { %5261 = vmatprep.subr.bf16.mxu1 %v2066_v14 }
 0x670   : > { %5262 = vmatpush3.bf16.msra.mxu1 %v2066_v14  ;;  %v1822_v14 = vsel %vm1199_vm1, %v7288_v58, -inf }
 0x672   : > { %v2064_v46 = vpop.permute.xlu1 %2063  ;;  %1811 = vmax.xlane.f32.xlu0 %v1810_v48  ;;  %v1816_v48 = vsel %vm1199_vm1, %v7292_v11, -inf }
 0x673   : > { %5263 = vmatprep.subr.bf16.mxu1 %v2064_v46 }
 0x674   : > { %5264 = vmatpush3.bf16.msra.mxu1 %v2064_v46  ;;  %v1752_v46 = vpop.f32.mrf.mxu1 }
 0x676   : > { %v2062_v13 = vpop.permute.xlu1 %2061  ;;  %1805 = vmax.xlane.f32.xlu0 %v1804_v29  ;;  %v7306_v29 = vmul.f32 0.17677669, %v1752_v46 }
 0x677   : > { %5265 = vmatprep.subr.bf16.mxu1 %v2062_v13 }
 0x678   : > { %5266 = vmatpush3.bf16.msra.mxu1 %v2062_v13 }
 0x67a   : > { %1823 = vmax.xlane.f32.xlu0 %v1822_v14  ;;  %v1825_v14 = vsel %vm1199_vm1, %v7304_v22, -inf }
 0x67b   : > { %2152 = vrot.lane.b32.xlu1 %v6806_v15, %s6307_s27 }
 0x67e   : > { %1817 = vmax.xlane.f32.xlu0 %v1816_v48  ;;  %v1819_v48 = vsel %vm1199_vm1, %v7306_v29, -inf }
 0x67f   : > { %2269 = vrot.lane.b32.xlu1 %v6809_v1, %s6307_s27 }
 0x693   : > { %v1884_v13 = vpop.xlane.xlu0 %1883 }
 0x694   : > { %2150 = vrot.lane.b32.xlu0 %v6677_v17, %s6307_s27 }
 0x697   : > { %v1878_v12 = vpop.xlane.xlu0 %1877 }
 0x6a3   : > { %1826 = vmax.xlane.f32.xlu1 %v1825_v14 }
 0x6a7   : > { %v1887_v43 = vpop.xlane.xlu1 %1886  ;;  %1820 = vmax.xlane.f32.xlu1 %v1819_v48 }
 0x6a8   : > { %5894 = vrcp.f32 %v1887_v43 }
 0x6a9   : > { %5896 = vrcp.f32 %v1878_v12 }
 0x6aa   : > { %5898 = vrcp.f32 %v1884_v13 }
 0x6ab   : > { %v1881_v21 = vpop.xlane.xlu1 %1880 }
 0x6ac   : > { %5900 = vrcp.f32 %v1881_v21  ;;  %v2188_v21 = vsel %vm1004_vm0, %v7250_v63, 0 }
 0x6b5   : > { %v5895_v26 = vpop.eup %5894 }
 0x6b6   : > { %v5897_v40 = vpop.eup %5896  ;;  %v1931_v14 = vmul.f32 %v5895_v26, %v7208_v59  ;;  %v2179_v59 = vsel %vm1004_vm0, %v2159_v2, 0 }
 0x6b7   : > { %v5899_v19 = vpop.eup %5898  ;;  %v1925_v28 = vmul.f32 %v5897_v40, %v7202_v60  ;;  %v2185_v60 = vsel %vm1004_vm0, %v7266_v7, 0 }
 0x6b8   : > { %2267 = vrot.lane.b32.xlu1 %v6815_v6, %s6307_s27  ;;  %v1929_v48 = vmul.f32 %v5899_v19, %v7197_v3  ;;  %v2182_v3 = vsel %vm1004_vm0, %v7276_v54, 0 }
 0x6b9   : > { %v5901_v46 = vpop.eup %5900 }
 0x6ba   : > { %v1927_v57 = vmul.f32 %v5901_v46, %v7214_v27  ;;  %v1957_v12 = vpack.c.bf16 %v1931_v14, %v1929_v48 }
 0x6bc   : > { %v1956_v43 = vpack.c.bf16 %v1927_v57, %v1925_v28 }
 0x6be   : > { %5251 = vmatprep.mubr.msk.bf16.mxu0 %vm1199_vm1, %v1956_v43 }
 0x6bf   : > { %5252 = vmatmul.mubr.msk.bf16.vlgmr.msra.gmra.mxu0 %vm1199_vm1, %v1957_v12 }
 0x6c0   : > { %5276 = vmatpush3.bf16.xpose.msra.mxu0 %v2188_v21 }
 0x6c1   : > { %5484 = vmatprep.subr.msk.bf16.mxu0 %vm1004_vm0, %v7266_v7 }
 0x6c8   : > { %5278 = vmatpush3.bf16.xpose.msra.mxu0 %v2185_v60 }
 0x6c9   : > { %5485 = vmatprep.subr.msk.bf16.mxu0 %vm1004_vm0, %v7276_v54 }
 0x6d0   : > { %5280 = vmatpush3.bf16.xpose.msra.mxu0 %v2182_v3 }
 0x6d1   : > { %5486 = vmatprep.subr.msk.bf16.mxu0 %vm1004_vm0, %v2159_v2 }
 0x6d8   : > { %5282 = vmatpush3.bf16.xpose.msra.mxu0 %v2179_v59 }
 0x6eb   : > { %v1890_v63 = vpop.xlane.xlu1 %1889 }
 0x6ef   : > { %v1815_v27 = vpop.xlane.xlu1 %1814  ;;  %v1896_v40 = vpop.xlane.xlu0 %1895 }
 0x6f0   : > { %v1839_v28 = vsub.f32 %v7254_v53, %v1815_v27 }
 0x6f2   : > { %v1866_v57 = vmul.f32 1.442695, %v1839_v28 }
 0x6f3   : > { %v1809_v19 = vpop.xlane.xlu1 %1808  ;;  %v1899_v13 = vpop.xlane.xlu0 %1898 }
 0x6f4   : > { %5902 = vpow2.f32 %v1866_v57  ;;  %v1837_v7 = vsub.f32 %v7260_v0, %v1809_v19 }
 0x6f5   : > { %5904 = vrcp.f32 %v1890_v63 }
 0x6f6   : > { %v1862_v26 = vmul.f32 1.442695, %v1837_v7  ;;  %5906 = vrcp.f32 %v1899_v13 }
 0x6f7   : > { %5908 = vrcp.f32 %v1896_v40  ;;  %v2153_v54 = vpop.permute.xlu1 %2152  ;;  %v1893_v46 = vpop.xlane.xlu0 %1892 }
 0x6f8   : > { %5910 = vpow2.f32 %v1862_v26 }
 0x6f9   : > { %5912 = vrcp.f32 %v1893_v46 }
 0x6fb   : > { %v7334_v2 = vpop.permute.xlu1 %2269  ;;  %v1812_v14 = vpop.xlane.xlu0 %1811 }
 0x6fc   : > { %5487 = vmatprep.subr.msk.bf16.mxu1 %vm1004_vm0, %v7334_v2  ;;  %v1838_v53 = vsub.f32 %v7280_v34, %v1812_v14 }
 0x6fe   : > { %v1864_v48 = vmul.f32 1.442695, %v1838_v53 }
 0x6ff   : > { %v1806_v43 = vpop.xlane.xlu0 %1805 }
 0x700   : > { %5914 = vpow2.f32 %v1864_v48  ;;  %v1836_v12 = vsub.f32 %v7284_v39, %v1806_v43 }
 0x701   : > { %v7339_v0 = vpop.eup %5902 }
 0x702   : > { %v5905_v21 = vpop.eup %5904  ;;  %v1909_v60 = vsel %vm1199_vm1, %v7339_v0, 0.0  ;;  %v1860_v59 = vmul.f32 1.442695, %v1836_v12 }
 0x703   : > { %v5907_v3 = vpop.eup %5906  ;;  %1910 = vadd.xlane.f32.xlu0 %v1909_v60  ;;  %v1824_v27 = vpop.xlane.xlu0 %1823  ;;  %v1933_v39 = vmul.f32 %v5905_v21, %v7252_v35 }
 0x704   : > { %v5909_v63 = vpop.eup %5908  ;;  %5916 = vpow2.f32 %v1860_v59  ;;  %v1939_v57 = vmul.f32 %v5907_v3, %v7270_v5 }
 0x705   : > { %v7344_v28 = vpop.eup %5910  ;;  %v1937_v13 = vmul.f32 %v5909_v63, %v7258_v8  ;;  %v1842_v8 = vsub.f32 %v7288_v58, %v1824_v27 }
 0x706   : > { %v5913_v34 = vpop.eup %5912  ;;  %v1903_v40 = vsel %vm1199_vm1, %v7344_v28, 0.0 }
 0x707   : > { %1904 = vadd.xlane.f32.xlu0 %v1903_v40  ;;  %v1935_v19 = vmul.f32 %v5913_v34, %v7278_v30  ;;  %v1818_v7 = vpop.xlane.xlu0 %1817  ;;  %v1959_v46 = vpack.c.bf16 %v1939_v57, %v1937_v13  ;;  %v1872_v30 = vmul.f32 1.442695, %v1842_v8 }
 0x708   : > { %v1840_v60 = vsub.f32 %v7292_v11, %v1818_v7 }
 0x709   : > { %v1958_v26 = vpack.c.bf16 %v1935_v19, %v1933_v39  ;;  %5918 = vpow2.f32 %v1872_v30 }
 0x70a   : > { %v1868_v63 = vmul.f32 1.442695, %v1840_v60 }
 0x70b   : > { %5255 = vmatprep.mubr.msk.bf16.mxu0 %vm1199_vm1, %v1958_v26  ;;  %v2151_v14 = vpop.permute.xlu0 %2150 }
 0x70c   : > { %5256 = vmatmul.mubr.msk.bf16.gmra.mxu0 %vm1199_vm1, %v1959_v46 }
 0x70d   : > { %5283 = vmatprep.mubr.msk.bf16.mxu0 %vm1004_vm0, %v2151_v14  ;;  %v5915_v53 = vpop.eup %5914 }
 0x70e   : > { %v1906_v5 = vsel %vm1199_vm1, %v5915_v53, 0.0 }
 0x70f   : > { %1907 = vadd.xlane.f32.xlu1 %v1906_v5 }
 0x711   : > { %v5917_v48 = vpop.eup %5916 }
 0x712   : > { %v1900_v35 = vsel %vm1199_vm1, %v5917_v48, 0.0 }
 0x713   : > { %1901 = vadd.xlane.f32.xlu1 %v1900_v35 }
 0x714   : > { %5284 = vmatmul.mubr.msk.bf16.vlgmr.msra.gmra.mxu0 %vm1004_vm0, %v2153_v54 }
 0x716   : > { %v7366_v34 = vpop.eup %5918 }
 0x717   : > { %v1918_v58 = vsel %vm1199_vm1, %v7366_v34, 0.0 }
 0x71d   : > { %2265 = vrot.lane.b32.xlu0 %v6851_v44, %s6307_s27 }
 0x724   : > { %2154 = vrot.lane.b32.xlu1 %v6813_v31, %s6307_s27 }
 0x72c   : > { %v1827_v43 = vpop.xlane.xlu1 %1826 }
 0x72d   : > { %v1843_v12 = vsub.f32 %v7304_v22, %v1827_v43 }
 0x72f   : > { %v1874_v21 = vmul.f32 1.442695, %v1843_v12 }
 0x730   : > { %v1821_v3 = vpop.xlane.xlu1 %1820 }
 0x731   : > { %5920 = vpow2.f32 %v1874_v21  ;;  %v1841_v54 = vsub.f32 %v7306_v29, %v1821_v3 }
 0x733   : > { %v1870_v59 = vmul.f32 1.442695, %v1841_v54 }
 0x734   : > { %v2268_v46 = vpop.permute.xlu1 %2267 }
 0x735   : > { %5922 = vpow2.f32 %v1870_v59 }
 0x736   : > { %5924 = vpow2.f32 %v1868_v63 }
 0x73c   : > { %1919 = vadd.xlane.f32.xlu0 %v1918_v58 }
 0x73e   : > { %v7370_v27 = vpop.eup %5920 }
 0x73f   : > { %v1921_v22 = vsel %vm1199_vm1, %v7370_v27, 0.0 }
 0x740   : > { %1922 = vadd.xlane.f32.xlu0 %v1921_v22  ;;  %v2293_v22 = vsel %vm1004_vm0, %v7334_v2, 0 }
 0x742   : > { %v7374_v11 = vpop.eup %5922 }
 0x743   : > { %v1915_v29 = vsel %vm1199_vm1, %v7374_v11, 0.0  ;;  %v7378_v40 = vpop.eup %5924 }
 0x744   : > { %1916 = vadd.xlane.f32.xlu0 %v1915_v29  ;;  %v1912_v57 = vsel %vm1199_vm1, %v7378_v40, 0.0  ;;  %v2290_v29 = vsel %vm1004_vm0, %v2268_v46, 0 }
 0x748   : > { %1913 = vadd.xlane.f32.xlu1 %v1912_v57 }
 0x759   : > { %2263 = vrot.lane.b32.xlu1 %v6875_v62, %s6307_s27 }
 0x75a   : > { %2156 = vrot.lane.b32.xlu0 %v6844_v42, %s6307_s27 }
 0x75d   : > { %2257 = vrot.lane.b32.xlu1 %v6891_v23, %s6307_s27 }
 0x75e   : > { %2255 = vrot.lane.b32.xlu0 %v6761_v18, %s6307_s27 }
 0x761   : > { %2261 = vrot.lane.b32.xlu1 %v6903_v24, %s6307_s27 }
 0x762   : > { %2259 = vrot.lane.b32.xlu0 %v6893_v47, %s6307_s27 }
 0x77f   : > { %v7394_v39 = vpop.f32.mrf.mxu0 }
 0x781   : > { %v7396_v19 = vpop.f32.mrf.mxu0 }
 0x783   : > { %v7398_v7 = vpop.f32.mrf.mxu0 }
 0x785   : > { %v7413_v57 = vpop.f32.mrf.mxu0 }
 0x78c   : > { %v1911_v26 = vpop.xlane.xlu0 %1910 }
 0x790   : > { %v1905_v14 = vpop.xlane.xlu0 %1904 }
 0x798   : > { %v1908_v5 = vpop.xlane.xlu1 %1907 }
 0x799   : > { %5926 = vrcp.f32 %v1908_v5 }
 0x79a   : > { %5928 = vrcp.f32 %v1905_v14 }
 0x79b   : > { %5930 = vrcp.f32 %v1911_v26 }
 0x79c   : > { %v1902_v35 = vpop.xlane.xlu1 %1901 }
 0x79d   : > { %5932 = vrcp.f32 %v1902_v35 }
 0x7a0   : > { %v2155_v8 = vpop.permute.xlu1 %2154 }
 0x7a1   : > { %5287 = vmatprep.mubr.msk.bf16.mxu0 %vm1004_vm0, %v2155_v8 }
 0x7a6   : > { %v5927_v30 = vpop.eup %5926 }
 0x7a7   : > { %v5929_v43 = vpop.eup %5928  ;;  %v1945_v60 = vmul.f32 %v5927_v30, %v5915_v53  ;;  %v2266_v53 = vpop.permute.xlu0 %2265 }
 0x7a8   : > { %v5931_v12 = vpop.eup %5930  ;;  %v1943_v54 = vmul.f32 %v5929_v43, %v7344_v28 }
 0x7a9   : > { %v1947_v59 = vmul.f32 %v5931_v12, %v7339_v0  ;;  %v2287_v0 = vsel %vm1004_vm0, %v2266_v53, 0 }
 0x7aa   : > { %v5933_v21 = vpop.eup %5932 }
 0x7ab   : > { %v1941_v3 = vmul.f32 %v5933_v21, %v5917_v48  ;;  %v1961_v58 = vpack.c.bf16 %v1947_v59, %v1945_v60 }
 0x7ad   : > { %v1960_v63 = vpack.c.bf16 %v1943_v54, %v1941_v3 }
 0x7af   : > { %5267 = vmatprep.mubr.msk.bf16.mxu1 %vm1199_vm1, %v1960_v63 }
 0x7b0   : > { %5268 = vmatmul.mubr.msk.bf16.vlgmr.msra.gmra.mxu1 %vm1199_vm1, %v1961_v58 }
 0x7b1   : > { %5292 = vmatpush3.bf16.xpose.msra.mxu1 %v2293_v22 }
 0x7b2   : > { %5488 = vmatprep.subr.msk.bf16.mxu1 %vm1004_vm0, %v2268_v46 }
 0x7b9   : > { %5294 = vmatpush3.bf16.xpose.msra.mxu1 %v2290_v29 }
 0x7ba   : > { %5489 = vmatprep.subr.msk.bf16.mxu1 %vm1004_vm0, %v2266_v53 }
 0x7c1   : > { %5296 = vmatpush3.bf16.xpose.msra.mxu1 %v2287_v0 }
 0x7c5   : > { %v1920_v28 = vpop.xlane.xlu0 %1919 }
 0x7c9   : > { %v1923_v48 = vpop.xlane.xlu0 %1922 }
 0x7ca   : > { %5934 = vrcp.f32 %v1923_v48 }
 0x7cc   : > { %v7415_v26 = vpop.f32.mrf.mxu0 }
 0x7cd   : > { %v1917_v14 = vpop.xlane.xlu0 %1916 }
 0x7ce   : > { %v7417_v2 = vpop.f32.mrf.mxu0  ;;  %5936 = vrcp.f32 %v1917_v14 }
 0x7cf   : > { %5938 = vrcp.f32 %v1920_v28 }
 0x7d0   : > { %v7419_v5 = vpop.f32.mrf.mxu0 }
 0x7d1   : > { %v2157_v35 = vpop.permute.xlu0 %2156  ;;  %v1914_v30 = vpop.xlane.xlu1 %1913 }
 0x7d2   : > { %v7423_v8 = vpop.f32.mrf.mxu0  ;;  %5288 = vmatmul.mubr.msk.bf16.gmra.mxu0 %vm1004_vm0, %v2157_v35  ;;  %5940 = vrcp.f32 %v1914_v30 }
 0x7d4   : > { %v5285_v12 = vpop.f32.mrf.mxu0 }
 0x7d5   : > { %v2264_v21 = vpop.permute.xlu1 %2263  ;;  %v7432_v63 = vmul.f32 0.17677669, %v5285_v12 }
 0x7d6   : > { %v2224_v60 = vpop.f32.mrf.mxu0  ;;  %5490 = vmatprep.subr.msk.bf16.mxu1 %vm1004_vm0, %v2264_v21  ;;  %v2284_v54 = vsel %vm1004_vm0, %v2264_v21, 0 }
 0x7d7   : > { %v7428_v3 = vmul.f32 0.17677669, %v2224_v60  ;;  %5298 = vmatpush3.bf16.xpose.msra.mxu1 %v2284_v54  ;;  %v5935_v53 = vpop.eup %5934  ;;  %v2382_v28 = vsel %vm1199_vm1, %v7432_v63, -inf }
 0x7d8   : > { %v5286_v59 = vpop.f32.mrf.mxu0  ;;  %v1955_v12 = vmul.f32 %v5935_v53, %v7370_v27 }
 0x7d9   : > { %v2376_v58 = vsel %vm1199_vm1, %v7428_v3, -inf  ;;  %v7438_v0 = vmul.f32 0.17677669, %v5286_v59  ;;  %v2258_v27 = vpop.permute.xlu1 %2257 }
 0x7da   : > { %2377 = vmax.xlane.f32.xlu0 %v2376_v58  ;;  %v2227_v22 = vpop.f32.mrf.mxu0 }
 0x7db   : > { %v7436_v29 = vmul.f32 0.17677669, %v2227_v22  ;;  %v5937_v14 = vpop.eup %5936  ;;  %v2385_v21 = vsel %vm1199_vm1, %v7438_v0, -inf }
 0x7dc   : > { %v5939_v35 = vpop.eup %5938  ;;  %v1951_v54 = vmul.f32 %v5937_v14, %v7374_v11 }
 0x7dd   : > { %v2379_v48 = vsel %vm1199_vm1, %v7436_v29, -inf  ;;  %v1953_v59 = vmul.f32 %v5939_v35, %v7366_v34 }
 0x7de   : > { %2383 = vmax.xlane.f32.xlu0 %v2382_v28  ;;  %2380 = vmax.xlane.f32.xlu1 %v2379_v48  ;;  %v2256_v28 = vpop.permute.xlu0 %2255 }
 0x7df   : > { %v5941_v30 = vpop.eup %5940  ;;  %v1963_v22 = vpack.c.bf16 %v1955_v12, %v1953_v59 }
 0x7e0   : > { %v1949_v60 = vmul.f32 %v5941_v30, %v7378_v40  ;;  %v2262_v40 = vpop.permute.xlu1 %2261 }
 0x7e2   : > { %2386 = vmax.xlane.f32.xlu0 %v2385_v21  ;;  %v1962_v58 = vpack.c.bf16 %v1951_v54, %v1949_v60  ;;  %v2260_v53 = vpop.permute.xlu0 %2259 }
 0x7e4   : > { %5271 = vmatprep.mubr.msk.bf16.mxu1 %vm1199_vm1, %v1962_v58 }
 0x7e5   : > { %5272 = vmatmul.mubr.msk.bf16.gmra.mxu1 %vm1199_vm1, %v1963_v22 }
 0x7e6   : > { %5299 = vmatprep.mubr.msk.bf16.mxu1 %vm1004_vm0, %v2256_v28 }
 0x7ed   : > { %5300 = vmatmul.mubr.msk.bf16.vlgmr.msra.gmra.mxu1 %vm1004_vm0, %v2258_v27 }
 0x7ee   : > { %5303 = vmatprep.mubr.msk.bf16.mxu1 %vm1004_vm0, %v2260_v53 }
 0x7f5   : > { %5304 = vmatmul.mubr.msk.bf16.gmra.mxu1 %vm1004_vm0, %v2262_v40 }
 0x870   : > { %v7456_v11 = vpop.f32.mrf.mxu1 }
 0x872   : > { %v7458_v34 = vpop.f32.mrf.mxu1 }
 0x874   : > { %v7460_v48 = vpop.f32.mrf.mxu1 }
 0x876   : > { %v7464_v35 = vpop.f32.mrf.mxu1 }
 0x892   : > { %v5289_v12 = vpop.f32.mrf.mxu0 }
 0x893   : > { %v7470_v59 = vmul.f32 0.17677669, %v5289_v12 }
 0x894   : > { %v2240_v21 = vpop.f32.mrf.mxu0 }
 0x895   : > { %v7468_v60 = vmul.f32 0.17677669, %v2240_v21  ;;  %v2394_v53 = vsel %vm1199_vm1, %v7470_v59, -inf }
 0x896   : > { %v5290_v54 = vpop.f32.mrf.mxu0 }
 0x897   : > { %v2388_v58 = vsel %vm1199_vm1, %v7468_v60, -inf  ;;  %v7476_v27 = vmul.f32 0.17677669, %v5290_v54 }
 0x898   : > { %2389 = vmax.xlane.f32.xlu0 %v2388_v58  ;;  %v2243_v22 = vpop.f32.mrf.mxu0 }
 0x899   : > { %v7474_v28 = vmul.f32 0.17677669, %v2243_v22  ;;  %v2397_v12 = vsel %vm1199_vm1, %v7476_v27, -inf }
 0x89b   : > { %v2391_v40 = vsel %vm1199_vm1, %v7474_v28, -inf }
 0x89c   : > { %2395 = vmax.xlane.f32.xlu0 %v2394_v53  ;;  %2392 = vmax.xlane.f32.xlu1 %v2391_v40  ;;  %v2378_v53 = vpop.xlane.xlu0 %2377 }
 0x8a0   : > { %2398 = vmax.xlane.f32.xlu1 %v2397_v12  ;;  %v2384_v40 = vpop.xlane.xlu0 %2383 }
 0x8a1   : > { %v2426_v12 = vsub.f32 %v7432_v63, %v2384_v40  ;;  %v2381_v63 = vpop.xlane.xlu1 %2380 }
 0x8a2   : > { %v2425_v40 = vsub.f32 %v7436_v29, %v2381_v63 }
 0x8a3   : > { %v2444_v14 = vmul.f32 1.442695, %v2426_v12 }
 0x8a5   : > { %v7484_v21 = vpop.f32.mrf.mxu1  ;;  %5942 = vpow2.f32 %v2444_v14  ;;  %v2442_v14 = vmul.f32 1.442695, %v2425_v40 }
 0x8a6   : > { %8485 = vst [vmem:[#allocation28_spill] sm:$0xff] %v7484_v21 }
 0x8a7   : > { %v7486_v58 = vpop.f32.mrf.mxu1 }
 0x8a8   : > { %8486 = vst [vmem:[#allocation29_spill] sm:$0xff] %v7486_v58 }
 0x8a9   : > { %v7488_v22 = vpop.f32.mrf.mxu1 }
 0x8aa   : > { %8487 = vst [vmem:[#allocation30_spill] sm:$0xff] %v7488_v22 }
 0x8ab   : > { %v7492_v30 = vpop.f32.mrf.mxu1 }
 0x8ac   : > { %8488 = vst [vmem:[#allocation31_spill] sm:$0xff] %v7492_v30 }
 0x8b1   : > { %2564 = vrot.lane.b32.xlu1 %v6825_v38, %s6307_s27 }
 0x8b2   : > { %2566 = vrot.lane.b32.xlu0 %v6786_v52, %s6307_s27 }
 0x8b5   : > { %2562 = vrot.lane.b32.xlu1 %v6840_v41, %s6307_s27 }
 0x8b6   : > { %2752 = vrot.lane.b32.xlu0 %v6740_v61, %s6308_s28  ;;  %v2424_v61 = vsub.f32 %v7428_v3, %v2378_v53 }
 0x8b8   : > { %v2440_v54 = vmul.f32 1.442695, %v2424_v61 }
 0x8b9   : > { %2560 = vrot.lane.b32.xlu1 %v6857_v25, %s6307_s27 }
 0x8ba   : > { %2655 = vrot.lane.b32.xlu0 %v6869_v50, %s6307_s27  ;;  %5944 = vpow2.f32 %v2440_v54 }
 0x8bd   : > { %2750 = vrot.lane.b32.xlu1 %v6723_v49, %s6308_s28  ;;  %v7523_v49 = vpop.eup %5942 }
 0x8be   : > { %2746 = vrot.lane.b32.xlu0 %v6684_v20, %s6308_s28  ;;  %v2387_v20 = vpop.xlane.xlu0 %2386  ;;  %v2478_v3 = vsel %vm1199_vm1, %v7523_v49, 0.0 }
 0x8c1   : > { %2748 = vrot.lane.b32.xlu1 %v6705_v36, %s6308_s28  ;;  %v2427_v36 = vsub.f32 %v7438_v0, %v2387_v20 }
 0x8c3   : > { %v2446_v43 = vmul.f32 1.442695, %v2427_v36 }
 0x8c5   : > { %2653 = vrot.lane.b32.xlu1 %v6757_v9, %s6307_s27  ;;  %5946 = vpow2.f32 %v2446_v43 }
 0x8c6   : > { %5948 = vpow2.f32 %v2442_v14  ;;  %v5301_v14 = vpop.f32.mrf.mxu1 }
 0x8c7   : > { %v7528_v53 = vpop.eup %5944 }
 0x8c8   : > { %v2472_v54 = vsel %vm1199_vm1, %v7528_v53, 0.0 }
 0x8c9   : > { %2651 = vrot.lane.b32.xlu1 %v6728_v4, %s6307_s27 }
 0x8cd   : > { %2649 = vrot.lane.b32.xlu1 %v6735_v55, %s6307_s27 }
 0x8d2   : > { %v7532_v0 = vpop.eup %5946 }
 0x8d3   : > { %v2481_v12 = vsel %vm1199_vm1, %v7532_v0, 0.0  ;;  %v7536_v29 = vpop.eup %5948 }
 0x8d4   : > { %v2475_v61 = vsel %vm1199_vm1, %v7536_v29, 0.0 }
 0x8dd   : > { %2479 = vadd.xlane.f32.xlu0 %v2478_v3 }
 0x8e1   : > { %2473 = vadd.xlane.f32.xlu0 %v2472_v54 }
 0x8f1   : > { %2482 = vadd.xlane.f32.xlu1 %v2481_v12 }
 0x8f5   : > { %2476 = vadd.xlane.f32.xlu1 %v2475_v61  ;;  %v2329_v61 = vpop.f32.mrf.mxu1 }
 0x921   : > { %v2390_v20 = vpop.xlane.xlu0 %2389 }
 0x922   : > { %v2428_v43 = vsub.f32 %v7468_v60, %v2390_v20 }
 0x924   : > { %v2448_v36 = vmul.f32 1.442695, %v2428_v43 }
 0x925   : > { %v2393_v63 = vpop.xlane.xlu1 %2392  ;;  %v2396_v40 = vpop.xlane.xlu0 %2395 }
 0x926   : > { %5950 = vpow2.f32 %v2448_v36  ;;  %v2430_v3 = vsub.f32 %v7470_v59, %v2396_v40  ;;  %v2429_v46 = vsub.f32 %v7474_v28, %v2393_v63  ;;  %v5302_v59 = vpop.f32.mrf.mxu1 }
 0x928   : > { %v2452_v54 = vmul.f32 1.442695, %v2430_v3  ;;  %v2450_v60 = vmul.f32 1.442695, %v2429_v46 }
 0x929   : > { %v2399_v13 = vpop.xlane.xlu1 %2398  ;;  %v2567_v58 = vpop.permute.xlu0 %2566 }
 0x92a   : > { %v2431_v12 = vsub.f32 %v7476_v27, %v2399_v13  ;;  %5307 = vmatprep.subr.bf16.mxu0 %v2567_v58  ;;  %5952 = vpow2.f32 %v2452_v54  ;;  %v7548_v13 = vmul.f32 0.17677669, %v5302_v59  ;;  %v2332_v27 = vpop.f32.mrf.mxu1 }
 0x92b   : > { %5308 = vmatpush3.bf16.msra.mxu0 %v2567_v58  ;;  %v7554_v40 = vmul.f32 0.17677669, %v2332_v27 }
 0x92c   : > { %v2454_v30 = vmul.f32 1.442695, %v2431_v12  ;;  %v2409_v3 = vsel %vm1199_vm1, %v7548_v13, -inf  ;;  %v5305_v22 = vpop.f32.mrf.mxu1 }
 0x92d   : > { %v2565_v20 = vpop.permute.xlu1 %2564  ;;  %v7544_v43 = vpop.permute.xlu0 %2752 }
 0x92e   : > { %5954 = vpow2.f32 %v2454_v30  ;;  %5309 = vmatprep.subr.bf16.mxu0 %v2565_v20  ;;  %v2345_v33 = vpop.f32.mrf.mxu1 }
 0x92f   : > { %5310 = vmatpush3.bf16.msra.mxu0 %v2565_v20  ;;  %5956 = vpow2.f32 %v2450_v60  ;;  %v2403_v20 = vsel %vm1199_vm1, %v7554_v40, -inf }
 0x931   : > { %v2563_v36 = vpop.permute.xlu1 %2562  ;;  %v2656_v28 = vpop.permute.xlu0 %2655 }
 0x932   : > { %5311 = vmatprep.subr.bf16.mxu0 %v2563_v36  ;;  %5323 = vmatprep.subr.bf16.mxu1 %v2656_v28 }
 0x933   : > { %v7546_v63 = vpop.eup %5950  ;;  %5312 = vmatpush3.bf16.msra.mxu0 %v2563_v36  ;;  %5324 = vmatpush3.bf16.msra.mxu1 %v2656_v28 }
 0x934   : > { %v2484_v46 = vsel %vm1199_vm1, %v7546_v63, 0.0 }
 0x935   : > { %v2561_v58 = vpop.permute.xlu1 %2560  ;;  %2485 = vadd.xlane.f32.xlu1 %v2484_v46  ;;  %v7574_v46 = vmul.f32 0.17677669, %v5301_v14 }
 0x936   : > { %5313 = vmatprep.subr.bf16.mxu0 %v2561_v58 }
 0x937   : > { %5314 = vmatpush3.bf16.msra.mxu0 %v2561_v58  ;;  %v7552_v30 = vpop.eup %5952  ;;  %v2406_v21 = vsel %vm1199_vm1, %v7574_v46, -inf }
 0x938   : > { %5491 = vmatprep.subr.msk.bf16.mxu0 %vm1004_vm0, %v7544_v43  ;;  %v2490_v12 = vsel %vm1199_vm1, %v7552_v30, 0.0 }
 0x939   : > { %v7560_v54 = vpop.permute.xlu1 %2750  ;;  %2410 = vmax.xlane.f32.xlu1 %v2409_v3  ;;  %2491 = vadd.xlane.f32.xlu0 %v2490_v12  ;;  %v7578_v3 = vmul.f32 0.17677669, %v2329_v61  ;;  %v7586_v61 = vmul.f32 0.17677669, %v2345_v33  ;;  %v2747_v33 = vpop.permute.xlu0 %2746 }
 0x93b   : > { %v7564_v60 = vpop.eup %5954 }
 0x93c   : > { %v2493_v59 = vsel %vm1199_vm1, %v7564_v60, 0.0  ;;  %v7572_v28 = vpop.eup %5956 }
 0x93d   : > { %v7570_v36 = vpop.permute.xlu1 %2748  ;;  %2404 = vmax.xlane.f32.xlu1 %v2403_v20  ;;  %2494 = vadd.xlane.f32.xlu0 %v2493_v59  ;;  %v2487_v58 = vsel %vm1199_vm1, %v7572_v28, 0.0  ;;  %v7582_v20 = vmul.f32 0.17677669, %v5305_v22  ;;  %v2400_v59 = vsel %vm1199_vm1, %v7578_v3, -inf  ;;  %v5306_v22 = vpop.f32.mrf.mxu1 }
 0x941   : > { %v2654_v27 = vpop.permute.xlu1 %2653  ;;  %2488 = vadd.xlane.f32.xlu0 %v2487_v58  ;;  %v7598_v58 = vmul.f32 0.17677669, %v5306_v22 }
 0x942   : > { %5325 = vmatprep.subr.bf16.mxu1 %v2654_v27 }
 0x943   : > { %5326 = vmatpush3.bf16.msra.mxu1 %v2654_v27  ;;  %v2418_v27 = vsel %vm1199_vm1, %v7582_v20, -inf }
 0x945   : > { %v2652_v12 = vpop.permute.xlu1 %2651  ;;  %2407 = vmax.xlane.f32.xlu0 %v2406_v21  ;;  %v2412_v21 = vsel %vm1199_vm1, %v7586_v61, -inf }
 0x946   : > { %5327 = vmatprep.subr.bf16.mxu1 %v2652_v12 }
 0x947   : > { %5328 = vmatpush3.bf16.msra.mxu1 %v2652_v12  ;;  %v2348_v12 = vpop.f32.mrf.mxu1 }
 0x949   : > { %v2650_v14 = vpop.permute.xlu1 %2649  ;;  %2401 = vmax.xlane.f32.xlu0 %v2400_v59  ;;  %v7600_v59 = vmul.f32 0.17677669, %v2348_v12 }
 0x94a   : > { %5329 = vmatprep.subr.bf16.mxu1 %v2650_v14 }
 0x94b   : > { %5330 = vmatpush3.bf16.msra.mxu1 %v2650_v14 }
 0x94d   : > { %2419 = vmax.xlane.f32.xlu0 %v2418_v27  ;;  %v2415_v27 = vsel %vm1199_vm1, %v7600_v59, -inf }
 0x94e   : > { %2740 = vrot.lane.b32.xlu1 %v6806_v15, %s6308_s28  ;;  %v2421_v15 = vsel %vm1199_vm1, %v7598_v58, -inf }
 0x951   : > { %2413 = vmax.xlane.f32.xlu0 %v2412_v21 }
 0x952   : > { %2857 = vrot.lane.b32.xlu1 %v6809_v1, %s6308_s28 }
 0x966   : > { %v2480_v14 = vpop.xlane.xlu0 %2479 }
 0x967   : > { %2738 = vrot.lane.b32.xlu0 %v6677_v17, %s6308_s28 }
 0x96a   : > { %v2474_v21 = vpop.xlane.xlu0 %2473 }
 0x976   : > { %2422 = vmax.xlane.f32.xlu1 %v2421_v15 }
 0x97a   : > { %v2483_v1 = vpop.xlane.xlu1 %2482  ;;  %2416 = vmax.xlane.f32.xlu1 %v2415_v27 }
 0x97b   : > { %5958 = vrcp.f32 %v2483_v1 }
 0x97c   : > { %5960 = vrcp.f32 %v2474_v21 }
 0x97d   : > { %5962 = vrcp.f32 %v2480_v14  ;;  %v2776_v14 = vsel %vm1004_vm0, %v7544_v43, 0 }
 0x97e   : > { %v2477_v17 = vpop.xlane.xlu1 %2476 }
 0x97f   : > { %5964 = vrcp.f32 %v2477_v17 }
 0x988   : > { %v5959_v22 = vpop.eup %5958 }
 0x989   : > { %v5961_v51 = vpop.eup %5960  ;;  %v2527_v15 = vmul.f32 %v5959_v22, %v7532_v0 }
 0x98a   : > { %v5963_v37 = vpop.eup %5962  ;;  %v2521_v32 = vmul.f32 %v5961_v51, %v7528_v53 }
 0x98b   : > { %2855 = vrot.lane.b32.xlu1 %v6815_v6, %s6308_s28  ;;  %v2525_v27 = vmul.f32 %v5963_v37, %v7523_v49  ;;  %v2773_v6 = vsel %vm1004_vm0, %v7560_v54, 0  ;;  %v2767_v37 = vsel %vm1004_vm0, %v2747_v33, 0 }
 0x98c   : > { %v5965_v12 = vpop.eup %5964 }
 0x98d   : > { %v2523_v16 = vmul.f32 %v5965_v12, %v7536_v29  ;;  %v2553_v21 = vpack.c.bf16 %v2527_v15, %v2525_v27 }
 0x98f   : > { %v2552_v1 = vpack.c.bf16 %v2523_v16, %v2521_v32  ;;  %v2770_v16 = vsel %vm1004_vm0, %v7570_v36, 0 }
 0x991   : > { %5315 = vmatprep.mubr.msk.bf16.mxu0 %vm1199_vm1, %v2552_v1 }
 0x992   : > { %5316 = vmatmul.mubr.msk.bf16.vlgmr.msra.gmra.mxu0 %vm1199_vm1, %v2553_v21 }
 0x993   : > { %5340 = vmatpush3.bf16.xpose.msra.mxu0 %v2776_v14 }
 0x994   : > { %5492 = vmatprep.subr.msk.bf16.mxu0 %vm1004_vm0, %v7560_v54 }
 0x99b   : > { %5342 = vmatpush3.bf16.xpose.msra.mxu0 %v2773_v6 }
 0x99c   : > { %5493 = vmatprep.subr.msk.bf16.mxu0 %vm1004_vm0, %v7570_v36 }
 0x9a3   : > { %5344 = vmatpush3.bf16.xpose.msra.mxu0 %v2770_v16 }
 0x9a4   : > { %5494 = vmatprep.subr.msk.bf16.mxu0 %vm1004_vm0, %v2747_v33 }
 0x9ab   : > { %5346 = vmatpush3.bf16.xpose.msra.mxu0 %v2767_v37 }
 0x9be   : > { %v2486_v32 = vpop.xlane.xlu1 %2485 }
 0x9c2   : > { %v2411_v51 = vpop.xlane.xlu1 %2410  ;;  %v2492_v53 = vpop.xlane.xlu0 %2491 }
 0x9c3   : > { %v2435_v49 = vsub.f32 %v7548_v13, %v2411_v51 }
 0x9c5   : > { %v2462_v0 = vmul.f32 1.442695, %v2435_v49 }
 0x9c6   : > { %v2405_v29 = vpop.xlane.xlu1 %2404  ;;  %v2495_v54 = vpop.xlane.xlu0 %2494 }
 0x9c7   : > { %5966 = vpow2.f32 %v2462_v0  ;;  %v2433_v43 = vsub.f32 %v7554_v40, %v2405_v29 }
 0x9c8   : > { %5968 = vrcp.f32 %v2486_v32 }
 0x9c9   : > { %v2458_v17 = vmul.f32 1.442695, %v2433_v43  ;;  %5970 = vrcp.f32 %v2495_v54 }
 0x9ca   : > { %5972 = vrcp.f32 %v2492_v53  ;;  %v2741_v36 = vpop.permute.xlu1 %2740  ;;  %v2489_v22 = vpop.xlane.xlu0 %2488 }
 0x9cb   : > { %5974 = vpow2.f32 %v2458_v17 }
 0x9cc   : > { %5976 = vrcp.f32 %v2489_v22 }
 0x9ce   : > { %v7628_v33 = vpop.permute.xlu1 %2857  ;;  %v2408_v12 = vpop.xlane.xlu0 %2407 }
 0x9cf   : > { %5495 = vmatprep.subr.msk.bf16.mxu1 %vm1004_vm0, %v7628_v33  ;;  %v2434_v13 = vsub.f32 %v7574_v46, %v2408_v12 }
 0x9d1   : > { %v2460_v15 = vmul.f32 1.442695, %v2434_v13 }
 0x9d2   : > { %v2402_v27 = vpop.xlane.xlu0 %2401 }
 0x9d3   : > { %5978 = vpow2.f32 %v2460_v15  ;;  %v2432_v1 = vsub.f32 %v7578_v3, %v2402_v27 }
 0x9d4   : > { %v7633_v40 = vpop.eup %5966 }
 0x9d5   : > { %v5969_v21 = vpop.eup %5968  ;;  %v2505_v14 = vsel %vm1199_vm1, %v7633_v40, 0.0  ;;  %v2456_v16 = vmul.f32 1.442695, %v2432_v1 }
 0x9d6   : > { %v5971_v6 = vpop.eup %5970  ;;  %2506 = vadd.xlane.f32.xlu0 %v2505_v14  ;;  %v2420_v32 = vpop.xlane.xlu0 %2419  ;;  %v2529_v3 = vmul.f32 %v5969_v21, %v7546_v63 }
 0x9d7   : > { %v5973_v37 = vpop.eup %5972  ;;  %5980 = vpow2.f32 %v2456_v16  ;;  %v2535_v53 = vmul.f32 %v5971_v6, %v7564_v60 }
 0x9d8   : > { %v7638_v51 = vpop.eup %5974  ;;  %v2533_v43 = vmul.f32 %v5973_v37, %v7552_v30  ;;  %v2438_v30 = vsub.f32 %v7582_v20, %v2420_v32 }
 0x9d9   : > { %v5977_v46 = vpop.eup %5976  ;;  %v2499_v49 = vsel %vm1199_vm1, %v7638_v51, 0.0 }
 0x9da   : > { %2500 = vadd.xlane.f32.xlu0 %v2499_v49  ;;  %v2531_v0 = vmul.f32 %v5977_v46, %v7572_v28  ;;  %v2414_v29 = vpop.xlane.xlu0 %2413  ;;  %v2555_v17 = vpack.c.bf16 %v2535_v53, %v2533_v43  ;;  %v2468_v28 = vmul.f32 1.442695, %v2438_v30 }
 0x9db   : > { %v2436_v21 = vsub.f32 %v7586_v61, %v2414_v29 }
 0x9dc   : > { %v2554_v54 = vpack.c.bf16 %v2531_v0, %v2529_v3  ;;  %5982 = vpow2.f32 %v2468_v28 }
 0x9dd   : > { %v2464_v16 = vmul.f32 1.442695, %v2436_v21 }
 0x9de   : > { %5319 = vmatprep.mubr.msk.bf16.mxu0 %vm1199_vm1, %v2554_v54  ;;  %v2739_v22 = vpop.permute.xlu0 %2738 }
 0x9df   : > { %5320 = vmatmul.mubr.msk.bf16.gmra.mxu0 %vm1199_vm1, %v2555_v17 }
 0x9e0   : > { %5347 = vmatprep.mubr.msk.bf16.mxu0 %vm1004_vm0, %v2739_v22  ;;  %v5979_v12 = vpop.eup %5978 }
 0x9e1   : > { %v2502_v60 = vsel %vm1199_vm1, %v5979_v12, 0.0 }
 0x9e2   : > { %2503 = vadd.xlane.f32.xlu1 %v2502_v60 }
 0x9e4   : > { %v5981_v13 = vpop.eup %5980 }
 0x9e5   : > { %v2496_v63 = vsel %vm1199_vm1, %v5981_v13, 0.0 }
 0x9e6   : > { %2497 = vadd.xlane.f32.xlu1 %v2496_v63 }
 0x9e7   : > { %5348 = vmatmul.mubr.msk.bf16.vlgmr.msra.gmra.mxu0 %vm1004_vm0, %v2741_v36 }
 0x9f0   : > { %2742 = vrot.lane.b32.xlu0 %v6813_v31, %s6308_s28  ;;  %v7660_v31 = vpop.eup %5982 }
 0x9f7   : > { %2744 = vrot.lane.b32.xlu1 %v6844_v42, %s6308_s28  ;;  %v2514_v42 = vsel %vm1199_vm1, %v7660_v31, 0.0 }
 0x9ff   : > { %v2423_v15 = vpop.xlane.xlu1 %2422 }
 0xa00   : > { %v2439_v27 = vsub.f32 %v7598_v58, %v2423_v15 }
 0xa02   : > { %v2470_v1 = vmul.f32 1.442695, %v2439_v27  ;;  %v2881_v27 = vsel %vm1004_vm0, %v7628_v33, 0 }
 0xa03   : > { %v2417_v14 = vpop.xlane.xlu1 %2416 }
 0xa04   : > { %5984 = vpow2.f32 %v2470_v1  ;;  %v2437_v36 = vsub.f32 %v7600_v59, %v2417_v14 }
 0xa06   : > { %v2466_v6 = vmul.f32 1.442695, %v2437_v36 }
 0xa07   : > { %v2856_v0 = vpop.permute.xlu1 %2855 }
 0xa08   : > { %5986 = vpow2.f32 %v2466_v6  ;;  %v2878_v1 = vsel %vm1004_vm0, %v2856_v0, 0 }
 0xa09   : > { %5988 = vpow2.f32 %v2464_v16 }
 0xa0f   : > { %2515 = vadd.xlane.f32.xlu0 %v2514_v42 }
 0xa11   : > { %v7664_v20 = vpop.eup %5984 }
 0xa12   : > { %v2517_v58 = vsel %vm1199_vm1, %v7664_v20, 0.0 }
 0xa13   : > { %2518 = vadd.xlane.f32.xlu0 %v2517_v58 }
 0xa15   : > { %v7668_v61 = vpop.eup %5986 }
 0xa16   : > { %v2511_v59 = vsel %vm1199_vm1, %v7668_v61, 0.0  ;;  %v7672_v37 = vpop.eup %5988 }
 0xa17   : > { %2512 = vadd.xlane.f32.xlu0 %v2511_v59  ;;  %v2508_v32 = vsel %vm1199_vm1, %v7672_v37, 0.0 }
 0xa1b   : > { %2509 = vadd.xlane.f32.xlu1 %v2508_v32 }
 0xa2c   : > { %2851 = vrot.lane.b32.xlu1 %v6875_v62, %s6308_s28 }
 0xa2d   : > { %2853 = vrot.lane.b32.xlu0 %v6851_v44, %s6308_s28 }
 0xa30   : > { %2845 = vrot.lane.b32.xlu1 %v6891_v23, %s6308_s28 }
 0xa31   : > { %2843 = vrot.lane.b32.xlu0 %v6761_v18, %s6308_s28 }
 0xa34   : > { %2849 = vrot.lane.b32.xlu1 %v6903_v24, %s6308_s28 }
 0xa35   : > { %2847 = vrot.lane.b32.xlu0 %v6893_v47, %s6308_s28 }
 0xa52   : > { %v7688_v46 = vpop.f32.mrf.mxu0 }
 0xa54   : > { %v7690_v49 = vpop.f32.mrf.mxu0 }
 0xa56   : > { %v7692_v62 = vpop.f32.mrf.mxu0 }
 0xa5f   : > { %v2507_v53 = vpop.xlane.xlu0 %2506 }
 0xa63   : > { %v2501_v23 = vpop.xlane.xlu0 %2500 }
 0xa67   : > { %v2743_v3 = vpop.permute.xlu0 %2742 }
 0xa68   : > { %5351 = vmatprep.mubr.msk.bf16.mxu0 %vm1004_vm0, %v2743_v3 }
 0xa6b   : > { %v2504_v18 = vpop.xlane.xlu1 %2503 }
 0xa6c   : > { %5990 = vrcp.f32 %v2504_v18 }
 0xa6d   : > { %5992 = vrcp.f32 %v2501_v23 }
 0xa6e   : > { %5994 = vrcp.f32 %v2507_v53 }
 0xa6f   : > { %v2498_v47 = vpop.xlane.xlu1 %2497 }
 0xa70   : > { %5996 = vrcp.f32 %v2498_v47 }
 0xa73   : > { %v2745_v24 = vpop.permute.xlu1 %2744 }
 0xa74   : > { %5352 = vmatmul.mubr.msk.bf16.gmra.mxu0 %vm1004_vm0, %v2745_v24 }
 0xa79   : > { %v5991_v29 = vpop.eup %5990 }
 0xa7a   : > { %v5993_v43 = vpop.eup %5992  ;;  %v2541_v22 = vmul.f32 %v5991_v29, %v5979_v12 }
 0xa7b   : > { %v5995_v54 = vpop.eup %5994  ;;  %v2539_v63 = vmul.f32 %v5993_v43, %v7638_v51  ;;  %v7706_v51 = vpop.f32.mrf.mxu0 }
 0xa7c   : > { %v2543_v30 = vmul.f32 %v5995_v54, %v7633_v40 }
 0xa7d   : > { %v5997_v17 = vpop.eup %5996 }
 0xa7e   : > { %v2537_v60 = vmul.f32 %v5997_v17, %v5981_v13  ;;  %v2557_v15 = vpack.c.bf16 %v2543_v30, %v2541_v22 }
 0xa80   : > { %v2556_v28 = vpack.c.bf16 %v2539_v63, %v2537_v60 }
 0xa82   : > { %5331 = vmatprep.mubr.msk.bf16.mxu1 %vm1199_vm1, %v2556_v28 }
 0xa83   : > { %5332 = vmatmul.mubr.msk.bf16.vlgmr.msra.gmra.mxu1 %vm1199_vm1, %v2557_v15 }
 0xa84   : > { %5356 = vmatpush3.bf16.xpose.msra.mxu1 %v2881_v27 }
 0xa85   : > { %5496 = vmatprep.subr.msk.bf16.mxu1 %vm1004_vm0, %v2856_v0 }
 0xa8c   : > { %5358 = vmatpush3.bf16.xpose.msra.mxu1 %v2878_v1 }
 0xa98   : > { %v2516_v12 = vpop.xlane.xlu0 %2515 }
 0xa9c   : > { %v2519_v13 = vpop.xlane.xlu0 %2518 }
 0xa9d   : > { %5998 = vrcp.f32 %v2519_v13 }
 0xa9f   : > { %v7708_v40 = vpop.f32.mrf.mxu0 }
 0xaa0   : > { %v2513_v21 = vpop.xlane.xlu0 %2512 }
 0xaa1   : > { %v7710_v14 = vpop.f32.mrf.mxu0  ;;  %6000 = vrcp.f32 %v2513_v21 }
 0xaa2   : > { %6002 = vrcp.f32 %v2516_v12 }
 0xaa3   : > { %v7712_v36 = vpop.f32.mrf.mxu0 }
 0xaa4   : > { %v2854_v6 = vpop.permute.xlu0 %2853  ;;  %v2510_v42 = vpop.xlane.xlu1 %2509 }
 0xaa5   : > { %v7716_v16 = vpop.f32.mrf.mxu0  ;;  %5497 = vmatprep.subr.msk.bf16.mxu1 %vm1004_vm0, %v2854_v6  ;;  %v2875_v58 = vsel %vm1004_vm0, %v2854_v6, 0  ;;  %6004 = vrcp.f32 %v2510_v42 }
 0xaa6   : > { %5360 = vmatpush3.bf16.xpose.msra.mxu1 %v2875_v58 }
 0xaa7   : > { %v5349_v32 = vpop.f32.mrf.mxu0 }
 0xaa8   : > { %v2852_v53 = vpop.permute.xlu1 %2851  ;;  %v2950_v18 = vmul.f32 0.17677669, %v5349_v32  ;;  %v2844_v42 = vpop.permute.xlu0 %2843 }
 0xaa9   : > { %v2812_v23 = vpop.f32.mrf.mxu0  ;;  %5498 = vmatprep.subr.msk.bf16.mxu1 %vm1004_vm0, %v2852_v53  ;;  %v2872_v29 = vsel %vm1004_vm0, %v2852_v53, 0 }
 0xaaa   : > { %v2948_v3 = vmul.f32 0.17677669, %v2812_v23  ;;  %v5999_v54 = vpop.eup %5998  ;;  %v2970_v22 = vsel %vm1199_vm1, %v2950_v18, -inf }
 0xaab   : > { %v5350_v0 = vpop.f32.mrf.mxu0  ;;  %v2551_v15 = vmul.f32 %v5999_v54, %v7664_v20 }
 0xaac   : > { %v2964_v47 = vsel %vm1199_vm1, %v2948_v3, -inf  ;;  %v2951_v17 = vmul.f32 0.17677669, %v5350_v0  ;;  %v2846_v58 = vpop.permute.xlu1 %2845  ;;  %v2848_v20 = vpop.permute.xlu0 %2847 }
 0xaad   : > { %2965 = vmax.xlane.f32.xlu0 %v2964_v47  ;;  %v2815_v24 = vpop.f32.mrf.mxu0 }
 0xaae   : > { %v2949_v43 = vmul.f32 0.17677669, %v2815_v24  ;;  %5362 = vmatpush3.bf16.xpose.msra.mxu1 %v2872_v29  ;;  %v6001_v63 = vpop.eup %6000  ;;  %v2973_v27 = vsel %vm1199_vm1, %v2951_v17, -inf }
 0xaaf   : > { %v6003_v30 = vpop.eup %6002  ;;  %v2547_v12 = vmul.f32 %v6001_v63, %v7668_v61 }
 0xab0   : > { %v2967_v60 = vsel %vm1199_vm1, %v2949_v43, -inf  ;;  %v2549_v13 = vmul.f32 %v6003_v30, %v7660_v31 }
 0xab1   : > { %2971 = vmax.xlane.f32.xlu0 %v2970_v22  ;;  %2968 = vmax.xlane.f32.xlu1 %v2967_v60 }
 0xab2   : > { %v6005_v28 = vpop.eup %6004  ;;  %v2559_v6 = vpack.c.bf16 %v2551_v15, %v2549_v13 }
 0xab3   : > { %v2545_v1 = vmul.f32 %v6005_v28, %v7672_v37  ;;  %v2850_v37 = vpop.permute.xlu1 %2849 }
 0xab5   : > { %2974 = vmax.xlane.f32.xlu0 %v2973_v27  ;;  %v2558_v21 = vpack.c.bf16 %v2547_v12, %v2545_v1 }
 0xab7   : > { %5335 = vmatprep.mubr.msk.bf16.mxu1 %vm1199_vm1, %v2558_v21 }
 0xab8   : > { %5336 = vmatmul.mubr.msk.bf16.gmra.mxu1 %vm1199_vm1, %v2559_v6 }
 0xab9   : > { %5363 = vmatprep.mubr.msk.bf16.mxu1 %vm1004_vm0, %v2844_v42 }
 0xac0   : > { %5364 = vmatmul.mubr.msk.bf16.vlgmr.msra.gmra.mxu1 %vm1004_vm0, %v2846_v58 }
 0xac1   : > { %5367 = vmatprep.mubr.msk.bf16.mxu1 %vm1004_vm0, %v2848_v20 }
 0xac8   : > { %5368 = vmatmul.mubr.msk.bf16.gmra.mxu1 %vm1004_vm0, %v2850_v37 }
 0xb34   : > { %v5353_v61 = vpop.f32.mrf.mxu0 }
 0xb35   : > { %v7740_v0 = vmul.f32 0.17677669, %v5353_v61 }
 0xb36   : > { %v2966_v31 = vpop.xlane.xlu0 %2965  ;;  %v2828_v32 = vpop.f32.mrf.mxu0 }
 0xb37   : > { %v7738_v53 = vmul.f32 0.17677669, %v2828_v32  ;;  %v3012_v47 = vsub.f32 %v2948_v3, %v2966_v31  ;;  %v2982_v12 = vsel %vm1199_vm1, %v7740_v0, -inf }
 0xb38   : > { %v5354_v23 = vpop.f32.mrf.mxu0 }
 0xb39   : > { %v2976_v54 = vsel %vm1199_vm1, %v7738_v53, -inf  ;;  %v3028_v15 = vmul.f32 1.442695, %v3012_v47  ;;  %v7746_v27 = vmul.f32 0.17677669, %v5354_v23 }
 0xb3a   : > { %v2969_v24 = vpop.xlane.xlu1 %2968  ;;  %v2972_v29 = vpop.xlane.xlu0 %2971  ;;  %2977 = vmax.xlane.f32.xlu0 %v2976_v54 }
 0xb3b   : > { %v3014_v22 = vsub.f32 %v2950_v18, %v2972_v29  ;;  %v2831_v60 = vpop.f32.mrf.mxu0  ;;  %v3013_v30 = vsub.f32 %v2949_v43, %v2969_v24  ;;  %v2985_v43 = vsel %vm1199_vm1, %v7746_v27, -inf }
 0xb3c   : > { %v7744_v63 = vmul.f32 0.17677669, %v2831_v60 }
 0xb3d   : > { %v3032_v28 = vmul.f32 1.442695, %v3014_v22  ;;  %v3030_v18 = vmul.f32 1.442695, %v3013_v30 }
 0xb3e   : > { %v2975_v1 = vpop.xlane.xlu0 %2974  ;;  %v2979_v3 = vsel %vm1199_vm1, %v7744_v63, -inf  ;;  %2983 = vmax.xlane.f32.xlu0 %v2982_v12 }
 0xb3f   : > { %v3015_v13 = vsub.f32 %v2951_v17, %v2975_v1  ;;  %2980 = vmax.xlane.f32.xlu1 %v2979_v3  ;;  %6006 = vpow2.f32 %v3032_v28 }
 0xb40   : > { %6008 = vpow2.f32 %v3028_v15 }
 0xb41   : > { %v3034_v21 = vmul.f32 1.442695, %v3015_v13 }
 0xb43   : > { %6010 = vpow2.f32 %v3034_v21  ;;  %2986 = vmax.xlane.f32.xlu1 %v2985_v43  ;;  %v7754_v6 = vpop.f32.mrf.mxu1 }
 0xb44   : > { %6012 = vpow2.f32 %v3030_v18 }
 0xb45   : > { %v7756_v42 = vpop.f32.mrf.mxu1 }
 0xb47   : > { %v7758_v58 = vpop.f32.mrf.mxu1 }
 0xb49   : > { %v7762_v20 = vpop.f32.mrf.mxu1 }
 0xb4c   : > { %v7766_v61 = vpop.eup %6006 }
 0xb4d   : > { %v3066_v31 = vsel %vm1199_vm1, %v7766_v61, 0.0  ;;  %v7770_v32 = vpop.eup %6008 }
 0xb4e   : > { %3067 = vadd.xlane.f32.xlu0 %v3066_v31  ;;  %v3060_v29 = vsel %vm1199_vm1, %v7770_v32, 0.0 }
 0xb50   : > { %v7772_v23 = vpop.eup %6010 }
 0xb51   : > { %v3069_v47 = vsel %vm1199_vm1, %v7772_v23, 0.0  ;;  %v7776_v24 = vpop.eup %6012 }
 0xb52   : > { %3070 = vadd.xlane.f32.xlu1 %v3069_v47  ;;  %3061 = vadd.xlane.f32.xlu0 %v3060_v29  ;;  %v3063_v54 = vsel %vm1199_vm1, %v7776_v24, 0.0 }
 0xb56   : > { %3064 = vadd.xlane.f32.xlu1 %v3063_v54 }
 0xb78   : > { %v7782_v22 = vpop.f32.mrf.mxu1 }
 0xb79   : > { %8489 = vst [vmem:[#allocation32_spill] sm:$0xff] %v7782_v22 }
 0xb7a   : > { %v7784_v60 = vpop.f32.mrf.mxu1 }
 0xb7b   : > { %8490 = vst [vmem:[#allocation33_spill] sm:$0xff] %v7784_v60 }
 0xb7c   : > { %v7786_v30 = vpop.f32.mrf.mxu1 }
 0xb7d   : > { %8491 = vst [vmem:[#allocation34_spill] sm:$0xff] %v7786_v30 }
 0xb7e   : > { %v7790_v15 = vpop.f32.mrf.mxu1 }
 0xb7f   : > { %8492 = vst [vmem:[#allocation35_spill] sm:$0xff] %v7790_v15 }
 0xb80   : > { %v5365_v12 = vpop.f32.mrf.mxu1 }
 0xb81   : > { %v7794_v3 = vmul.f32 0.17677669, %v5365_v12 }
 0xb82   : > { %v2917_v13 = vpop.f32.mrf.mxu1 }
 0xb83   : > { %v7796_v18 = vmul.f32 0.17677669, %v2917_v13  ;;  %v2994_v21 = vsel %vm1199_vm1, %v7794_v3, -inf }
 0xb84   : > { %2995 = vmax.xlane.f32.xlu0 %v2994_v21  ;;  %v5366_v31 = vpop.f32.mrf.mxu1 }
 0xb85   : > { %v2988_v43 = vsel %vm1199_vm1, %v7796_v18, -inf }
 0xb86   : > { %v2920_v47 = vpop.f32.mrf.mxu1 }
 0xb88   : > { %2989 = vmax.xlane.f32.xlu0 %v2988_v43  ;;  %v5369_v29 = vpop.f32.mrf.mxu1 }
 0xb89   : > { %v7804_v54 = vmul.f32 0.17677669, %v5369_v29 }
 0xb8a   : > { %v2933_v12 = vpop.f32.mrf.mxu1 }
 0xb8b   : > { %v7806_v1 = vmul.f32 0.17677669, %v2933_v12  ;;  %v3006_v13 = vsel %vm1199_vm1, %v7804_v54, -inf }
 0xb8d   : > { %v3000_v21 = vsel %vm1199_vm1, %v7806_v1, -inf }
 0xb9e   : > { %3154 = vrot.lane.b32.xlu0 %v6786_v52, %s6308_s28 }
 0xbbd   : > { %3007 = vmax.xlane.f32.xlu0 %v3006_v13 }
 0xbc1   : > { %3001 = vmax.xlane.f32.xlu0 %v3000_v21 }
 0xbc3   : > { %v2978_v43 = vpop.xlane.xlu0 %2977 }
 0xbc4   : > { %v3016_v28 = vsub.f32 %v7738_v53, %v2978_v43 }
 0xbc6   : > { %v3036_v52 = vmul.f32 1.442695, %v3016_v28 }
 0xbc7   : > { %v2984_v17 = vpop.xlane.xlu0 %2983 }
 0xbc8   : > { %v2981_v37 = vpop.xlane.xlu1 %2980  ;;  %6014 = vpow2.f32 %v3036_v52  ;;  %v3018_v12 = vsub.f32 %v7740_v0, %v2984_v17 }
 0xbc9   : > { %v3017_v29 = vsub.f32 %v7744_v63, %v2981_v37  ;;  %v2959_v37 = vmul.f32 0.17677669, %v5366_v31 }
 0xbca   : > { %v3040_v33 = vmul.f32 1.442695, %v3018_v12 }
 0xbcb   : > { %v3038_v59 = vmul.f32 1.442695, %v3017_v29  ;;  %v2997_v52 = vsel %vm1199_vm1, %v2959_v37, -inf  ;;  %v5370_v29 = vpop.f32.mrf.mxu1 }
 0xbcc   : > { %v2987_v44 = vpop.xlane.xlu1 %2986 }
 0xbcd   : > { %6016 = vpow2.f32 %v3038_v59  ;;  %v3019_v13 = vsub.f32 %v7746_v27, %v2987_v44 }
 0xbce   : > { %6018 = vpow2.f32 %v3040_v33 }
 0xbcf   : > { %v3042_v60 = vmul.f32 1.442695, %v3019_v13 }
 0xbd1   : > { %6020 = vpow2.f32 %v3042_v60 }
 0xbd5   : > { %v7816_v21 = vpop.eup %6014 }
 0xbd6   : > { %v3072_v53 = vsel %vm1199_vm1, %v7816_v21, 0.0 }
 0xbd7   : > { %v3068_v28 = vpop.xlane.xlu0 %3067  ;;  %3150 = vrot.lane.b32.xlu0 %v6840_v41, %s6308_s28  ;;  %3073 = vadd.xlane.f32.xlu1 %v3072_v53 }
 0xbd8   : > { %6022 = vrcp.f32 %v3068_v28  ;;  %v7845_v28 = vmul.f32 0.17677669, %v5370_v29 }
 0xbda   : > { %v7822_v0 = vpop.eup %6016 }
 0xbdb   : > { %v3071_v63 = vpop.xlane.xlu1 %3070  ;;  %v3075_v44 = vsel %vm1199_vm1, %v7822_v0, 0.0  ;;  %v7826_v33 = vpop.eup %6018  ;;  %3148 = vrot.lane.b32.xlu0 %v6857_v25, %s6308_s28  ;;  %v2957_v25 = vmul.f32 0.17677669, %v2920_v47 }
 0xbdc   : > { %6024 = vrcp.f32 %v3071_v63  ;;  %v3062_v59 = vpop.xlane.xlu0 %3061  ;;  %3076 = vadd.xlane.f32.xlu1 %v3075_v44  ;;  %v3078_v41 = vsel %vm1199_vm1, %v7826_v33, 0.0  ;;  %v2936_v63 = vpop.f32.mrf.mxu1 }
 0xbdd   : > { %6026 = vrcp.f32 %v3062_v59  ;;  %v2991_v31 = vsel %vm1199_vm1, %v2957_v25, -inf }
 0xbde   : > { %v7832_v17 = vpop.eup %6020 }
 0xbdf   : > { %v3065_v27 = vpop.xlane.xlu1 %3064  ;;  %3243 = vrot.lane.b32.xlu0 %v6869_v50, %s6308_s28  ;;  %v3081_v60 = vsel %vm1199_vm1, %v7832_v17, 0.0 }
 0xbe0   : > { %6028 = vrcp.f32 %v3065_v27  ;;  %3079 = vadd.xlane.f32.xlu1 %v3078_v41 }
 0xbe4   : > { %3082 = vadd.xlane.f32.xlu1 %v3081_v60 }
 0xbe5   : > { %v6023_v43 = vpop.eup %6022 }
 0xbe6   : > { %v7840_v13 = vmul.f32 %v6023_v43, %v7766_v61  ;;  %v7852_v61 = vmul.f32 0.17677669, %v2936_v63 }
 0xbe8   : > { %2998 = vmax.xlane.f32.xlu1 %v2997_v52  ;;  %v3003_v60 = vsel %vm1199_vm1, %v7852_v61, -inf }
 0xbe9   : > { %v6025_v12 = vpop.eup %6024 }
 0xbea   : > { %v7843_v53 = vmul.f32 %v6025_v12, %v7772_v23  ;;  %v6027_v50 = vpop.eup %6026  ;;  %v3009_v23 = vsel %vm1199_vm1, %v7845_v28, -inf }
 0xbeb   : > { %v3109_v59 = vmul.f32 %v6027_v50, %v7770_v32 }
 0xbec   : > { %2992 = vmax.xlane.f32.xlu1 %v2991_v31 }
 0xbed   : > { %v6029_v44 = vpop.eup %6028 }
 0xbee   : > { %v3111_v27 = vmul.f32 %v6029_v44, %v7776_v24 }
 0xbf0   : > { %3010 = vmax.xlane.f32.xlu1 %v3009_v23  ;;  %v3140_v41 = vpack.c.bf16 %v3111_v27, %v3109_v59 }
 0xbf2   : > { %5379 = vmatprep.mubr.msk.bf16.mxu0 %vm1199_vm1, %v3140_v41 }
 0xbf4   : > { %3004 = vmax.xlane.f32.xlu1 %v3003_v60 }
 0xc05   : > { %3152 = vrot.lane.b32.xlu1 %v6825_v38, %s6308_s28 }
 0xc0d   : > { %v2996_v43 = vpop.xlane.xlu0 %2995 }
 0xc0e   : > { %v3022_v32 = vsub.f32 %v7794_v3, %v2996_v43 }
 0xc10   : > { %v3048_v24 = vmul.f32 1.442695, %v3022_v32 }
 0xc11   : > { %v2990_v52 = vpop.xlane.xlu0 %2989 }
 0xc12   : > { %6030 = vpow2.f32 %v3048_v24  ;;  %v3020_v29 = vsub.f32 %v7796_v18, %v2990_v52 }
 0xc14   : > { %v3044_v12 = vmul.f32 1.442695, %v3020_v29 }
 0xc15   : > { %v3155_v50 = vpop.permute.xlu0 %3154 }
 0xc16   : > { %6032 = vpow2.f32 %v3044_v12  ;;  %5371 = vmatprep.subr.bf16.mxu0 %v3155_v50 }
 0xc17   : > { %5372 = vmatpush3.bf16.msra.mxu0 %v3155_v50 }
 0xc1f   : > { %v7863_v31 = vpop.eup %6030 }
 0xc20   : > { %v3090_v63 = vsel %vm1199_vm1, %v7863_v31, 0.0 }
 0xc21   : > { %3091 = vadd.xlane.f32.xlu0 %v3090_v63 }
 0xc23   : > { %v7867_v38 = vpop.eup %6032 }
 0xc24   : > { %v3084_v3 = vsel %vm1199_vm1, %v7867_v38, 0.0 }
 0xc25   : > { %3085 = vadd.xlane.f32.xlu0 %v3084_v3 }
 0xc46   : > { %v3008_v44 = vpop.xlane.xlu0 %3007 }
 0xc47   : > { %v3026_v29 = vsub.f32 %v7804_v54, %v3008_v44 }
 0xc49   : > { %v3056_v47 = vmul.f32 1.442695, %v3026_v29 }
 0xc4a   : > { %v3002_v59 = vpop.xlane.xlu0 %3001 }
 0xc4b   : > { %v3024_v3 = vsub.f32 %v7806_v1, %v3002_v59 }
 0xc4e   : > { %v3151_v18 = vpop.permute.xlu0 %3150 }
 0xc52   : > { %v3149_v27 = vpop.permute.xlu0 %3148 }
 0xc56   : > { %v3244_v23 = vpop.permute.xlu0 %3243 }
 0xc57   : > { %5387 = vmatprep.subr.bf16.mxu1 %v3244_v23 }
 0xc58   : > { %5388 = vmatpush3.bf16.msra.mxu1 %v3244_v23  ;;  %v3052_v23 = vmul.f32 1.442695, %v3024_v3 }
 0xc60   : > { %v3074_v41 = vpop.xlane.xlu1 %3073 }
 0xc65   : > { %v3077_v60 = vpop.xlane.xlu1 %3076 }
 0xc69   : > { %v3080_v43 = vpop.xlane.xlu1 %3079 }
 0xc6d   : > { %v3083_v32 = vpop.xlane.xlu1 %3082 }
 0xc71   : > { %v2999_v24 = vpop.xlane.xlu1 %2998 }
 0xc72   : > { %v3023_v52 = vsub.f32 %v2959_v37, %v2999_v24 }
 0xc74   : > { %v3050_v12 = vmul.f32 1.442695, %v3023_v52 }
 0xc75   : > { %v2993_v50 = vpop.xlane.xlu1 %2992 }
 0xc76   : > { %6034 = vpow2.f32 %v3050_v12  ;;  %v3021_v63 = vsub.f32 %v2957_v25, %v2993_v50 }
 0xc77   : > { %6036 = vrcp.f32 %v3077_v60 }
 0xc78   : > { %v3046_v15 = vmul.f32 1.442695, %v3021_v63 }
 0xc79   : > { %v3011_v22 = vpop.xlane.xlu1 %3010 }
 0xc7a   : > { %6038 = vpow2.f32 %v3046_v15  ;;  %v3027_v30 = vsub.f32 %v7845_v28, %v3011_v22 }
 0xc7b   : > { %6040 = vrcp.f32 %v3074_v41 }
 0xc7c   : > { %6042 = vpow2.f32 %v3056_v47  ;;  %v3058_v54 = vmul.f32 1.442695, %v3027_v30 }
 0xc7d   : > { %v3005_v10 = vpop.xlane.xlu1 %3004  ;;  %6044 = vpow2.f32 %v3052_v23 }
 0xc7e   : > { %6046 = vrcp.f32 %v3083_v32  ;;  %v3025_v37 = vsub.f32 %v7852_v61, %v3005_v10  ;;  %v8493_v32 = vpack.c.bf16 %v7843_v53, %v7840_v13 }
 0xc7f   : > { %6048 = vrcp.f32 %v3080_v43 }
 0xc80   : > { %6050 = vpow2.f32 %v3058_v54  ;;  %v3054_v25 = vmul.f32 1.442695, %v3025_v37 }
 0xc81   : > { %v3153_v44 = vpop.permute.xlu1 %3152 }
 0xc82   : > { %5373 = vmatprep.subr.bf16.mxu0 %v3153_v44  ;;  %6052 = vpow2.f32 %v3054_v25 }
 0xc83   : > { %v7875_v1 = vpop.eup %6034  ;;  %5374 = vmatpush3.bf16.msra.mxu0 %v3153_v44 }
 0xc84   : > { %5375 = vmatprep.subr.bf16.mxu0 %v3151_v18  ;;  %v3093_v15 = vsel %vm1199_vm1, %v7875_v1, 0.0  ;;  %v6037_v22 = vpop.eup %6036 }
 0xc85   : > { %3094 = vadd.xlane.f32.xlu0 %v3093_v15  ;;  %v3119_v61 = vmul.f32 %v6037_v22, %v7822_v0 }
 0xc87   : > { %v7879_v28 = vpop.eup %6038  ;;  %5376 = vmatpush3.bf16.msra.mxu0 %v3151_v18 }
 0xc88   : > { %v6041_v30 = vpop.eup %6040  ;;  %5377 = vmatprep.subr.bf16.mxu0 %v3149_v27  ;;  %v3087_v10 = vsel %vm1199_vm1, %v7879_v28, 0.0 }
 0xc89   : > { %v7883_v47 = vpop.eup %6042  ;;  %3088 = vadd.xlane.f32.xlu1 %v3087_v10  ;;  %v3117_v59 = vmul.f32 %v6041_v30, %v7816_v21 }
 0xc8a   : > { %v7887_v41 = vpop.eup %6044  ;;  %v3102_v60 = vsel %vm1199_vm1, %v7883_v47, 0.0 }
 0xc8b   : > { %5378 = vmatpush3.bf16.msra.mxu0 %v3149_v27  ;;  %v6047_v18 = vpop.eup %6046  ;;  %v3142_v43 = vpack.c.bf16 %v3119_v61, %v3117_v59  ;;  %v3096_v0 = vsel %vm1199_vm1, %v7887_v41, 0.0 }
 0xc8c   : > { %v6049_v24 = vpop.eup %6048  ;;  %v3123_v21 = vmul.f32 %v6047_v18, %v7832_v17  ;;  %v5600_v17 = vpack.i.bf16 %v7706_v51, %v7690_v49  ;;  %v5744_v49 = vld [vmem:[#allocation6 + $0x28] sm:$0xff]   ;;  %v5745_v51 = vld [vmem:[#allocation6 + $0x20] sm:$0xff]  }
 0xc8d   : > { %3103 = vadd.xlane.f32.xlu1 %v3102_v60  ;;  %v7899_v27 = vpop.eup %6050  ;;  %v3121_v52 = vmul.f32 %v6049_v24, %v7826_v33  ;;  %v5590_v33 = vpack.i.bf16 %v7413_v57, %v7396_v19  ;;  %v5742_v19 = vld [vmem:[#allocation6 + $0x38] sm:$0xff]   ;;  %v5743_v57 = vld [vmem:[#allocation6 + $0x30] sm:$0xff]  }
 0xc8e   : > { %5380 = vmatmul.mubr.msk.bf16.vlgmr.msra.gmra.mxu0 %vm1199_vm1, %v8493_v32  ;;  %v3105_v29 = vsel %vm1199_vm1, %v7899_v27, 0.0  ;;  %5403 = vmatprep.subr.bf16.mxu0 %v5742_v19 }
 0xc8f   : > { %5383 = vmatprep.mubr.msk.bf16.mxu0 %vm1199_vm1, %v3142_v43  ;;  %v3143_v12 = vpack.c.bf16 %v3123_v21, %v3121_v52  ;;  %v7904_v13 = vpop.eup %6052  ;;  %5404 = vmatpush3.bf16.msra.mxu0 %v5742_v19 }
 0xc90   : > { %v3099_v53 = vsel %vm1199_vm1, %v7904_v13, 0.0  ;;  %5405 = vmatprep.subr.bf16.mxu0 %v5743_v57 }
 0xc91   : > { %3097 = vadd.xlane.f32.xlu1 %v3096_v0 }
 0xc93   : > { %5406 = vmatpush3.bf16.msra.mxu0 %v5743_v57 }
 0xc94   : > { %5407 = vmatprep.subr.bf16.mxu0 %v5744_v49 }
 0xc95   : > { %3106 = vadd.xlane.f32.xlu1 %v3105_v29 }
 0xc96   : > { %5384 = vmatmul.mubr.msk.bf16.gmra.mxu0 %vm1199_vm1, %v3143_v12 }
 0xc97   : > { %5408 = vmatpush3.bf16.msra.mxu0 %v5744_v49  ;;  %v8497_v49 = vpack.i.bf16 %v7419_v5, %v7415_v26  ;;  %v8502_v5 = vpack.i.bf16 %v7464_v35, %v7458_v34 }
 0xc98   : > { %5409 = vmatprep.subr.bf16.mxu0 %v5745_v51 }
 0xc99   : > { %3100 = vadd.xlane.f32.xlu1 %v3099_v53 }
 0xc9b   : > { %3239 = vrot.lane.b32.xlu0 %v6728_v4, %s6308_s28  ;;  %v8494_v4 = vpack.i.bf16 %v7398_v7, %v7394_v39  ;;  %5410 = vmatpush3.bf16.msra.mxu0 %v5745_v51  ;;  %v5747_v39 = vld [vmem:[#allocation6 + $0x10] sm:$0xff]  }
 0xc9f   : > { %3237 = vrot.lane.b32.xlu0 %v6735_v55, %s6308_s28  ;;  %v8495_v55 = vpack.i.bf16 %v7692_v62, %v7688_v46 }
 0xca3   : > { %5591 = vrot.lane.b32.xlu0 %v5590_v33, %s6308_s28  ;;  %v5748_v33 = vld [vmem:[#allocation6 + $0x8] sm:$0xff]  }
 0xca7   : > { %5601 = vrot.lane.b32.xlu0 %v5600_v17, %s6307_s27 }
 0xcaa   : > { %3241 = vrot.lane.b32.xlu1 %v6757_v9, %s6308_s28  ;;  %v5746_v9 = vld [vmem:[#allocation6 + $0x18] sm:$0xff]   ;;  %v3092_v7 = vpop.xlane.xlu0 %3091 }
 0xcab   : > { %5411 = vmatprep.subr.bf16.mxu0 %v5746_v9 }
 0xcac   : > { %5412 = vmatpush3.bf16.msra.mxu0 %v5746_v9  ;;  %v8498_v9 = vpack.i.bf16 %v7423_v8, %v7417_v2  ;;  %v8501_v2 = vpack.i.bf16 %v7460_v48, %v7456_v11  ;;  %v8503_v8 = vpack.i.bf16 %v7758_v58, %v7754_v6 }
 0xcad   : > { %5413 = vmatprep.subr.bf16.mxu0 %v5747_v39 }
 0xcae   : > { %5596 = vrot.lane.b32.xlu1 %v8494_v4, %s6308_s28  ;;  %v3086_v46 = vpop.xlane.xlu0 %3085 }
 0xcaf   : > { %6054 = vrcp.f32 %v3086_v46 }
 0xcb0   : > { %5414 = vmatpush3.bf16.msra.mxu0 %v5747_v39  ;;  %v8499_v39 = vpack.i.bf16 %v7712_v36, %v7708_v40  ;;  %v8504_v40 = vpack.i.bf16 %v7762_v20, %v7756_v42 }
 0xcb1   : > { %5415 = vmatprep.subr.bf16.mxu0 %v5748_v33 }
 0xcb2   : > { %5606 = vrot.lane.b32.xlu1 %v8495_v55, %s6307_s27 }
 0xcb4   : > { %5416 = vmatpush3.bf16.msra.mxu0 %v5748_v33 }
 0xcbc   : > { %v6055_v23 = vpop.eup %6054 }
 0xcbd   : > { %v3125_v44 = vmul.f32 %v6055_v23, %v7867_v38 }
 0xd0e   : > { %v3095_v63 = vpop.xlane.xlu0 %3094 }
 0xd12   : > { %v3089_v62 = vpop.xlane.xlu1 %3088  ;;  %v3240_v30 = vpop.permute.xlu0 %3239 }
 0xd13   : > { %6056 = vrcp.f32 %v3089_v62  ;;  %v8500_v62 = vpack.i.bf16 %v7716_v16, %v7710_v14 }
 0xd14   : > { %6058 = vrcp.f32 %v3095_v63 }
 0xd15   : > { %6060 = vrcp.f32 %v3092_v7 }
 0xd16   : > { %v3104_v50 = vpop.xlane.xlu1 %3103  ;;  %v3238_v60 = vpop.permute.xlu0 %3237 }
 0xd1a   : > { %v3098_v3 = vpop.xlane.xlu1 %3097  ;;  %v5592_v36 = vpop.permute.xlu0 %5591 }
 0xd1b   : > { %6062 = vrcp.f32 %v3098_v3  ;;  %v5594_v48 = vunpack.i.h.bf16 %v5592_v36 }
 0xd1d   : > { %v3519_v42 = vsel %vm1004_vm0, %v7220_v56, %v5594_v48 }
 0xd1e   : > { %v3107_v54 = vpop.xlane.xlu1 %3106  ;;  %v5602_v11 = vpop.permute.xlu0 %5601 }
 0xd1f   : > { %v5604_v23 = vunpack.i.h.bf16 %v5602_v11 }
 0xd20   : > { %v6057_v37 = vpop.eup %6056 }
 0xd21   : > { %v3127_v25 = vmul.f32 %v6057_v37, %v7879_v28  ;;  %v6059_v61 = vpop.eup %6058  ;;  %v3535_v56 = vsel %vm1199_vm1, %v3519_v42, %v5604_v23  ;;  %v8511_v42 = vld [vmem:[#allocation30_spill] sm:$0xff] }
 0xd22   : > { %v3101_v15 = vpop.xlane.xlu1 %3100  ;;  %v6061_v59 = vpop.eup %6060  ;;  %v3131_v38 = vmul.f32 %v6059_v61, %v7875_v1 }
 0xd23   : > { %6064 = vrcp.f32 %v3101_v15  ;;  %v3144_v22 = vpack.c.bf16 %v3127_v25, %v3125_v44  ;;  %v3129_v18 = vmul.f32 %v6061_v59, %v7863_v31  ;;  %v8496_v31 = vmov 0   ;;  %v8505_v44 = vld [vmem:[#allocation15_spill] sm:$0xff]  ;;  %v8506_v15 = vld [vmem:[#allocation14_spill] sm:$0xff] }
 0xd24   : > { %6066 = vrcp.f32 %v3107_v54  ;;  %v5603_v54 = vunpack.i.l.bf16 %v5602_v11 }
 0xd25   : > { %5395 = vmatprep.mubr.msk.bf16.mxu1 %vm1199_vm1, %v3144_v22  ;;  %6068 = vrcp.f32 %v3104_v50  ;;  %v3145_v32 = vpack.c.bf16 %v3131_v38, %v3129_v18  ;;  %v5593_v50 = vunpack.i.l.bf16 %v5592_v36 }
 0xd26   : > { %v3242_v10 = vpop.permute.xlu1 %3241 }
 0xd27   : > { %5389 = vmatprep.subr.bf16.mxu1 %v3242_v10  ;;  %v3518_v20 = vsel %vm1004_vm0, %v7210_v45, %v5593_v50 }
 0xd28   : > { %5390 = vmatpush3.bf16.msra.mxu1 %v3242_v10  ;;  %v6063_v28 = vpop.eup %6062  ;;  %v3534_v38 = vsel %vm1199_vm1, %v3518_v20, %v5603_v54  ;;  %v8512_v20 = vld [vmem:[#allocation28_spill] sm:$0xff] }
 0xd29   : > { %5391 = vmatprep.subr.bf16.mxu1 %v3240_v30  ;;  %v3133_v24 = vmul.f32 %v6063_v28, %v7887_v41  ;;  %v5749_v41 = vld [vmem:[#allocation6] sm:$0xff]  }
 0xd2a   : > { %5417 = vmatprep.subr.bf16.mxu0 %v5749_v41  ;;  %v5597_v14 = vpop.permute.xlu1 %5596 }
 0xd2b   : > { %5418 = vmatpush3.bf16.msra.mxu0 %v5749_v41  ;;  %v5599_v63 = vunpack.i.h.bf16 %v5597_v14  ;;  %v5598_v3 = vunpack.i.l.bf16 %v5597_v14 }
 0xd2c   : > { %5392 = vmatpush3.bf16.msra.mxu1 %v3240_v30 }
 0xd2d   : > { %5393 = vmatprep.subr.bf16.mxu1 %v3238_v60  ;;  %v3521_v25 = vsel %vm1004_vm0, %v8505_v44, %v5599_v63  ;;  %v3520_v22 = vsel %vm1004_vm0, %v8506_v15, %v5598_v3  ;;  %v8513_v44 = vpack.i.bf16 %v8511_v42, %v8512_v20  ;;  %v8514_v15 = vld [vmem:[#allocation31_spill] sm:$0xff] }
 0xd2e   : > { %v5607_v16 = vpop.permute.xlu1 %5606 }
 0xd2f   : > { %v5609_v34 = vunpack.i.h.bf16 %v5607_v16  ;;  %v5608_v35 = vunpack.i.l.bf16 %v5607_v16 }
 0xd30   : > { %v6065_v43 = vpop.eup %6064  ;;  %5394 = vmatpush3.bf16.msra.mxu1 %v3238_v60 }
 0xd31   : > { %v3135_v0 = vmul.f32 %v6065_v43, %v7904_v13  ;;  %v6067_v21 = vpop.eup %6066  ;;  %v3536_v10 = vsel %vm1199_vm1, %v3520_v22, %v5608_v35  ;;  %v3537_v61 = vsel %vm1199_vm1, %v3521_v25, %v5609_v34  ;;  %v8515_v22 = vld [vmem:[#allocation29_spill] sm:$0xff] }
 0xd32   : > { %v6069_v29 = vpop.eup %6068  ;;  %v3139_v1 = vmul.f32 %v6067_v21, %v7899_v27 }
 0xd33   : > { %5396 = vmatmul.mubr.msk.bf16.vlgmr.msra.gmra.mxu1 %vm1199_vm1, %v3145_v32  ;;  %v3146_v52 = vpack.c.bf16 %v3135_v0, %v3133_v24  ;;  %v3137_v12 = vmul.f32 %v6069_v29, %v7883_v47 }
 0xd35   : > { %5399 = vmatprep.mubr.msk.bf16.mxu1 %vm1199_vm1, %v3146_v52  ;;  %v3147_v53 = vpack.c.bf16 %v3139_v1, %v3137_v12 }
 0xd3b   : > { %5400 = vmatmul.mubr.msk.bf16.gmra.mxu1 %vm1199_vm1, %v3147_v53 }
 0xd3c   : > { %4209 = vmatprep.mubr.bf16.mxu1 %v8496_v31 }
 0xd4e   : > { %v5381_v13 = vpop.f32.mrf.mxu0 }
 0xd50   : > { %v3206_v17 = vpop.f32.mrf.mxu0 }
 0xd52   : > { %v5382_v4 = vpop.f32.mrf.mxu0 }
 0xd53   : > { %v5615_v55 = vpack.i.bf16 %v5382_v4, %v5381_v13 }
 0xd54   : > { %v3209_v19 = vpop.f32.mrf.mxu0 }
 0xd55   : > { %v5610_v57 = vpack.i.bf16 %v3209_v19, %v3206_v17  ;;  %5616 = vrot.lane.b32.xlu1 %v5615_v55, %s6306_s26 }
 0xd56   : > { %v5385_v47 = vpop.f32.mrf.mxu0 }
 0xd57   : > { %5611 = vrot.lane.b32.xlu0 %v5610_v57, %s6306_s26 }
 0xd58   : > { %v3222_v27 = vpop.f32.mrf.mxu0 }
 0xd59   : > { %5626 = vrot.lane.b32.xlu1 %v8497_v49, %s6308_s28  ;;  %v8508_v49 = vld [vmem:[#allocation16_spill] sm:$0xff] }
 0xd5a   : > { %v5386_v51 = vpop.f32.mrf.mxu0 }
 0xd5b   : > { %5621 = vrot.lane.b32.xlu0 %v8498_v9, %s6308_s28  ;;  %v5645_v46 = vpack.i.bf16 %v5386_v51, %v5385_v47  ;;  %v8507_v47 = vld [vmem:[#allocation18_spill] sm:$0xff]  ;;  %v8509_v9 = vld [vmem:[#allocation19_spill] sm:$0xff] }
 0xd5c   : > { %v3225_v7 = vpop.f32.mrf.mxu0 }
 0xd5d   : > { %5636 = vrot.lane.b32.xlu1 %v8499_v39, %s6307_s27  ;;  %v5640_v26 = vpack.i.bf16 %v3225_v7, %v3222_v27  ;;  %v8510_v7 = vld [vmem:[#allocation17_spill] sm:$0xff] }
 0xd5f   : > { %5631 = vrot.lane.b32.xlu0 %v8500_v62, %s6307_s27 }
 0xd61   : > { %5646 = vrot.lane.b32.xlu1 %v5645_v46, %s6306_s26 }
 0xd63   : > { %5641 = vrot.lane.b32.xlu0 %v5640_v26, %s6306_s26 }
 0xd65   : > { %5656 = vrot.lane.b32.xlu1 %v8501_v2, %s6308_s28 }
 0xd67   : > { %5651 = vrot.lane.b32.xlu0 %v8502_v5, %s6308_s28 }
 0xd69   : > { %5666 = vrot.lane.b32.xlu1 %v8503_v8, %s6307_s27 }
 0xd6b   : > { %5661 = vrot.lane.b32.xlu0 %v8504_v40, %s6307_s27 }
 0xdc7   : > { %v5617_v37 = vpop.permute.xlu1 %5616 }
 0xdc8   : > { %v5619_v6 = vunpack.i.h.bf16 %v5617_v37  ;;  %v5618_v58 = vunpack.i.l.bf16 %v5617_v37 }
 0xdc9   : > { %v5612_v30 = vpop.permute.xlu0 %5611 }
 0xdca   : > { %v5614_v59 = vunpack.i.h.bf16 %v5612_v30  ;;  %v5613_v60 = vunpack.i.l.bf16 %v5612_v30  ;;  %v3554_v28 = vsel %vm3550_vm2, %v3537_v61, %v5619_v6  ;;  %v3553_v45 = vsel %vm3550_vm2, %v3536_v10, %v5618_v58  ;;  %v8517_v10 = vld [vmem:[#allocation34_spill] sm:$0xff]  ;;  %v8518_v61 = vld [vmem:[#allocation32_spill] sm:$0xff] }
 0xdcb   : > { %v5627_v18 = vpop.permute.xlu1 %5626  ;;  %v3568_v21 = vpack.c.bf16 %v3554_v28, %v3553_v45  ;;  %v8516_v30 = vpack.i.bf16 %v8514_v15, %v8515_v22  ;;  %v8521_v28 = vld [vmem:[#allocation33_spill] sm:$0xff]  ;;  %v8527_v15 = vld [vmem:[#allocation26_spill] sm:$0xff] }
 0xdcc   : > { %v3551_v43 = vsel %vm3550_vm2, %v3534_v38, %v5613_v60  ;;  %v3552_v32 = vsel %vm3550_vm2, %v3535_v56, %v5614_v59  ;;  %v5629_v29 = vunpack.i.h.bf16 %v5627_v18  ;;  %v5628_v1 = vunpack.i.l.bf16 %v5627_v18  ;;  %v8520_v56 = vld [vmem:[#allocation35_spill] sm:$0xff] }
 0xdcd   : > { %v5622_v24 = vpop.permute.xlu0 %5621  ;;  %v3567_v0 = vpack.c.bf16 %v3552_v32, %v3551_v43  ;;  %v8519_v59 = vpack.i.bf16 %v8517_v10, %v8518_v61  ;;  %v8522_v45 = vpack.i.bf16 %v8520_v56, %v8521_v28  ;;  %v8529_v61 = vld [vmem:[#allocation27_spill] sm:$0xff] }
 0xdce   : > { %v5624_v12 = vunpack.i.h.bf16 %v5622_v24  ;;  %v5623_v53 = vunpack.i.l.bf16 %v5622_v24  ;;  %v3525_v27 = vsel %vm1004_vm0, %v8507_v47, %v5629_v29  ;;  %v3524_v51 = vsel %vm1004_vm0, %v8508_v49, %v5628_v1 }
 0xdcf   : > { %v5637_v52 = vpop.permute.xlu1 %5636  ;;  %5419 = vmatprep.mubr.bf16.mxu0 %v3567_v0 }
 0xdd0   : > { %5420 = vmatmul.mubr.bf16.vlgmr.msra.gmra.mxu0 %v3568_v21  ;;  %v5639_v41 = vunpack.i.h.bf16 %v5637_v52  ;;  %v5638_v13 = vunpack.i.l.bf16 %v5637_v52  ;;  %v3523_v39 = vsel %vm1004_vm0, %v8509_v9, %v5624_v12  ;;  %v3522_v46 = vsel %vm1004_vm0, %v8510_v7, %v5623_v53 }
 0xdd1   : > { %v5632_v33 = vpop.permute.xlu0 %5631 }
 0xdd2   : > { %v5634_v17 = vunpack.i.h.bf16 %v5632_v33  ;;  %v5633_v4 = vunpack.i.l.bf16 %v5632_v33  ;;  %v3540_v26 = vsel %vm1199_vm1, %v3524_v51, %v5638_v13  ;;  %v3541_v2 = vsel %vm1199_vm1, %v3525_v27, %v5639_v41  ;;  %v8525_v27 = vld [vmem:[#allocation23_spill] sm:$0xff]  ;;  %v8526_v51 = vld [vmem:[#allocation21_spill] sm:$0xff] }
 0xdd3   : > { %v5647_v55 = vpop.permute.xlu1 %5646 }
 0xdd4   : > { %v5649_v19 = vunpack.i.h.bf16 %v5647_v55  ;;  %v5648_v57 = vunpack.i.l.bf16 %v5647_v55  ;;  %v3538_v40 = vsel %vm1199_vm1, %v3522_v46, %v5633_v4  ;;  %v3539_v14 = vsel %vm1199_vm1, %v3523_v39, %v5634_v17  ;;  %v8523_v55 = vld [vmem:[#allocation22_spill] sm:$0xff] }
 0xdd5   : > { %v5642_v62 = vpop.permute.xlu0 %5641 }
 0xdd6   : > { %v5644_v5 = vunpack.i.h.bf16 %v5642_v62  ;;  %v5643_v8 = vunpack.i.l.bf16 %v5642_v62  ;;  %v3557_v36 = vsel %vm3550_vm2, %v3540_v26, %v5648_v57  ;;  %v3558_v16 = vsel %vm3550_vm2, %v3541_v2, %v5649_v19  ;;  %v8524_v57 = vld [vmem:[#allocation20_spill] sm:$0xff] }
 0xdd7   : > { %v3570_v63 = vpack.c.bf16 %v3558_v16, %v3557_v36  ;;  %v5657_v43 = vpop.permute.xlu1 %5656 }
 0xdd8   : > { %v3555_v11 = vsel %vm3550_vm2, %v3538_v40, %v5643_v8  ;;  %v3556_v48 = vsel %vm3550_vm2, %v3539_v14, %v5644_v5  ;;  %v5659_v21 = vunpack.i.h.bf16 %v5657_v43  ;;  %v5658_v52 = vunpack.i.l.bf16 %v5657_v43 }
 0xdd9   : > { %v3569_v50 = vpack.c.bf16 %v3556_v48, %v3555_v11  ;;  %v5652_v32 = vpop.permute.xlu0 %5651 }
 0xdda   : > { %v5654_v29 = vunpack.i.h.bf16 %v5652_v32  ;;  %v5653_v1 = vunpack.i.l.bf16 %v5652_v32  ;;  %v3529_v19 = vsel %vm1004_vm0, %v8523_v55, %v5659_v21  ;;  %v3528_v47 = vsel %vm1004_vm0, %v8524_v57, %v5658_v52  ;;  %v6103_v57 = vld [vmem:[%s6474_s16] sm:$0xff] }
 0xddb   : > { %5423 = vmatprep.mubr.bf16.mxu0 %v3569_v50  ;;  %v5667_v24 = vpop.permute.xlu1 %5666 }
 0xddc   : > { %5424 = vmatmul.mubr.bf16.gmra.mxu0 %v3570_v63  ;;  %v5669_v12 = vunpack.i.h.bf16 %v5667_v24  ;;  %v5668_v53 = vunpack.i.l.bf16 %v5667_v24  ;;  %v3527_v49 = vsel %vm1004_vm0, %v8525_v27, %v5654_v29  ;;  %v3526_v9 = vsel %vm1004_vm0, %v8526_v51, %v5653_v1  ;;  %v6104_v51 = vld [vmem:[%s6474_s16 + $0x18] sm:$0xff] }
 0xddd   : > { %v5662_v0 = vpop.permute.xlu0 %5661 }
 0xdde   : > { %v5664_v33 = vunpack.i.h.bf16 %v5662_v0  ;;  %v5663_v41 = vunpack.i.l.bf16 %v5662_v0  ;;  %v3544_v7 = vsel %vm1199_vm1, %v3528_v47, %v5668_v53  ;;  %v3545_v46 = vsel %vm1199_vm1, %v3529_v19, %v5669_v12  ;;  %v8066_v53 = vld [vmem:[#allocation9 + $0x7] ss:$0 sm:$0xff] }
 0xde0   : > { %v3542_v2 = vsel %vm1199_vm1, %v3526_v9, %v5663_v41  ;;  %v3543_v5 = vsel %vm1199_vm1, %v3527_v49, %v5664_v33 }
 0xdf3   : > { %v5397_v3 = vpop.f32.mrf.mxu1 }
 0xdf5   : > { %v3295_v34 = vpop.f32.mrf.mxu1 }
 0xdf7   : > { %v5398_v35 = vpop.f32.mrf.mxu1 }
 0xdf8   : > { %v5675_v23 = vpack.i.bf16 %v5398_v35, %v5397_v3 }
 0xdf9   : > { %v3298_v54 = vpop.f32.mrf.mxu1 }
 0xdfa   : > { %v5670_v37 = vpack.i.bf16 %v3298_v54, %v3295_v34  ;;  %5676 = vrot.lane.b32.xlu1 %v5675_v23, %s6306_s26 }
 0xdfb   : > { %v5401_v6 = vpop.f32.mrf.mxu1 }
 0xdfc   : > { %5671 = vrot.lane.b32.xlu0 %v5670_v37, %s6306_s26 }
 0xdfd   : > { %v3311_v58 = vpop.f32.mrf.mxu1 }
 0xdfe   : > { %5686 = vrot.lane.b32.xlu1 %v8513_v44, %s6308_s28 }
 0xdff   : > { %v5402_v25 = vpop.f32.mrf.mxu1 }
 0xe00   : > { %5681 = vrot.lane.b32.xlu0 %v8516_v30, %s6308_s28  ;;  %v5705_v38 = vpack.i.bf16 %v5402_v25, %v5401_v6  ;;  %v8528_v30 = vld [vmem:[#allocation24_spill] sm:$0xff] }
 0xe01   : > { %v3314_v60 = vpop.f32.mrf.mxu1 }
 0xe02   : > { %5696 = vrot.lane.b32.xlu1 %v8519_v59, %s6307_s27  ;;  %v5700_v18 = vpack.i.bf16 %v3314_v60, %v3311_v58  ;;  %v8530_v60 = vld [vmem:[#allocation25_spill] sm:$0xff] }
 0xe04   : > { %5691 = vrot.lane.b32.xlu0 %v8522_v45, %s6307_s27 }
 0xe06   : > { %5706 = vrot.lane.b32.xlu1 %v5705_v38, %s6306_s26 }
 0xe08   : > { %5701 = vrot.lane.b32.xlu0 %v5700_v18, %s6306_s26 }
 0xe6c   : > { %v5677_v13 = vpop.permute.xlu1 %5676 }
 0xe6d   : > { %v5679_v17 = vunpack.i.h.bf16 %v5677_v13  ;;  %v5678_v4 = vunpack.i.l.bf16 %v5677_v13 }
 0xe6e   : > { %v5672_v39 = vpop.permute.xlu0 %5671 }
 0xe6f   : > { %v5674_v62 = vunpack.i.h.bf16 %v5672_v39  ;;  %v5673_v26 = vunpack.i.l.bf16 %v5672_v39  ;;  %v3561_v40 = vsel %vm3550_vm2, %v3544_v7, %v5678_v4  ;;  %v3562_v14 = vsel %vm3550_vm2, %v3545_v46, %v5679_v17  ;;  %v6102_v17 = vld [vmem:[%s6474_s16 + $0x10] sm:$0xff]  ;;  %v6105_v7 = vld [vmem:[%s6474_s16 + $0x8] sm:$0xff] }
 0xe70   : > { %v5687_v8 = vpop.permute.xlu1 %5686  ;;  %v3572_v50 = vpack.c.bf16 %v3562_v14, %v3561_v40 }
 0xe71   : > { %v3559_v36 = vsel %vm3550_vm2, %v3542_v2, %v5673_v26  ;;  %v3560_v16 = vsel %vm3550_vm2, %v3543_v5, %v5674_v62  ;;  %v5689_v3 = vunpack.i.h.bf16 %v5687_v8  ;;  %v5688_v34 = vunpack.i.l.bf16 %v5687_v8  ;;  %v6106_v5 = vld [vmem:[%s6474_s16 + $0x30] sm:$0xff] }
 0xe72   : > { %v5682_v11 = vpop.permute.xlu0 %5681  ;;  %v3571_v48 = vpack.c.bf16 %v3560_v16, %v3559_v36  ;;  %v6107_v36 = vld [vmem:[%s6474_s16 + $0x20] sm:$0xff] }
 0xe73   : > { %v5684_v35 = vunpack.i.h.bf16 %v5682_v11  ;;  %v5683_v23 = vunpack.i.l.bf16 %v5682_v11  ;;  %v3533_v22 = vsel %vm1004_vm0, %v8527_v15, %v5689_v3  ;;  %v3532_v10 = vsel %vm1004_vm0, %v8528_v30, %v5688_v34  ;;  %v6109_v34 = vld [vmem:[%s6474_s16 + $0x28] sm:$0xff] }
 0xe74   : > { %v5697_v63 = vpop.permute.xlu1 %5696  ;;  %5427 = vmatprep.mubr.bf16.mxu0 %v3571_v48 }
 0xe75   : > { %5428 = vmatmul.mubr.bf16.gmra.mxu0 %v3572_v50  ;;  %v5699_v37 = vunpack.i.h.bf16 %v5697_v63  ;;  %v5698_v6 = vunpack.i.l.bf16 %v5697_v63  ;;  %v3531_v59 = vsel %vm1004_vm0, %v8529_v61, %v5684_v35  ;;  %v3530_v38 = vsel %vm1004_vm0, %v8530_v60, %v5683_v23  ;;  %v6108_v50 = vld [vmem:[%s6474_s16 + $0x38] sm:$0xff] }
 0xe76   : > { %v5692_v54 = vpop.permute.xlu0 %5691 }
 0xe77   : > { %v5694_v58 = vunpack.i.h.bf16 %v5692_v54  ;;  %v5693_v42 = vunpack.i.l.bf16 %v5692_v54  ;;  %v3548_v28 = vsel %vm1199_vm1, %v3532_v10, %v5698_v6  ;;  %v3549_v45 = vsel %vm1199_vm1, %v3533_v22, %v5699_v37  ;;  %v6112_v10 = vld [vmem:[%s6474_s16 + $0x58] sm:$0xff] }
 0xe78   : > { %v5707_v20 = vpop.permute.xlu1 %5706 }
 0xe79   : > { %v5709_v44 = vunpack.i.h.bf16 %v5707_v20  ;;  %v5708_v25 = vunpack.i.l.bf16 %v5707_v20  ;;  %v3546_v32 = vsel %vm1199_vm1, %v3530_v38, %v5693_v42  ;;  %v3547_v24 = vsel %vm1199_vm1, %v3531_v59, %v5694_v58  ;;  %v6110_v58 = vld [vmem:[%s6474_s16 + $0x50] sm:$0xff]  ;;  %v6113_v38 = vld [vmem:[%s6474_s16 + $0x48] sm:$0xff] }
 0xe7a   : > { %v5702_v56 = vpop.permute.xlu0 %5701 }
 0xe7b   : > { %v5704_v18 = vunpack.i.h.bf16 %v5702_v56  ;;  %v5703_v43 = vunpack.i.l.bf16 %v5702_v56  ;;  %v3565_v0 = vsel %vm3550_vm2, %v3548_v28, %v5708_v25  ;;  %v3566_v21 = vsel %vm3550_vm2, %v3549_v45, %v5709_v44  ;;  %v6111_v25 = vld [vmem:[%s6474_s16 + $0x40] sm:$0xff] }
 0xe7c   : > { %v3574_v12 = vpack.c.bf16 %v3566_v21, %v3565_v0 }
 0xe7d   : > { %v3563_v52 = vsel %vm3550_vm2, %v3546_v32, %v5703_v43  ;;  %v3564_v29 = vsel %vm3550_vm2, %v3547_v24, %v5704_v18  ;;  %v6114_v32 = vld [vmem:[%s6474_s16 + $0x70] sm:$0xff] }
 0xe7e   : > { %v3573_v1 = vpack.c.bf16 %v3564_v29, %v3563_v52 }
 0xe80   : > { %5431 = vmatprep.mubr.bf16.mxu0 %v3573_v1  ;;  %v6115_v1 = vld [vmem:[%s6474_s16 + $0x60] sm:$0xff] }
 0xe81   : > { %5432 = vmatmul.mubr.bf16.gmra.mxu0 %v3574_v12 }
 0xe90   : > { %v5421_v33 = vpop.f32.mrf.mxu0 }
 0xe91   : > { %v3687_v41 = vadd.f32 %v5421_v33, %v8066_v53 }
 0xe92   : > { %v3678_v13 = vpop.f32.mrf.mxu0 }
 0xe93   : > { %v8076_v4 = vadd.f32 %v6102_v17, %v3687_v41  ;;  %v3679_v55 = vadd.f32 %v8066_v53, %v3678_v13  ;;  %v6116_v13 = vld [vmem:[%s6474_s16 + $0x78] sm:$0xff] }
 0xe94   : > { %v5422_v19 = vpop.f32.mrf.mxu0 }
 0xe95   : > { %3759 = vst [vmem:[%s8073_s18 + $0x10] sm:$0xff] %v8076_v4  ;;  %v8082_v47 = vadd.f32 %v6103_v57, %v3679_v55  ;;  %v3690_v27 = vadd.f32 %v5422_v19, %v8066_v53 }
 0xe96   : > { %v3681_v49 = vpop.f32.mrf.mxu0 }
 0xe97   : > { %3757 = vst [vmem:[%s8073_s18] sm:$0xff] %v8082_v47  ;;  %v8088_v9 = vadd.f32 %v6104_v51, %v3690_v27  ;;  %v3682_v39 = vadd.f32 %v8066_v53, %v3681_v49  ;;  %3773 = vadd.xlane.f32.xlu0 %v8082_v47  ;;  %v6117_v51 = vld [vmem:[%s6474_s16 + $0x68] sm:$0xff] }
 0xe99   : > { %3760 = vst [vmem:[%s8073_s18 + $0x18] sm:$0xff] %v8088_v9  ;;  %v8095_v46 = vadd.f32 %v6105_v7, %v3682_v39 }
 0xe9b   : > { %3758 = vst [vmem:[%s8073_s18 + $0x8] sm:$0xff] %v8095_v46  ;;  %3775 = vadd.xlane.f32.xlu1 %v8095_v46  ;;  %3777 = vadd.xlane.f32.xlu0 %v8076_v4 }
 0xe9c   : > { %v5425_v62 = vpop.f32.mrf.mxu0 }
 0xe9d   : > { %v3703_v26 = vadd.f32 %v5425_v62, %v8066_v53 }
 0xe9e   : > { %v3694_v2 = vpop.f32.mrf.mxu0 }
 0xe9f   : > { %v8103_v8 = vadd.f32 %v6106_v5, %v3703_v26  ;;  %v3695_v40 = vadd.f32 %v8066_v53, %v3694_v2  ;;  %3779 = vadd.xlane.f32.xlu0 %v8088_v9 }
 0xea0   : > { %v5426_v14 = vpop.f32.mrf.mxu0 }
 0xea1   : > { %3763 = vst [vmem:[%s8073_s18 + $0x30] sm:$0xff] %v8103_v8  ;;  %v8110_v16 = vadd.f32 %v6107_v36, %v3695_v40  ;;  %v3706_v11 = vadd.f32 %v5426_v14, %v8066_v53 }
 0xea2   : > { %v3697_v48 = vpop.f32.mrf.mxu0 }
 0xea3   : > { %3761 = vst [vmem:[%s8073_s18 + $0x20] sm:$0xff] %v8110_v16  ;;  %v8116_v63 = vadd.f32 %v6108_v50, %v3706_v11  ;;  %v3698_v3 = vadd.f32 %v8066_v53, %v3697_v48  ;;  %3781 = vadd.xlane.f32.xlu0 %v8110_v16 }
 0xea5   : > { %3764 = vst [vmem:[%s8073_s18 + $0x38] sm:$0xff] %v8116_v63  ;;  %v8123_v35 = vadd.f32 %v6109_v34, %v3698_v3 }
 0xea7   : > { %3762 = vst [vmem:[%s8073_s18 + $0x28] sm:$0xff] %v8123_v35  ;;  %3783 = vadd.xlane.f32.xlu1 %v8123_v35  ;;  %3785 = vadd.xlane.f32.xlu0 %v8103_v8 }
 0xeab   : > { %3787 = vadd.xlane.f32.xlu1 %v8116_v63 }
 0xf20   : > { %v3774_v37 = vpop.xlane.xlu0 %3773 }
 0xf21   : > { %v3805_v52 = vmul.f32 0.0078125, %v3774_v37 }
 0xf23   : > { %v8177_v27 = vsub.f32 %v8082_v47, %v3805_v52  ;;  %v5779_v52 = vld [vmem:[#allocation7 + $0x4] ss:$12 sps:$4 sm:$0xff]  }
 0xf24   : > { %v3778_v60 = vpop.xlane.xlu0 %3777  ;;  %v3776_v29 = vpop.xlane.xlu1 %3775 }
 0xf25   : > { %v3806_v19 = vmul.f32 0.0078125, %v3776_v29  ;;  %v3807_v49 = vmul.f32 0.0078125, %v3778_v60  ;;  %v3837_v2 = vmul.f32 %v8177_v27, %v8177_v27  ;;  %v5767_v60 = vld [vmem:[#allocation7 + $0x4c] ss:$12 sps:$4 sm:$0xff]  }
 0xf26   : > { %v5780_v29 = vld [vmem:[#allocation7 + $0x20] ss:$12 sps:$4 sm:$0xff]  }
 0xf27   : > { %v8192_v47 = vsub.f32 %v8076_v4, %v3807_v49 }
 0xf28   : > { %v3780_v18 = vpop.xlane.xlu0 %3779 }
 0xf29   : > { %v3808_v7 = vmul.f32 0.0078125, %v3780_v18  ;;  %v3839_v11 = vmul.f32 %v8192_v47, %v8192_v47  ;;  %v5772_v18 = vld [vmem:[#allocation7 + $0x50] ss:$12 sps:$4 sm:$0xff]  }
 0xf2b   : > { %v8198_v40 = vsub.f32 %v8088_v9, %v3808_v7 }
 0xf2c   : > { %v3782_v57 = vpop.xlane.xlu0 %3781 }
 0xf2d   : > { %v3809_v26 = vmul.f32 0.0078125, %v3782_v57  ;;  %v3840_v50 = vmul.f32 %v8198_v40, %v8198_v40 }
 0xf2f   : > { %v8203_v14 = vsub.f32 %v8110_v16, %v3809_v26 }
 0xf30   : > { %v3784_v62 = vpop.xlane.xlu1 %3783  ;;  %v3786_v5 = vpop.xlane.xlu0 %3785 }
 0xf31   : > { %v3810_v36 = vmul.f32 0.0078125, %v3784_v62  ;;  %v3811_v4 = vmul.f32 0.0078125, %v3786_v5  ;;  %v3841_v16 = vmul.f32 %v8203_v14, %v8203_v14 }
 0xf33   : > { %v8210_v9 = vsub.f32 %v8123_v35, %v3810_v36  ;;  %v8213_v3 = vsub.f32 %v8103_v8, %v3811_v4  ;;  %v5755_v8 = vld [vmem:[#allocation7 + $0x94] ss:$12 sps:$4 sm:$0xff]  }
 0xf34   : > { %v3788_v48 = vpop.xlane.xlu1 %3787 }
 0xf35   : > { %v5429_v23 = vpop.f32.mrf.mxu0  ;;  %v3812_v34 = vmul.f32 0.0078125, %v3788_v48  ;;  %v3843_v35 = vmul.f32 %v8213_v3, %v8213_v3 }
 0xf36   : > { %v3719_v54 = vadd.f32 %v5429_v23, %v8066_v53  ;;  %v5752_v23 = vld [vmem:[#allocation7 + $0xac] ss:$12 sps:$4 sm:$0xff]  }
 0xf37   : > { %v3710_v6 = vpop.f32.mrf.mxu0  ;;  %4177 = vmatprep.subr.bf16.mxu1 %v5752_v23  ;;  %v8218_v37 = vsub.f32 %v8116_v63, %v3812_v34  ;;  %v5759_v63 = vld [vmem:[#allocation7 + $0x7c] ss:$12 sps:$4 sm:$0xff]  }
 0xf38   : > { %v8132_v42 = vadd.f32 %v6110_v58, %v3719_v54  ;;  %v3711_v20 = vadd.f32 %v8066_v53, %v3710_v6  ;;  %v5750_v54 = vld [vmem:[#allocation7 + $0xa8] ss:$12 sps:$4 sm:$0xff]   ;;  %v3842_v6 = vmul.f32 %v8210_v9, %v8210_v9  ;;  %v5756_v58 = vld [vmem:[#allocation7 + $0xb0] ss:$12 sps:$4 sm:$0xff]  }
 0xf39   : > { %v5430_v44 = vpop.f32.mrf.mxu0  ;;  %4178 = vmatpush1.bf16.msra.mxu1 %v5750_v54  ;;  %5435 = vmatprep.subr.bf16.mxu0 %v5756_v58 }
 0xf3a   : > { %3767 = vst [vmem:[%s8073_s18 + $0x50] sm:$0xff] %v8132_v42  ;;  %v8138_v15 = vadd.f32 %v6111_v25, %v3711_v20  ;;  %v3722_v22 = vadd.f32 %v5430_v44, %v8066_v53  ;;  %v5753_v20 = vld [vmem:[#allocation7 + $0x90] ss:$12 sps:$4 sm:$0xff]   ;;  %4179 = vmatprep.subr.bf16.mxu1 %v5755_v8  ;;  %v3844_v44 = vmul.f32 %v8218_v37, %v8218_v37  ;;  %v5760_v25 = vld [vmem:[#allocation7 + $0x98] ss:$12 sps:$4 sm:$0xff]  }
 0xf3b   : > { %v3713_v30 = vpop.f32.mrf.mxu0  ;;  %5436 = vmatpush3.bf16.msra.mxu0 %v5756_v58 }
 0xf3c   : > { %3765 = vst [vmem:[%s8073_s18 + $0x40] sm:$0xff] %v8138_v15  ;;  %v8144_v61 = vadd.f32 %v6112_v10, %v3722_v22  ;;  %v3714_v59 = vadd.f32 %v8066_v53, %v3713_v30  ;;  %3789 = vadd.xlane.f32.xlu0 %v8138_v15  ;;  %v5757_v22 = vld [vmem:[#allocation7 + $0x78] ss:$12 sps:$4 sm:$0xff]   ;;  %5437 = vmatprep.subr.bf16.mxu0 %v5760_v25  ;;  %v5764_v10 = vld [vmem:[#allocation7 + $0x80] ss:$12 sps:$4 sm:$0xff]  }
 0xf3d   : > { %4180 = vmatpush1.bf16.msra.mxu1 %v5753_v20  ;;  %v5763_v30 = vld [vmem:[#allocation7 + $0x64] ss:$12 sps:$4 sm:$0xff]  }
 0xf3e   : > { %3768 = vst [vmem:[%s8073_s18 + $0x58] sm:$0xff] %v8144_v61  ;;  %v8151_v56 = vadd.f32 %v6113_v38, %v3714_v59  ;;  %4181 = vmatprep.subr.bf16.mxu1 %v5759_v63  ;;  %v5761_v59 = vld [vmem:[#allocation7 + $0x60] ss:$12 sps:$4 sm:$0xff]   ;;  %v5768_v38 = vld [vmem:[#allocation7 + $0x68] ss:$12 sps:$4 sm:$0xff]  }
 0xf3f   : > { %5438 = vmatpush3.bf16.msra.mxu0 %v5760_v25 }
 0xf40   : > { %3766 = vst [vmem:[%s8073_s18 + $0x48] sm:$0xff] %v8151_v56  ;;  %3791 = vadd.xlane.f32.xlu1 %v8151_v56  ;;  %3793 = vadd.xlane.f32.xlu0 %v8132_v42 }
 0xf41   : > { %v5433_v28 = vpop.f32.mrf.mxu0  ;;  %4182 = vmatpush1.bf16.msra.mxu1 %v5757_v22  ;;  %5439 = vmatprep.subr.bf16.mxu0 %v5764_v10 }
 0xf42   : > { %v3735_v45 = vadd.f32 %v5433_v28, %v8066_v53  ;;  %4183 = vmatprep.subr.bf16.mxu1 %v5763_v30  ;;  %v5765_v28 = vld [vmem:[#allocation7 + $0x48] ss:$12 sps:$4 sm:$0xff]  }
 0xf43   : > { %v3726_v43 = vpop.f32.mrf.mxu0  ;;  %5440 = vmatpush3.bf16.msra.mxu0 %v5764_v10 }
 0xf44   : > { %v8159_v24 = vadd.f32 %v6114_v32, %v3735_v45  ;;  %v3727_v0 = vadd.f32 %v8066_v53, %v3726_v43  ;;  %3795 = vadd.xlane.f32.xlu1 %v8144_v61  ;;  %5441 = vmatprep.subr.bf16.mxu0 %v5768_v38  ;;  %v5771_v45 = vld [vmem:[#allocation7 + $0x34] ss:$12 sps:$4 sm:$0xff]   ;;  %v5769_v43 = vld [vmem:[#allocation7 + $0x30] ss:$12 sps:$4 sm:$0xff]  }
 0xf45   : > { %v5434_v21 = vpop.f32.mrf.mxu0  ;;  %4184 = vmatpush1.bf16.msra.mxu1 %v5761_v59  ;;  %v5775_v32 = vld [vmem:[#allocation7 + $0x1c] ss:$12 sps:$4 sm:$0xff]  }
 0xf46   : > { %3771 = vst [vmem:[%s8073_s18 + $0x70] sm:$0xff] %v8159_v24  ;;  %v8166_v12 = vadd.f32 %v6115_v1, %v3727_v0  ;;  %v3738_v33 = vadd.f32 %v5434_v21, %v8066_v53  ;;  %4185 = vmatprep.subr.bf16.mxu1 %v5767_v60  ;;  %v5776_v0 = vld [vmem:[#allocation7 + $0x38] ss:$12 sps:$4 sm:$0xff]   ;;  %v5777_v1 = vld [vmem:[#allocation7] ss:$12 sps:$4 sm:$0xff]  }
 0xf47   : > { %v3729_v41 = vpop.f32.mrf.mxu0  ;;  %5442 = vmatpush3.bf16.msra.mxu0 %v5768_v38  ;;  %v5773_v21 = vld [vmem:[#allocation7 + $0x18] ss:$12 sps:$4 sm:$0xff]  }
 0xf48   : > { %3769 = vst [vmem:[%s8073_s18 + $0x60] sm:$0xff] %v8166_v12  ;;  %v8172_v17 = vadd.f32 %v6116_v13, %v3738_v33  ;;  %v3730_v55 = vadd.f32 %v8066_v53, %v3729_v41  ;;  %3797 = vadd.xlane.f32.xlu0 %v8166_v12  ;;  %v8189_v53 = vsub.f32 %v8095_v46, %v3806_v19  ;;  %v5781_v33 = vld [vmem:[#allocation7 + $0x8] ss:$12 sps:$4 sm:$0xff]  }
 0xf49   : > { %4186 = vmatpush1.bf16.msra.mxu1 %v5765_v28  ;;  %5443 = vmatprep.subr.bf16.mxu0 %v5772_v18 }
 0xf4a   : > { %3772 = vst [vmem:[%s8073_s18 + $0x78] sm:$0xff] %v8172_v17  ;;  %v8182_v39 = vadd.f32 %v6117_v51, %v3730_v55  ;;  %v3838_v46 = vmul.f32 %v8189_v53, %v8189_v53  ;;  %4187 = vmatprep.subr.bf16.mxu1 %v5771_v45 }
 0xf4b   : > { %5444 = vmatpush3.bf16.msra.mxu0 %v5772_v18 }
 0xf4c   : > { %3770 = vst [vmem:[%s8073_s18 + $0x68] sm:$0xff] %v8182_v39  ;;  %3799 = vadd.xlane.f32.xlu1 %v8182_v39  ;;  %3801 = vadd.xlane.f32.xlu0 %v8159_v24 }
 0xf4d   : > { %4188 = vmatpush1.bf16.msra.mxu1 %v5769_v43  ;;  %5445 = vmatprep.subr.bf16.mxu0 %v5776_v0 }
 0xf4e   : > { %4189 = vmatprep.subr.bf16.mxu1 %v5775_v32 }
 0xf4f   : > { %5446 = vmatpush3.bf16.msra.mxu0 %v5776_v0 }
 0xf50   : > { %3803 = vadd.xlane.f32.xlu1 %v8172_v17  ;;  %3853 = vadd.xlane.f32.xlu0 %v3837_v2 }
 0xf51   : > { %4190 = vmatpush1.bf16.msra.mxu1 %v5773_v21  ;;  %5447 = vmatprep.subr.bf16.mxu0 %v5780_v29 }
 0xf52   : > { %4191 = vmatprep.subr.bf16.mxu1 %v5779_v52 }
 0xf53   : > { %5448 = vmatpush3.bf16.msra.mxu0 %v5780_v29 }
 0xf54   : > { %3855 = vadd.xlane.f32.xlu1 %v3838_v46  ;;  %3857 = vadd.xlane.f32.xlu0 %v3839_v11 }
 0xf55   : > { %4192 = vmatpush1.bf16.msra.mxu1 %v5777_v1  ;;  %5449 = vmatprep.subr.bf16.mxu0 %v5781_v33 }
 0xf57   : > { %5450 = vmatpush3.bf16.msra.mxu0 %v5781_v33 }
 0xf58   : > { %3859 = vadd.xlane.f32.xlu1 %v3840_v50  ;;  %3861 = vadd.xlane.f32.xlu0 %v3841_v16 }
 0xf5c   : > { %3863 = vadd.xlane.f32.xlu1 %v3842_v6  ;;  %3865 = vadd.xlane.f32.xlu0 %v3843_v35 }
 0xf60   : > { %3867 = vadd.xlane.f32.xlu1 %v3844_v44 }
 0xfc5   : > { %v3790_v41 = vpop.xlane.xlu0 %3789 }
 0xfc6   : > { %v3813_v13 = vmul.f32 0.0078125, %v3790_v41 }
 0xfc8   : > { %v8227_v55 = vsub.f32 %v8138_v15, %v3813_v13 }
 0xfc9   : > { %v3792_v19 = vpop.xlane.xlu1 %3791  ;;  %v3794_v57 = vpop.xlane.xlu0 %3793 }
 0xfca   : > { %v3814_v49 = vmul.f32 0.0078125, %v3792_v19  ;;  %v3815_v51 = vmul.f32 0.0078125, %v3794_v57  ;;  %v3845_v7 = vmul.f32 %v8227_v55, %v8227_v55  ;;  %v8267_v57 = vld [vmem:[#allocation9 + $0xa] ss:$0 sm:$0xff] }
 0xfcc   : > { %v8232_v62 = vsub.f32 %v8151_v56, %v3814_v49  ;;  %v8235_v26 = vsub.f32 %v8132_v42, %v3815_v51  ;;  %3869 = vadd.xlane.f32.xlu0 %v3845_v7 }
 0xfcd   : > { %v3796_v2 = vpop.xlane.xlu1 %3795 }
 0xfce   : > { %v3816_v5 = vmul.f32 0.0078125, %v3796_v2  ;;  %v3846_v15 = vmul.f32 %v8232_v62, %v8232_v62  ;;  %v3847_v46 = vmul.f32 %v8235_v26, %v8235_v26 }
 0xfd0   : > { %v8242_v36 = vsub.f32 %v8144_v61, %v3816_v5  ;;  %3871 = vadd.xlane.f32.xlu1 %v3846_v15  ;;  %3873 = vadd.xlane.f32.xlu0 %v3847_v46  ;;  %v8272_v15 = vld [vmem:[#allocation9 + $0x3] ss:$0 sm:$0xff] }
 0xfd1   : > { %v3798_v4 = vpop.xlane.xlu0 %3797 }
 0xfd2   : > { %v3817_v56 = vmul.f32 0.0078125, %v3798_v4  ;;  %v3848_v42 = vmul.f32 %v8242_v36, %v8242_v36 }
 0xfd4   : > { %v8247_v11 = vsub.f32 %v8166_v12, %v3817_v56  ;;  %3875 = vadd.xlane.f32.xlu1 %v3848_v42 }
 0xfd5   : > { %v3800_v48 = vpop.xlane.xlu1 %3799  ;;  %v3802_v50 = vpop.xlane.xlu0 %3801 }
 0xfd6   : > { %v3818_v34 = vmul.f32 0.0078125, %v3800_v48  ;;  %v3819_v16 = vmul.f32 0.0078125, %v3802_v50  ;;  %v3849_v23 = vmul.f32 %v8247_v11, %v8247_v11 }
 0xfd8   : > { %v8252_v61 = vsub.f32 %v8182_v39, %v3818_v34  ;;  %v8255_v54 = vsub.f32 %v8159_v24, %v3819_v16  ;;  %3877 = vadd.xlane.f32.xlu0 %v3849_v23 }
 0xfd9   : > { %v3804_v6 = vpop.xlane.xlu1 %3803  ;;  %v3854_v35 = vpop.xlane.xlu0 %3853 }
 0xfda   : > { %v3820_v8 = vmul.f32 0.0078125, %v3804_v6  ;;  %v3885_v12 = vmul.f32 0.0078125, %v3854_v35  ;;  %v3850_v58 = vmul.f32 %v8252_v61, %v8252_v61  ;;  %v3851_v20 = vmul.f32 %v8255_v54, %v8255_v54 }
 0xfdc   : > { %v8262_v44 = vsub.f32 %v8172_v17, %v3820_v8  ;;  %v3901_v63 = vadd.f32 1e-05, %v3885_v12  ;;  %3879 = vadd.xlane.f32.xlu1 %v3850_v58  ;;  %3881 = vadd.xlane.f32.xlu0 %v3851_v20 }
 0xfdd   : > { %v3856_v39 = vpop.xlane.xlu1 %3855  ;;  %v3858_v24 = vpop.xlane.xlu0 %3857 }
 0xfde   : > { %6070 = vrsqrt.f32 %v3901_v63  ;;  %v3886_v25 = vmul.f32 0.0078125, %v3856_v39  ;;  %v3887_v22 = vmul.f32 0.0078125, %v3858_v24  ;;  %v3852_v30 = vmul.f32 %v8262_v44, %v8262_v44 }
 0xfe0   : > { %v3902_v10 = vadd.f32 1e-05, %v3886_v25  ;;  %v3903_v59 = vadd.f32 1e-05, %v3887_v22  ;;  %3883 = vadd.xlane.f32.xlu1 %v3852_v30 }
 0xfe1   : > { %v3860_v60 = vpop.xlane.xlu1 %3859  ;;  %v3862_v38 = vpop.xlane.xlu0 %3861 }
 0xfe2   : > { %6072 = vrsqrt.f32 %v3902_v10  ;;  %v3888_v28 = vmul.f32 0.0078125, %v3860_v60  ;;  %v3889_v17 = vmul.f32 0.0078125, %v3862_v38 }
 0xfe3   : > { %6074 = vrsqrt.f32 %v3903_v59 }
 0xfe4   : > { %v3904_v45 = vadd.f32 1e-05, %v3888_v28  ;;  %v3905_v18 = vadd.f32 1e-05, %v3889_v17 }
 0xfe5   : > { %v3864_v43 = vpop.xlane.xlu1 %3863  ;;  %v3866_v32 = vpop.xlane.xlu0 %3865 }
 0xfe6   : > { %6076 = vrsqrt.f32 %v3904_v45  ;;  %v3890_v0 = vmul.f32 0.0078125, %v3864_v43  ;;  %v3891_v21 = vmul.f32 0.0078125, %v3866_v32 }
 0xfe7   : > { %6078 = vrsqrt.f32 %v3905_v18 }
 0xfe8   : > { %v3906_v52 = vadd.f32 1e-05, %v3890_v0  ;;  %v3907_v29 = vadd.f32 1e-05, %v3891_v21 }
 0xfe9   : > { %v3868_v1 = vpop.xlane.xlu1 %3867 }
 0xfea   : > { %6080 = vrsqrt.f32 %v3906_v52  ;;  %v3892_v33 = vmul.f32 0.0078125, %v3868_v1 }
 0xfeb   : > { %v6071_v41 = vpop.eup %6070  ;;  %6082 = vrsqrt.f32 %v3907_v29 }
 0xfec   : > { %v3933_v13 = vmul.f32 %v6071_v41, %v8177_v27  ;;  %v3908_v19 = vadd.f32 1e-05, %v3892_v33 }
 0xfee   : > { %6084 = vrsqrt.f32 %v3908_v19  ;;  %v3954_v2 = vmul.f32 %v8267_v57, %v3933_v13 }
 0xfef   : > { %v6073_v49 = vpop.eup %6072 }
 0xff0   : > { %v6075_v51 = vpop.eup %6074  ;;  %v3934_v7 = vmul.f32 %v6073_v49, %v8189_v53  ;;  %v3975_v48 = vadd.f32 %v8272_v15, %v3954_v2 }
 0xff1   : > { %v3935_v5 = vmul.f32 %v6075_v51, %v8192_v47 }
 0xff2   : > { %v3955_v46 = vmul.f32 %v8267_v57, %v3934_v7 }
 0xff3   : > { %v6077_v4 = vpop.eup %6076  ;;  %v3956_v56 = vmul.f32 %v8267_v57, %v3935_v5 }
 0xff4   : > { %v6079_v27 = vpop.eup %6078  ;;  %v3936_v42 = vmul.f32 %v6077_v4, %v8198_v40  ;;  %v3976_v50 = vadd.f32 %v8272_v15, %v3955_v46 }
 0xff5   : > { %v3937_v53 = vmul.f32 %v6079_v27, %v8203_v14  ;;  %v3977_v23 = vadd.f32 %v8272_v15, %v3956_v56 }
 0xff6   : > { %v3991_v34 = vpack.c.bf16 %v3976_v50, %v3975_v48  ;;  %v3957_v16 = vmul.f32 %v8267_v57, %v3936_v42 }
 0xff7   : > { %v6081_v47 = vpop.eup %6080  ;;  %v3958_v40 = vmul.f32 %v8267_v57, %v3937_v53 }
 0xff8   : > { %v6083_v6 = vpop.eup %6082  ;;  %4210 = vmatmul.mubr.bf16.vlgmr.msra.gmra.mxu1 %v3991_v34  ;;  %5451 = vmatprep.mubr.bf16.mxu0 %v3991_v34  ;;  %v3978_v35 = vadd.f32 %v8272_v15, %v3957_v16  ;;  %v3938_v8 = vmul.f32 %v6081_v47, %v8210_v9 }
 0xff9   : > { %4219 = vmatprep.mubr.bf16.mxu1 %v8496_v31  ;;  %v3939_v12 = vmul.f32 %v6083_v6, %v8213_v3  ;;  %v3979_v63 = vadd.f32 %v8272_v15, %v3958_v40 }
 0xffa   : > { %v3992_v14 = vpack.c.bf16 %v3978_v35, %v3977_v23  ;;  %v3959_v58 = vmul.f32 %v8267_v57, %v3938_v8 }
 0xffb   : > { %v6085_v20 = vpop.eup %6084  ;;  %v3960_v25 = vmul.f32 %v8267_v57, %v3939_v12 }
 0xffc   : > { %5452 = vmatmul.mubr.bf16.vlgmr.msra.gmra.mxu0 %v3992_v14  ;;  %v3980_v39 = vadd.f32 %v8272_v15, %v3959_v58  ;;  %v3940_v24 = vmul.f32 %v6085_v20, %v8218_v37 }
 0xffd   : > { %v3981_v3 = vadd.f32 %v8272_v15, %v3960_v25 }
 0xffe   : > { %v3993_v9 = vpack.c.bf16 %v3980_v39, %v3979_v63  ;;  %v3961_v22 = vmul.f32 %v8267_v57, %v3940_v24 }
0x1000   : > { %4220 = vmatmul.mubr.bf16.gmra.mxu1 %v3992_v14  ;;  %5455 = vmatprep.mubr.bf16.mxu0 %v3993_v9  ;;  %v3982_v30 = vadd.f32 %v8272_v15, %v3961_v22 }
0x1001   : > { %4229 = vmatprep.mubr.bf16.mxu1 %v8496_v31 }
0x1002   : > { %v3994_v10 = vpack.c.bf16 %v3982_v30, %v3981_v3 }
0x1004   : > { %5456 = vmatmul.mubr.bf16.gmra.mxu0 %v3994_v10 }
0x1008   : > { %4230 = vmatmul.mubr.bf16.gmra.mxu1 %v3993_v9 }
0x1009   : > { %4239 = vmatprep.mubr.bf16.mxu1 %v8496_v31 }
0x1010   : > { %4240 = vmatmul.mubr.bf16.gmra.mxu1 %v3994_v10 }
0x1011   : > { %4249 = vmatprep.mubr.bf16.mxu1 %v8496_v31 }
0x1055   : > { %v3870_v37 = vpop.xlane.xlu0 %3869 }
0x1056   : > { %v3893_v59 = vmul.f32 0.0078125, %v3870_v37  ;;  %v8531_v37 = vld [vmem:[#allocation13_spill] sm:$0xff] }
0x1058   : > { %v3909_v60 = vadd.f32 1e-05, %v3893_v59  ;;  %v8532_v59 = vsub.s32 0, %v8531_v37 }
0x1059   : > { %v3872_v38 = vpop.xlane.xlu1 %3871  ;;  %v3874_v28 = vpop.xlane.xlu0 %3873 }
0x105a   : > { %6086 = vrsqrt.f32 %v3909_v60  ;;  %v3894_v17 = vmul.f32 0.0078125, %v3872_v38  ;;  %v3895_v45 = vmul.f32 0.0078125, %v3874_v28  ;;  %v8533_v38 = vsub.s32 1, %v8531_v37 }
0x105c   : > { %v3910_v18 = vadd.f32 1e-05, %v3894_v17  ;;  %v3911_v43 = vadd.f32 1e-05, %v3895_v45  ;;  %v8534_v17 = vsub.s32 2, %v8531_v37 }
0x105d   : > { %v3876_v32 = vpop.xlane.xlu1 %3875 }
0x105e   : > { %6088 = vrsqrt.f32 %v3910_v18  ;;  %v3896_v0 = vmul.f32 0.0078125, %v3876_v32 }
0x105f   : > { %6090 = vrsqrt.f32 %v3911_v43 }
0x1060   : > { %v3912_v21 = vadd.f32 1e-05, %v3896_v0 }
0x1061   : > { %v3878_v52 = vpop.xlane.xlu0 %3877 }
0x1062   : > { %6092 = vrsqrt.f32 %v3912_v21  ;;  %v3897_v29 = vmul.f32 0.0078125, %v3878_v52 }
0x1064   : > { %v3913_v1 = vadd.f32 1e-05, %v3897_v29 }
0x1065   : > { %v3880_v33 = vpop.xlane.xlu1 %3879  ;;  %v3882_v41 = vpop.xlane.xlu0 %3881 }
0x1066   : > { %6094 = vrsqrt.f32 %v3913_v1  ;;  %v3898_v13 = vmul.f32 0.0078125, %v3880_v33  ;;  %v3899_v19 = vmul.f32 0.0078125, %v3882_v41 }
0x1067   : > { %v6087_v49 = vpop.eup %6086 }
0x1068   : > { %v3914_v51 = vadd.f32 1e-05, %v3898_v13  ;;  %v3915_v7 = vadd.f32 1e-05, %v3899_v19  ;;  %v3941_v2 = vmul.f32 %v6087_v49, %v8227_v55 }
0x1069   : > { %v3884_v5 = vpop.xlane.xlu1 %3883 }
0x106a   : > { %6096 = vrsqrt.f32 %v3914_v51  ;;  %v3900_v46 = vmul.f32 0.0078125, %v3884_v5  ;;  %v3962_v48 = vmul.f32 %v8267_v57, %v3941_v2 }
0x106b   : > { %v6089_v4 = vpop.eup %6088  ;;  %6098 = vrsqrt.f32 %v3915_v7 }
0x106c   : > { %v6091_v56 = vpop.eup %6090  ;;  %v3916_v27 = vadd.f32 1e-05, %v3900_v46  ;;  %v3942_v42 = vmul.f32 %v6089_v4, %v8232_v62  ;;  %v3983_v16 = vadd.f32 %v8272_v15, %v3962_v48 }
0x106d   : > { %v3943_v50 = vmul.f32 %v6091_v56, %v8235_v26 }
0x106e   : > { %6100 = vrsqrt.f32 %v3916_v27  ;;  %v3963_v53 = vmul.f32 %v8267_v57, %v3942_v42 }
0x106f   : > { %v6093_v34 = vpop.eup %6092  ;;  %v3964_v23 = vmul.f32 %v8267_v57, %v3943_v50 }
0x1070   : > { %v3984_v55 = vadd.f32 %v8272_v15, %v3963_v53  ;;  %v3944_v47 = vmul.f32 %v6093_v34, %v8242_v36 }
0x1071   : > { %v3985_v26 = vadd.f32 %v8272_v15, %v3964_v23 }
0x1072   : > { %v3995_v6 = vpack.c.bf16 %v3984_v55, %v3983_v16  ;;  %v3965_v35 = vmul.f32 %v8267_v57, %v3944_v47 }
0x1073   : > { %v6095_v62 = vpop.eup %6094 }
0x1074   : > { %4250 = vmatmul.mubr.bf16.gmra.mxu1 %v3995_v6  ;;  %5459 = vmatprep.mubr.bf16.mxu0 %v3995_v6  ;;  %v3986_v8 = vadd.f32 %v8272_v15, %v3965_v35  ;;  %v3945_v40 = vmul.f32 %v6095_v62, %v8247_v11 }
0x1075   : > { %4259 = vmatprep.mubr.bf16.mxu1 %v8496_v31 }
0x1076   : > { %v3996_v12 = vpack.c.bf16 %v3986_v8, %v3985_v26  ;;  %v3966_v20 = vmul.f32 %v8267_v57, %v3945_v40 }
0x1077   : > { %v6097_v14 = vpop.eup %6096 }
0x1078   : > { %v6099_v58 = vpop.eup %6098  ;;  %5460 = vmatmul.mubr.bf16.gmra.mxu0 %v3996_v12  ;;  %v3946_v36 = vmul.f32 %v6097_v14, %v8252_v61  ;;  %v3987_v25 = vadd.f32 %v8272_v15, %v3966_v20 }
0x1079   : > { %v3947_v63 = vmul.f32 %v6099_v58, %v8255_v54 }
0x107a   : > { %v3967_v39 = vmul.f32 %v8267_v57, %v3946_v36 }
0x107b   : > { %v6101_v24 = vpop.eup %6100  ;;  %v3968_v22 = vmul.f32 %v8267_v57, %v3947_v63 }
0x107c   : > { %4260 = vmatmul.mubr.bf16.gmra.mxu1 %v3996_v12  ;;  %v3988_v11 = vadd.f32 %v8272_v15, %v3967_v39  ;;  %v3948_v9 = vmul.f32 %v6101_v24, %v8262_v44  ;;  %v4032_v44 = vld [vmem:[#allocation9 + $0x1] ss:$4 sm:$0x7] }
0x107d   : > { %4269 = vmatprep.mubr.bf16.mxu1 %v8496_v31  ;;  %v3989_v54 = vadd.f32 %v8272_v15, %v3968_v22  ;;  %v8327_v60 = vrot.slane %v4032_v44, %v8532_v59  ;;  %v8331_v28 = vrot.slane %v4032_v44, %v8533_v38 }
0x107e   : > { %v3997_v61 = vpack.c.bf16 %v3988_v11, %v3987_v25  ;;  %v3969_v3 = vmul.f32 %v8267_v57, %v3948_v9 }
0x1080   : > { %5463 = vmatprep.mubr.bf16.mxu0 %v3997_v61  ;;  %v3990_v30 = vadd.f32 %v8272_v15, %v3969_v3  ;;  %v8336_v15 = vrot.slane %v4032_v44, %v8534_v17 }
0x1082   : > { %v3998_v10 = vpack.c.bf16 %v3990_v30, %v3989_v54 }
0x1084   : > { %4270 = vmatmul.mubr.bf16.gmra.mxu1 %v3997_v61  ;;  %5464 = vmatmul.mubr.bf16.gmra.mxu0 %v3998_v10 }
0x1085   : > { %4279 = vmatprep.mubr.bf16.mxu1 %v8496_v31 }
0x108c   : > { %4280 = vmatmul.mubr.bf16.gmra.mxu1 %v3998_v10 }
0x10b8   : > { %v4211_v57 = vpop.f32.mrf.mxu1 }
0x10b9   : > { %v4212_v18 = vadd.f32 %v4211_v57, %v8327_v60 }
0x10ba   : > { %v4213_v45 = vpop.f32.mrf.mxu1 }
0x10bb   : > { %v4214_v31 = vadd.f32 %v4213_v45, %v8331_v28 }
0x10bc   : > { %v4215_v43 = vpop.f32.mrf.mxu1  ;;  %v5453_v32 = vpop.f32.mrf.mxu0 }
0x10bd   : > { %v4907_v0 = vpack.c.bf16 %v4214_v31, %v4212_v18  ;;  %v4333_v21 = vadd.f32 %v5453_v32, %v8336_v15  ;;  %v4216_v1 = vadd.f32 %v4215_v43, %v8327_v60 }
0x10be   : > { %v4217_v52 = vpop.f32.mrf.mxu1  ;;  %v4324_v29 = vpop.f32.mrf.mxu0 }
0x10bf   : > { %4547 = vst [vmem:[%s8343_s19] sm:$0xff] %v4907_v0  ;;  %v4912_v33 = vpack.c.bf16 %v4333_v21, %v4333_v21  ;;  %v4218_v41 = vadd.f32 %v4217_v52, %v8331_v28  ;;  %v4325_v13 = vadd.f32 %v4324_v29, %v8336_v15 }
0x10c0   : > { %v4221_v19 = vpop.f32.mrf.mxu1  ;;  %v5454_v49 = vpop.f32.mrf.mxu0 }
0x10c1   : > { %4552 = vst [vmem:[%s8343_s19 + $0x20] sm:$0xf] %v4912_v33  ;;  %v4909_v51 = vpack.c.bf16 %v4218_v41, %v4216_v1  ;;  %v4908_v7 = vpack.c.bf16 %v4325_v13, %v4325_v13  ;;  %v4336_v2 = vadd.f32 %v5454_v49, %v8336_v15  ;;  %v4222_v4 = vadd.f32 %v4221_v19, %v8327_v60 }
0x10c2   : > { %v4223_v5 = vpop.f32.mrf.mxu1  ;;  %v4327_v46 = vpop.f32.mrf.mxu0 }
0x10c3   : > { %4549 = vst [vmem:[%s8343_s19 + $0xc] sm:$0xff] %v4909_v51  ;;  %4548 = vst [vmem:[%s8343_s19 + $0x8] sm:$0xf] %v4908_v7  ;;  %v4914_v56 = vpack.c.bf16 %v4336_v2, %v4336_v2  ;;  %v4224_v27 = vadd.f32 %v4223_v5, %v8331_v28  ;;  %v4328_v42 = vadd.f32 %v4327_v46, %v8336_v15 }
0x10c4   : > { %v4225_v48 = vpop.f32.mrf.mxu1  ;;  %v5457_v50 = vpop.f32.mrf.mxu0 }
0x10c5   : > { %4554 = vst [vmem:[%s8343_s19 + $0x2c] sm:$0xf] %v4914_v56  ;;  %v4911_v53 = vpack.c.bf16 %v4224_v27, %v4222_v4  ;;  %v4910_v34 = vpack.c.bf16 %v4328_v42, %v4328_v42  ;;  %v4349_v16 = vadd.f32 %v5457_v50, %v8336_v15  ;;  %v4226_v23 = vadd.f32 %v4225_v48, %v8327_v60 }
0x10c6   : > { %v4227_v55 = vpop.f32.mrf.mxu1  ;;  %v4340_v47 = vpop.f32.mrf.mxu0 }
0x10c7   : > { %4551 = vst [vmem:[%s8343_s19 + $0x18] sm:$0xff] %v4911_v53  ;;  %4550 = vst [vmem:[%s8343_s19 + $0x14] sm:$0xf] %v4910_v34  ;;  %v4920_v6 = vpack.c.bf16 %v4349_v16, %v4349_v16  ;;  %v4228_v35 = vadd.f32 %v4227_v55, %v8331_v28  ;;  %v4341_v62 = vadd.f32 %v4340_v47, %v8336_v15 }
0x10c8   : > { %v4231_v26 = vpop.f32.mrf.mxu1  ;;  %v5458_v8 = vpop.f32.mrf.mxu0 }
0x10c9   : > { %4560 = vst [vmem:[%s8343_s19 + $0x50] sm:$0xf] %v4920_v6  ;;  %v4913_v40 = vpack.c.bf16 %v4228_v35, %v4226_v23  ;;  %v4916_v12 = vpack.c.bf16 %v4341_v62, %v4341_v62  ;;  %v4352_v14 = vadd.f32 %v5458_v8, %v8336_v15  ;;  %v4232_v20 = vadd.f32 %v4231_v26, %v8327_v60 }
0x10ca   : > { %v4233_v58 = vpop.f32.mrf.mxu1  ;;  %v4343_v36 = vpop.f32.mrf.mxu0 }
0x10cb   : > { %4553 = vst [vmem:[%s8343_s19 + $0x24] sm:$0xff] %v4913_v40  ;;  %4556 = vst [vmem:[%s8343_s19 + $0x38] sm:$0xf] %v4916_v12  ;;  %v4922_v63 = vpack.c.bf16 %v4352_v14, %v4352_v14  ;;  %v4234_v39 = vadd.f32 %v4233_v58, %v8331_v28  ;;  %v4344_v24 = vadd.f32 %v4343_v36, %v8336_v15 }
0x10cc   : > { %v4235_v25 = vpop.f32.mrf.mxu1 }
0x10cd   : > { %4562 = vst [vmem:[%s8343_s19 + $0x5c] sm:$0xf] %v4922_v63  ;;  %v4915_v11 = vpack.c.bf16 %v4234_v39, %v4232_v20  ;;  %v4918_v9 = vpack.c.bf16 %v4344_v24, %v4344_v24  ;;  %v4236_v61 = vadd.f32 %v4235_v25, %v8327_v60 }
0x10ce   : > { %v4237_v22 = vpop.f32.mrf.mxu1 }
0x10cf   : > { %4555 = vst [vmem:[%s8343_s19 + $0x30] sm:$0xff] %v4915_v11  ;;  %4558 = vst [vmem:[%s8343_s19 + $0x44] sm:$0xf] %v4918_v9  ;;  %v4238_v3 = vadd.f32 %v4237_v22, %v8331_v28 }
0x10d0   : > { %v4241_v54 = vpop.f32.mrf.mxu1 }
0x10d1   : > { %v4917_v30 = vpack.c.bf16 %v4238_v3, %v4236_v61  ;;  %v4242_v44 = vadd.f32 %v4241_v54, %v8327_v60 }
0x10d2   : > { %v4243_v10 = vpop.f32.mrf.mxu1 }
0x10d3   : > { %4557 = vst [vmem:[%s8343_s19 + $0x3c] sm:$0xff] %v4917_v30  ;;  %v4244_v37 = vadd.f32 %v4243_v10, %v8331_v28 }
0x10d4   : > { %v4245_v59 = vpop.f32.mrf.mxu1 }
0x10d5   : > { %v4919_v38 = vpack.c.bf16 %v4244_v37, %v4242_v44  ;;  %v4246_v17 = vadd.f32 %v4245_v59, %v8327_v60 }
0x10d6   : > { %v4247_v57 = vpop.f32.mrf.mxu1 }
0x10d7   : > { %4559 = vst [vmem:[%s8343_s19 + $0x48] sm:$0xff] %v4919_v38  ;;  %v4248_v45 = vadd.f32 %v4247_v57, %v8331_v28 }
0x10d9   : > { %v4921_v18 = vpack.c.bf16 %v4248_v45, %v4246_v17 }
0x10db   : > { %4561 = vst [vmem:[%s8343_s19 + $0x54] sm:$0xff] %v4921_v18 }
0x1134   : > { %v4251_v31 = vpop.f32.mrf.mxu1 }
0x1135   : > { %v4252_v32 = vadd.f32 %v4251_v31, %v8327_v60 }
0x1136   : > { %v4253_v43 = vpop.f32.mrf.mxu1 }
0x1137   : > { %v4254_v0 = vadd.f32 %v4253_v43, %v8331_v28 }
0x1138   : > { %v4255_v21 = vpop.f32.mrf.mxu1  ;;  %v5461_v52 = vpop.f32.mrf.mxu0 }
0x1139   : > { %v4923_v29 = vpack.c.bf16 %v4254_v0, %v4252_v32  ;;  %v4365_v1 = vadd.f32 %v5461_v52, %v8336_v15  ;;  %v4256_v13 = vadd.f32 %v4255_v21, %v8327_v60 }
0x113a   : > { %v4257_v33 = vpop.f32.mrf.mxu1  ;;  %v4356_v41 = vpop.f32.mrf.mxu0 }
0x113b   : > { %4563 = vst [vmem:[%s8343_s19 + $0x60] sm:$0xff] %v4923_v29  ;;  %v4928_v19 = vpack.c.bf16 %v4365_v1, %v4365_v1  ;;  %v4258_v49 = vadd.f32 %v4257_v33, %v8331_v28  ;;  %v4357_v51 = vadd.f32 %v4356_v41, %v8336_v15 }
0x113c   : > { %v4261_v7 = vpop.f32.mrf.mxu1  ;;  %v5462_v2 = vpop.f32.mrf.mxu0 }
0x113d   : > { %4568 = vst [vmem:[%s8343_s19 + $0x80] sm:$0xf] %v4928_v19  ;;  %v4925_v5 = vpack.c.bf16 %v4258_v49, %v4256_v13  ;;  %v4924_v46 = vpack.c.bf16 %v4357_v51, %v4357_v51  ;;  %v4368_v4 = vadd.f32 %v5462_v2, %v8336_v15  ;;  %v4262_v42 = vadd.f32 %v4261_v7, %v8327_v60 }
0x113e   : > { %v4263_v56 = vpop.f32.mrf.mxu1  ;;  %v4359_v27 = vpop.f32.mrf.mxu0 }
0x113f   : > { %4565 = vst [vmem:[%s8343_s19 + $0x6c] sm:$0xff] %v4925_v5  ;;  %4564 = vst [vmem:[%s8343_s19 + $0x68] sm:$0xf] %v4924_v46  ;;  %v4930_v48 = vpack.c.bf16 %v4368_v4, %v4368_v4  ;;  %v4264_v50 = vadd.f32 %v4263_v56, %v8331_v28  ;;  %v4360_v53 = vadd.f32 %v4359_v27, %v8336_v15 }
0x1140   : > { %v4265_v34 = vpop.f32.mrf.mxu1 }
0x1141   : > { %4570 = vst [vmem:[%s8343_s19 + $0x8c] sm:$0xf] %v4930_v48  ;;  %v4927_v16 = vpack.c.bf16 %v4264_v50, %v4262_v42  ;;  %v4926_v55 = vpack.c.bf16 %v4360_v53, %v4360_v53  ;;  %v4266_v23 = vadd.f32 %v4265_v34, %v8327_v60 }
0x1142   : > { %v4267_v47 = vpop.f32.mrf.mxu1 }
0x1143   : > { %4567 = vst [vmem:[%s8343_s19 + $0x78] sm:$0xff] %v4927_v16  ;;  %4566 = vst [vmem:[%s8343_s19 + $0x74] sm:$0xf] %v4926_v55  ;;  %v4268_v6 = vadd.f32 %v4267_v47, %v8331_v28 }
0x1144   : > { %v4271_v35 = vpop.f32.mrf.mxu1  ;;  %v5465_v62 = vpop.f32.mrf.mxu0 }
0x1145   : > { %v4929_v26 = vpack.c.bf16 %v4268_v6, %v4266_v23  ;;  %v4381_v8 = vadd.f32 %v5465_v62, %v8336_v15  ;;  %v4272_v14 = vadd.f32 %v4271_v35, %v8327_v60 }
0x1146   : > { %v4273_v40 = vpop.f32.mrf.mxu1  ;;  %v4372_v12 = vpop.f32.mrf.mxu0 }
0x1147   : > { %4569 = vst [vmem:[%s8343_s19 + $0x84] sm:$0xff] %v4929_v26  ;;  %v4936_v58 = vpack.c.bf16 %v4381_v8, %v4381_v8  ;;  %v4274_v36 = vadd.f32 %v4273_v40, %v8331_v28  ;;  %v4373_v20 = vadd.f32 %v4372_v12, %v8336_v15 }
0x1148   : > { %v4275_v63 = vpop.f32.mrf.mxu1  ;;  %v5466_v39 = vpop.f32.mrf.mxu0 }
0x1149   : > { %4576 = vst [vmem:[%s8343_s19 + $0xb0] sm:$0xf] %v4936_v58  ;;  %v4931_v24 = vpack.c.bf16 %v4274_v36, %v4272_v14  ;;  %v4932_v25 = vpack.c.bf16 %v4373_v20, %v4373_v20  ;;  %v4384_v11 = vadd.f32 %v5466_v39, %v8336_v15  ;;  %v4276_v61 = vadd.f32 %v4275_v63, %v8327_v60 }
0x114a   : > { %v4277_v9 = vpop.f32.mrf.mxu1  ;;  %v4375_v22 = vpop.f32.mrf.mxu0 }
0x114b   : > { %4571 = vst [vmem:[%s8343_s19 + $0x90] sm:$0xff] %v4931_v24  ;;  %4572 = vst [vmem:[%s8343_s19 + $0x98] sm:$0xf] %v4932_v25  ;;  %v4938_v3 = vpack.c.bf16 %v4384_v11, %v4384_v11  ;;  %v4278_v54 = vadd.f32 %v4277_v9, %v8331_v28  ;;  %v4376_v30 = vadd.f32 %v4375_v22, %v8336_v15 }
0x114c   : > { %v4281_v10 = vpop.f32.mrf.mxu1 }
0x114d   : > { %4578 = vst [vmem:[%s8343_s19 + $0xbc] sm:$0xf] %v4938_v3  ;;  %v4933_v44 = vpack.c.bf16 %v4278_v54, %v4276_v61  ;;  %v4934_v37 = vpack.c.bf16 %v4376_v30, %v4376_v30  ;;  %v4282_v38 = vadd.f32 %v4281_v10, %v8327_v60 }
0x114e   : > { %v4283_v59 = vpop.f32.mrf.mxu1 }
0x114f   : > { %4573 = vst [vmem:[%s8343_s19 + $0x9c] sm:$0xff] %v4933_v44  ;;  %4574 = vst [vmem:[%s8343_s19 + $0xa4] sm:$0xf] %v4934_v37  ;;  %v4284_v57 = vadd.f32 %v4283_v59, %v8331_v28 }
0x1150   : > { %v4285_v17 = vpop.f32.mrf.mxu1 }
0x1151   : > { %v4935_v45 = vpack.c.bf16 %v4284_v57, %v4282_v38  ;;  %v4286_v31 = vadd.f32 %v4285_v17, %v8327_v60 }
0x1152   : > { %v4287_v18 = vpop.f32.mrf.mxu1 }
0x1153   : > { %4575 = vst [vmem:[%s8343_s19 + $0xa8] sm:$0xff] %v4935_v45  ;;  %v4288_v15 = vadd.f32 %v4287_v18, %v8331_v28 }
0x1155   : > { %v4937_v43 = vpack.c.bf16 %v4288_v15, %v4286_v31 }
0x1157   : > { %4577 = vst [vmem:[%s8343_s19 + $0xb4] sm:$0xff] %v4937_v43 }
0x1158 PF: > { %p19_p11 = scmp.ge.s32.totalorder %s6425_s11, 4   ;;  %s8535_s21 = smov %s6284_s22 }
0x1159   : > { %s8536_s22 = smov %s6288_s23  ;;  %s8537_s23 = smov %s6436_s17 }
0x115a   : > { %s8538_s24 = smov %s6425_s11  ;;  %21 = sbr.rel (!%p19_p11) target bundleno = 5 (0x5), region = 109 }
0x115f   :  { %4622 = vsyncpa [#allocation3], 1 }
0x1160   :  { %4624 = vsyncpa [#allocation3 + $0x1], 1 }
0x1161   :  { %4625 = vsyncpa [#allocation5], 1 }
0x1162   :  { %4626 = vsyncpa [#allocation8], 1 }

// kernel: transformer_block_forward.3
= control target key start
LH: loop header
LB: loop body
LE: loop exit
PB: predicated region body
PF: predicated region fallthrough
CT: control target
= control target key end

     0   :  { %9 = vsyncpa [#allocation3], 0  ;;  %s1596_s0 = inlined_call_operand.vmem [shape: f32[4,64,128], index: 0, kind: input, shape index: {}]   ;;  %s1597_s1 = inlined_call_operand.vmem [shape: bf16[4,64,384], index: 1, kind: input, shape index: {}]   ;;  %s1598_s2 = inlined_call_operand.vmem [shape: bf16[384,128], index: 2, kind: input, shape index: {}]   ;;  %s1599_s3 = inlined_call_operand.vmem [shape: f32[1,128], index: 3, kind: input, shape index: {}]   ;;  %s1600_s4 = inlined_call_operand.hbm [shape: f32[4,64,128], index: 4, kind: output, shape index: {}]  }
   0x1   :  { %11 = vsyncpa [#allocation3 + $0x1], 0  ;;  %s1288_s15 = smov 0   ;;  %s1290_s16 = smov 0  }
   0x2   :  { %s1292_s17 = smov 0   ;;  %s1294_s18 = smov 0  }
   0x3 LB: > { %s1309_s19 = sadd.s32 4294967295, %s1257_s18   ;;  %s950_s20 = sadd.s32 4294967294, %s1257_s18   ;;  %s1257_s18 = sphi %s1294_s18, %s1606_s18   ;;  %s1253_s17 = sphi %s1292_s17, %s1605_s17   ;;  %s1249_s16 = sphi %s1290_s16, %s1604_s16   ;;  %s1245_s15 = sphi %s1288_s15, %s1603_s15  }
   0x4   : > { %s1313_s21 = sadd.s32 1, %s1257_s18   ;;  %s118_s22 = sadd.s32 1, %s1253_s17 }
   0x5   : > { %s115_s23 = ssub.s32 %s1257_s18, %s1313_s21  ;;  %p128_p0 = scmp.ne.s32.totalorder %s1253_s17, %s1249_s16 }
   0x6   : > { %p116_p1 = scmp.eq.s32.totalorder %s115_s23, 0  ;;  %p129_p2 = scmp.eq.s32.totalorder %s1309_s19, 1 }
   0x7   : > { %p134_p3 = scmp.ne.s32.totalorder %s1249_s16, %s1245_s15  ;;  %p135_p4 = scmp.eq.s32.totalorder %s950_s20, 1 }
   0x8   : > { %s1324_s24 = scalar_select %p116_p1, %s1253_s17, %s118_s22  }
   0x9   : > { %p1326_p5 = por %p129_p2, %p128_p0  ;;  %p1330_p6 = por %p135_p4, %p134_p3 }
   0xa   : > { %p953_p7 = scmp.ge.s32.totalorder %s1257_s18, 1  ;;  %p179_p8 = scmp.lt.s32.totalorder %s1257_s18, 3 }
   0xc   : > { %p180_p9 = pnand %p953_p7, %p179_p8 }
   0xd   : > { %s955_s13 = sshll.u32 (!%p180_p9), %s1309_s19, 1  ;;  %s209_s6 = sand.u32 (!%p180_p9), 1, %s1249_s16  }
   0xe   : > { %183 = sbr.rel (%p180_p9) target bundleno = 329 (0x149), region = 36  ;;  %p213_p10 = scmp.lt.s32.totalorder (!%p180_p9), %s955_s13, 3 }
   0xf   : > { %s954_s12 = sshll.u32 (!%p180_p9), %s209_s6, 7  ;;  %s1017_s14 = sshll.u32 (!%p180_p9), %s1309_s19, 11 }
  0x10   : > { %s1556_s28 = scalar_lea.sflag (!%p180_p9), [#allocation3], %s209_s6  ;;  %s1260_s29 = smov (!%p180_p9), [#allocation2]  }
  0x11   : > { %s1201_s30 = sshll.u32 (!%p180_p9), %s1260_s29, 4  ;;  %s1202_s30 = int_to_ptr.vmem [resolvable:$false] %s1201_s30 }
  0x13   : > { %v1173_v0 = vld [vmem:[%s1598_s2 + $0x78] sm:$0xff]   ;;  %v1175_v2 = vld [vmem:[%s1598_s2 + $0x70] sm:$0xff]   ;;  %v1178_v5 = vld [vmem:[%s1598_s2 + $0x68] sm:$0xff]   ;;  %s1608_s13 = smov (!%p213_p10, %s955_s13), 3  ;;  %v1259_v24 = vmov 0  }
  0x14   : > { %v1174_v1 = vld [vmem:[%s1598_s2 + $0x38] sm:$0xff]   ;;  %1018 = vmatprep.subr.bf16.mxu0 %v1173_v0  ;;  %v1177_v4 = vld [vmem:[%s1598_s2 + $0x30] sm:$0xff]   ;;  %v1180_v7 = vld [vmem:[%s1598_s2 + $0x28] sm:$0xff]   ;;  %s1130_s27 = smul.u32 96, %s1608_s13  ;;  %s1015_s5 = sshll.u32 %s1608_s13, 6 }
  0x15   : > { %1019 = vmatpush3.bf16.msra.mxu0 %v1174_v1  ;;  %v1176_v3 = vld [vmem:[%s1598_s2 + $0xb8] sm:$0xff]   ;;  %v1179_v6 = vld [vmem:[%s1598_s2 + $0xb0] sm:$0xff]   ;;  %v1181_v8 = vld [vmem:[%s1598_s2 + $0x60] sm:$0xff]   ;;  %s1491_s11 = scalar_lea.vmem %s1596_s0, %s1015_s5  ;;  %s1499_s13 = scalar_lea.vmem [#allocation2], %s954_s12 }
  0x16   : > { %1020 = vmatprep.subr.bf16.mxu0 %v1175_v2  ;;  %1098 = vmatprep.subr.bf16.mxu1 %v1176_v3  ;;  %v1182_v9 = vld [vmem:[%s1598_s2 + $0xa8] sm:$0xff]   ;;  %v1183_v10 = vld [vmem:[%s1598_s2 + $0x20] sm:$0xff]   ;;  %v1184_v11 = vld [vmem:[%s1598_s2 + $0x58] sm:$0xff]   ;;  %s1400_s10 = scalar_lea.vmem %s1597_s1, %s1130_s27  ;;  %s876_s20 = sshll.u32 %s1499_s13, 4  ;;  %s1551_s20 = int_to_ptr.vmem [resolvable:$true] %s876_s20 }
  0x17   : > { %1099 = vmatpush3.bf16.msra.mxu1 %v1176_v3  ;;  %v1185_v12 = vld [vmem:[%s1598_s2 + $0xa0] sm:$0xff]   ;;  %v1186_v13 = vld [vmem:[%s1598_s2 + $0x18] sm:$0xff]   ;;  %v1187_v15 = vld [vmem:[%s1598_s2 + $0x50] sm:$0xff]   ;;  %s1549_s27 = scalar_lea.hbm %s1600_s4, %s1017_s14  ;;  %s1197_s19 = scalar_lea.vmem %s1551_s20, 2048 }
  0x18   : > { %1100 = vmatprep.subr.bf16.mxu1 %v1179_v6  ;;  %v1188_v14 = vld [vmem:[%s1598_s2 + $0x98] sm:$0xff]   ;;  %v1189_v16 = vld [vmem:[%s1598_s2 + $0x10] sm:$0xff]   ;;  %v1190_v18 = vld [vmem:[%s1598_s2 + $0x48] sm:$0xff]   ;;  %p1198_p11 = scmp.ne.s32.totalorder %s1551_s20, %s1197_s19  ;;  %s1203_s5 = scalar_lea.vmem %s1202_s30, 4096 }
  0x19   : > { %1021 = vmatpush3.bf16.msra.mxu0 %v1177_v4  ;;  %v1191_v17 = vld [vmem:[%s1598_s2 + $0x90] sm:$0xff]   ;;  %v1192_v19 = vld [vmem:[%s1598_s2 + $0x8] sm:$0xff]   ;;  %v228_v21 = vld [vmem:[%s1400_s10] sm:$0xff]  ;;  %p1204_p0 = scmp.lt.s32.totalorder %s1551_s20, %s1202_s30  ;;  %p1205_p1 = scmp.lt.s32.totalorder %s1203_s5, %s1197_s19 }
  0x1a   : > { %1022 = vmatprep.subr.bf16.mxu0 %v1178_v5  ;;  %v1194_v20 = vld [vmem:[%s1598_s2 + $0x88] sm:$0xff]   ;;  %v1193_v23 = vld [vmem:[%s1598_s2 + $0x40] sm:$0xff]   ;;  %v260_v25 = vmax.bf16 %v1259_v24, %v228_v21  ;;  %v231_v29 = vld [vmem:[%s1400_s10 + $0x14] sm:$0xf]  ;;  %p1199_p12 = pnand %p1198_p11, %p1326_p5 }
  0x1b   : > { %1101 = vmatpush3.bf16.msra.mxu1 %v1179_v6  ;;  %v230_v22 = vld [vmem:[%s1400_s10 + $0xc] sm:$0xff]  ;;  %v229_v27 = vld [vmem:[%s1400_s10 + $0x8] sm:$0xf]  ;;  %v1195_v28 = vld [vmem:[%s1598_s2] sm:$0xff]   ;;  %v263_v33 = vmax.bf16 %v1259_v24, %v231_v29  ;;  %p1206_p2 = por %p1205_p1, %p1204_p0 }
  0x1c   : > { %1102 = vmatprep.subr.bf16.mxu1 %v1182_v9  ;;  %v262_v26 = vmax.bf16 %v1259_v24, %v230_v22  ;;  %v261_v30 = vmax.bf16 %v1259_v24, %v229_v27  ;;  %v233_v31 = vld [vmem:[%s1400_s10 + $0x20] sm:$0xf]  ;;  %v235_v34 = vld [vmem:[%s1400_s10 + $0x2c] sm:$0xf]  ;;  %v232_v35 = vld [vmem:[%s1400_s10 + $0x18] sm:$0xff]  ;;  %p1200_p13 = pneg %p1199_p12 }
  0x1d   : > { %1023 = vmatpush3.bf16.msra.mxu0 %v1180_v7  ;;  %v234_v36 = vld [vmem:[%s1400_s10 + $0x24] sm:$0xff]  ;;  %v264_v38 = vmax.bf16 %v1259_v24, %v232_v35  ;;  %v237_v40 = vld [vmem:[%s1400_s10 + $0x38] sm:$0xf]  ;;  %v265_v43 = vmax.bf16 %v1259_v24, %v233_v31  ;;  %v267_v44 = vmax.bf16 %v1259_v24, %v235_v34  ;;  %v236_v49 = vld [vmem:[%s1400_s10 + $0x30] sm:$0xff] }
  0x1e   : > { %1024 = vmatprep.subr.bf16.mxu0 %v1181_v8  ;;  %v962_v32 = vcombine.high %v260_v25, %v262_v26  ;;  %v1196_v37 = vld [vmem:[%s1598_s2 + $0x80] sm:$0xff]   ;;  %v266_v39 = vmax.bf16 %v1259_v24, %v234_v36  ;;  %v963_v42 = vcombine.low %v261_v30, %v263_v33  ;;  %v961_v45 = vcombine.low %v260_v25, %v262_v26  ;;  %v241_v53 = vld [vmem:[%s1400_s10 + $0x50] sm:$0xf]  ;;  %v243_v54 = vld [vmem:[%s1400_s10 + $0x5c] sm:$0xf]  ;;  %p1207_p3 = pnand %p1206_p2, %p1200_p13 }
  0x1f   : > { %1103 = vmatpush3.bf16.msra.mxu1 %v1182_v9  ;;  %v239_v41 = vld [vmem:[%s1400_s10 + $0x44] sm:$0xf]  ;;  %v269_v46 = vmax.bf16 %v1259_v24, %v237_v40  ;;  %v238_v50 = vld [vmem:[%s1400_s10 + $0x3c] sm:$0xff]  ;;  %v966_v51 = vcombine.low %v265_v43, %v267_v44  ;;  %v268_v55 = vmax.bf16 %v1259_v24, %v236_v49  ;;  %v245_v57 = vld [vmem:[%s1400_s10 + $0x68] sm:$0xf]  ;;  %v273_v59 = vmax.bf16 %v1259_v24, %v241_v53 }
  0x20   : > { %1104 = vmatprep.subr.bf16.mxu1 %v1185_v12  ;;  %651 = vmatprep.mubr.bf16.mxu0 %v962_v32  ;;  %v271_v47 = vmax.bf16 %v1259_v24, %v239_v41  ;;  %v965_v48 = vcombine.high %v264_v38, %v266_v39  ;;  %v270_v56 = vmax.bf16 %v1259_v24, %v238_v50  ;;  %v247_v58 = vld [vmem:[%s1400_s10 + $0x74] sm:$0xf]  ;;  %v240_v1 = vld [vmem:[%s1400_s10 + $0x48] sm:$0xff]  ;;  %v249_v5 = vld [vmem:[%s1400_s10 + $0x80] sm:$0xf] }
  0x21   : > { %1025 = vmatpush3.bf16.msra.mxu0 %v1183_v10  ;;  %1114 = vmatprep.mubr.bf16.mxu1 %v963_v42  ;;  %v275_v60 = vmax.bf16 %v1259_v24, %v243_v54  ;;  %v964_v61 = vcombine.low %v264_v38, %v266_v39  ;;  %v277_v62 = vmax.bf16 %v1259_v24, %v245_v57  ;;  %v242_v2 = vld [vmem:[%s1400_s10 + $0x54] sm:$0xff]  ;;  %v251_v6 = vld [vmem:[%s1400_s10 + $0x8c] sm:$0xf]  ;;  %v255_v10 = vld [vmem:[%s1400_s10 + $0xa4] sm:$0xf] }
  0x22   : > { %1026 = vmatprep.subr.bf16.mxu0 %v1184_v11  ;;  %v969_v52 = vcombine.low %v269_v46, %v271_v47  ;;  %v279_v63 = vmax.bf16 %v1259_v24, %v247_v58  ;;  %v968_v0 = vcombine.high %v268_v55, %v270_v56  ;;  %v272_v7 = vmax.bf16 %v1259_v24, %v240_v1  ;;  %v253_v9 = vld [vmem:[%s1400_s10 + $0x98] sm:$0xf]  ;;  %v257_v21 = vld [vmem:[%s1400_s10 + $0xb0] sm:$0xf]  ;;  %v259_v22 = vld [vmem:[%s1400_s10 + $0xbc] sm:$0xf] }
  0x23   : > { %1105 = vmatpush3.bf16.msra.mxu1 %v1185_v12  ;;  %v972_v3 = vcombine.low %v273_v59, %v275_v60  ;;  %v274_v8 = vmax.bf16 %v1259_v24, %v242_v2  ;;  %v281_v11 = vmax.bf16 %v1259_v24, %v249_v5  ;;  %v283_v12 = vmax.bf16 %v1259_v24, %v251_v6  ;;  %v248_v30 = vld [vmem:[%s1400_s10 + $0x78] sm:$0xff]  ;;  %v250_v31 = vld [vmem:[%s1400_s10 + $0x84] sm:$0xff] }
  0x24   : > { %1106 = vmatprep.subr.bf16.mxu1 %v1188_v14  ;;  %v975_v4 = vcombine.low %v277_v62, %v279_v63  ;;  %v289_v26 = vmax.bf16 %v1259_v24, %v257_v21  ;;  %v291_v27 = vmax.bf16 %v1259_v24, %v259_v22  ;;  %v280_v33 = vmax.bf16 %v1259_v24, %v248_v30  ;;  %v254_v38 = vld [vmem:[%s1400_s10 + $0x9c] sm:$0xff]  ;;  %v256_v43 = vld [vmem:[%s1400_s10 + $0xa8] sm:$0xff]  ;;  %v258_v44 = vld [vmem:[%s1400_s10 + $0xb4] sm:$0xff] }
  0x25   : > { %1027 = vmatpush3.bf16.msra.mxu0 %v1186_v13  ;;  %v967_v13 = vcombine.low %v268_v55, %v270_v56  ;;  %v282_v34 = vmax.bf16 %v1259_v24, %v250_v31  ;;  %v286_v40 = vmax.bf16 %v1259_v24, %v254_v38  ;;  %v290_v46 = vmax.bf16 %v1259_v24, %v258_v44  ;;  %v813_v58 = vld [vmem:[%s1491_s11] sm:$0xff] }
  0x26   : > { %1028 = vmatprep.subr.bf16.mxu0 %v1187_v15  ;;  %v287_v15 = vmax.bf16 %v1259_v24, %v255_v10  ;;  %v984_v32 = vcombine.low %v289_v26, %v291_v27  ;;  %v815_v10 = vld [vmem:[%s1491_s11 + $0x10] sm:$0xff] }
  0x27   : > { %1107 = vmatpush3.bf16.msra.mxu1 %v1188_v14  ;;  %v285_v14 = vmax.bf16 %v1259_v24, %v253_v9  ;;  %v977_v36 = vcombine.high %v280_v33, %v282_v34  ;;  %v976_v41 = vcombine.low %v280_v33, %v282_v34 }
  0x28   : > { %1108 = vmatprep.subr.bf16.mxu1 %v1191_v17 }
  0x29   : > { %1029 = vmatpush3.bf16.msra.mxu0 %v1189_v16  ;;  %v971_v16 = vcombine.high %v272_v7, %v274_v8 }
  0x2a   : > { %1030 = vmatprep.subr.bf16.mxu0 %v1190_v18  ;;  %v246_v18 = vld [vmem:[%s1400_s10 + $0x6c] sm:$0xff] }
  0x2b   : > { %1109 = vmatpush3.bf16.msra.mxu1 %v1191_v17  ;;  %v244_v17 = vld [vmem:[%s1400_s10 + $0x60] sm:$0xff]  ;;  %v278_v25 = vmax.bf16 %v1259_v24, %v246_v18  ;;  %v816_v18 = vld [vmem:[%s1491_s11 + $0x18] sm:$0xff] }
  0x2c   : > { %1110 = vmatprep.subr.bf16.mxu1 %v1194_v20 }
  0x2d   : > { %1031 = vmatpush3.bf16.msra.mxu0 %v1192_v19  ;;  %v978_v19 = vcombine.low %v281_v11, %v283_v12 }
  0x2e   : > { %1032 = vmatprep.subr.bf16.mxu0 %v1193_v23  ;;  %v276_v23 = vmax.bf16 %v1259_v24, %v244_v17 }
  0x2f   : > { %1111 = vmatpush3.bf16.msra.mxu1 %v1194_v20  ;;  %v981_v20 = vcombine.low %v285_v14, %v287_v15 }
  0x30   : > { %1112 = vmatprep.subr.bf16.mxu1 %v1196_v37  ;;  %v974_v29 = vcombine.high %v276_v23, %v278_v25  ;;  %v973_v35 = vcombine.low %v276_v23, %v278_v25 }
  0x31   : > { %1033 = vmatpush3.bf16.msra.mxu0 %v1195_v28  ;;  %v970_v28 = vcombine.low %v272_v7, %v274_v8 }
  0x33   : > { %1113 = vmatpush3.bf16.msra.mxu1 %v1196_v37  ;;  %v252_v37 = vld [vmem:[%s1400_s10 + $0x90] sm:$0xff] }
  0x34   : > { %652 = vmatmul.mubr.bf16.vlgmr.msra.gmra.mxu0 %v961_v45  ;;  %v284_v39 = vmax.bf16 %v1259_v24, %v252_v37  ;;  %v288_v45 = vmax.bf16 %v1259_v24, %v256_v43  ;;  %v819_v43 = vld [vmem:[%s1491_s11 + $0x30] sm:$0xff] }
  0x35   : > { %659 = vmatprep.mubr.bf16.mxu0 %v965_v48 }
  0x36   : > { %1115 = vmatmul.mubr.bf16.vlgmr.msra.gmra.mxu1 %v966_v51  ;;  %v980_v42 = vcombine.high %v284_v39, %v286_v40  ;;  %v979_v47 = vcombine.low %v284_v39, %v286_v40  ;;  %v983_v48 = vcombine.high %v288_v45, %v290_v46  ;;  %v982_v49 = vcombine.low %v288_v45, %v290_v46 }
  0x37   : > { %1118 = vmatprep.mubr.bf16.mxu1 %v969_v52  ;;  %v1486_v52 = vld [vmem:[%s1599_s3] ss:$0 sm:$0xff] }
  0x3c   : > { %660 = vmatmul.mubr.bf16.gmra.mxu0 %v964_v61 }
  0x3d   : > { %667 = vmatprep.mubr.bf16.mxu0 %v968_v0 }
  0x3e   : > { %1119 = vmatmul.mubr.bf16.gmra.mxu1 %v972_v3  ;;  %v814_v3 = vld [vmem:[%s1491_s11 + $0x8] sm:$0xff] }
  0x3f   : > { %1122 = vmatprep.mubr.bf16.mxu1 %v975_v4 }
  0x44   : > { %668 = vmatmul.mubr.bf16.gmra.mxu0 %v967_v13 }
  0x45   : > { %675 = vmatprep.mubr.bf16.mxu0 %v971_v16 }
  0x46   : > { %1123 = vmatmul.mubr.bf16.gmra.mxu1 %v978_v19 }
  0x47   : > { %1126 = vmatprep.mubr.bf16.mxu1 %v981_v20 }
  0x4c   : > { %676 = vmatmul.mubr.bf16.gmra.mxu0 %v970_v28  ;;  %v817_v28 = vld [vmem:[%s1491_s11 + $0x20] sm:$0xff] }
  0x4d   : > { %683 = vmatprep.mubr.bf16.mxu0 %v974_v29 }
  0x4e   : > { %1127 = vmatmul.mubr.bf16.gmra.mxu1 %v984_v32 }
  0x54   : > { %684 = vmatmul.mubr.bf16.gmra.mxu0 %v973_v35 }
  0x55   : > { %691 = vmatprep.mubr.bf16.mxu0 %v977_v36  ;;  %v818_v36 = vld [vmem:[%s1491_s11 + $0x28] sm:$0xff] }
  0x5c   : > { %692 = vmatmul.mubr.bf16.gmra.mxu0 %v976_v41 }
  0x5d   : > { %699 = vmatprep.mubr.bf16.mxu0 %v980_v42 }
  0x64   : > { %700 = vmatmul.mubr.bf16.gmra.mxu0 %v979_v47 }
  0x65   : > { %707 = vmatprep.mubr.bf16.mxu0 %v983_v48 }
  0x6c   : > { %708 = vmatmul.mubr.bf16.gmra.mxu0 %v982_v49 }
  0xf4   : > { %v1034_v50 = vpop.f32.mrf.mxu0 }
  0xf6   : > { %v1035_v51 = vpop.f32.mrf.mxu0  ;;  %v1116_v54 = vpop.f32.mrf.mxu1 }
  0xf7   : > { %v1036_v53 = vadd.f32 %v1035_v51, %v1034_v50  ;;  %v820_v51 = vld [vmem:[%s1491_s11 + $0x38] sm:$0xff] }
  0xf8   : > { %v1037_v24 = vpop.f32.mrf.mxu0  ;;  %v750_v56 = vpop.f32.mrf.mxu1 }
  0xf9   : > { %v654_v55 = vadd.f32 %v1036_v53, %v1486_v52 }
  0xfa   : > { %v1038_v57 = vpop.f32.mrf.mxu0  ;;  %v1117_v61 = vpop.f32.mrf.mxu1 }
  0xfb   : > { %v1039_v59 = vadd.f32 %v1038_v57, %v1037_v24  ;;  %v751_v60 = vadd.f32 %v750_v56, %v654_v55 }
  0xfc   : > { %v1040_v62 = vpop.f32.mrf.mxu0  ;;  %v753_v1 = vpop.f32.mrf.mxu1 }
  0xfd   : > { %v829_v63 = vadd.f32 %v813_v58, %v751_v60  ;;  %v657_v0 = vadd.f32 %v1039_v59, %v1486_v52  ;;  %v821_v60 = vld [vmem:[%s1491_s11 + $0x40] sm:$0xff] }
  0xfe   : > { %v1041_v2 = vpop.f32.mrf.mxu0  ;;  %v1120_v7 = vpop.f32.mrf.mxu1 }
  0xff   : > { %845 = vst [vmem:[%s1499_s13] sm:$0xff] %v829_v63  ;;  %v1042_v4 = vadd.f32 %v1041_v2, %v1040_v62  ;;  %v754_v5 = vadd.f32 %v753_v1, %v657_v0 }
 0x100   : > { %v1043_v6 = vpop.f32.mrf.mxu0  ;;  %v766_v15 = vpop.f32.mrf.mxu1 }
 0x101   : > { %v662_v8 = vadd.f32 %v1042_v4, %v1486_v52  ;;  %v830_v9 = vadd.f32 %v814_v3, %v754_v5  ;;  %v822_v4 = vld [vmem:[%s1491_s11 + $0x48] sm:$0xff] }
 0x102   : > { %v1044_v11 = vpop.f32.mrf.mxu0  ;;  %v1121_v23 = vpop.f32.mrf.mxu1 }
 0x103   : > { %v759_v12 = vadd.f32 %v1116_v54, %v662_v8  ;;  %846 = vst [vmem:[%s1499_s13 + $0x8] sm:$0xff] %v830_v9  ;;  %v1045_v13 = vadd.f32 %v1044_v11, %v1043_v6  ;;  %v823_v11 = vld [vmem:[%s1491_s11 + $0x50] sm:$0xff] }
 0x104   : > { %v1046_v14 = vpop.f32.mrf.mxu0  ;;  %v769_v32 = vpop.f32.mrf.mxu1 }
 0x105   : > { %v831_v16 = vadd.f32 %v815_v10, %v759_v12  ;;  %v665_v17 = vadd.f32 %v1045_v13, %v1486_v52 }
 0x106   : > { %v1047_v19 = vpop.f32.mrf.mxu0  ;;  %v1124_v40 = vpop.f32.mrf.mxu1 }
 0x107   : > { %847 = vst [vmem:[%s1499_s13 + $0x10] sm:$0xff] %v831_v16  ;;  %v762_v20 = vadd.f32 %v1117_v61, %v665_v17  ;;  %v1048_v21 = vadd.f32 %v1047_v19, %v1046_v14  ;;  %v824_v19 = vld [vmem:[%s1491_s11 + $0x58] sm:$0xff] }
 0x108   : > { %v1049_v22 = vpop.f32.mrf.mxu0  ;;  %v782_v48 = vpop.f32.mrf.mxu1 }
 0x109   : > { %v832_v25 = vadd.f32 %v816_v18, %v762_v20  ;;  %v670_v26 = vadd.f32 %v1048_v21, %v1486_v52 }
 0x10a   : > { %v1050_v27 = vpop.f32.mrf.mxu0  ;;  %v1125_v56 = vpop.f32.mrf.mxu1 }
 0x10b   : > { %848 = vst [vmem:[%s1499_s13 + $0x18] sm:$0xff] %v832_v25  ;;  %v1051_v29 = vadd.f32 %v1050_v27, %v1049_v22  ;;  %v767_v30 = vadd.f32 %v766_v15, %v670_v26 }
 0x10c   : > { %v1052_v31 = vpop.f32.mrf.mxu0  ;;  %v785_v0 = vpop.f32.mrf.mxu1 }
 0x10d   : > { %v833_v33 = vadd.f32 %v817_v28, %v767_v30  ;;  %v673_v34 = vadd.f32 %v1051_v29, %v1486_v52  ;;  %v825_v29 = vld [vmem:[%s1491_s11 + $0x60] sm:$0xff] }
 0x10e   : > { %v1053_v35 = vpop.f32.mrf.mxu0  ;;  %v1128_v8 = vpop.f32.mrf.mxu1 }
 0x10f   : > { %849 = vst [vmem:[%s1499_s13 + $0x20] sm:$0xff] %v833_v33  ;;  %v1054_v37 = vadd.f32 %v1053_v35, %v1052_v31  ;;  %v770_v38 = vadd.f32 %v769_v32, %v673_v34 }
 0x110   : > { %v1055_v39 = vpop.f32.mrf.mxu0  ;;  %v798_v16 = vpop.f32.mrf.mxu1 }
 0x111   : > { %v678_v41 = vadd.f32 %v1054_v37, %v1486_v52  ;;  %v834_v42 = vadd.f32 %v818_v36, %v770_v38  ;;  %v826_v37 = vld [vmem:[%s1491_s11 + $0x68] sm:$0xff] }
 0x112   : > { %v1056_v44 = vpop.f32.mrf.mxu0  ;;  %v1129_v25 = vpop.f32.mrf.mxu1 }
 0x113   : > { %v775_v45 = vadd.f32 %v1120_v7, %v678_v41  ;;  %850 = vst [vmem:[%s1499_s13 + $0x28] sm:$0xff] %v834_v42  ;;  %v1057_v46 = vadd.f32 %v1056_v44, %v1055_v39 }
 0x114   : > { %v1058_v47 = vpop.f32.mrf.mxu0  ;;  %v801_v33 = vpop.f32.mrf.mxu1 }
 0x115   : > { %v835_v49 = vadd.f32 %v819_v43, %v775_v45  ;;  %v681_v50 = vadd.f32 %v1057_v46, %v1486_v52  ;;  %v827_v43 = vld [vmem:[%s1491_s11 + $0x70] sm:$0xff] }
 0x116   : > { %v1059_v53 = vpop.f32.mrf.mxu0 }
 0x117   : > { %851 = vst [vmem:[%s1499_s13 + $0x30] sm:$0xff] %v835_v49  ;;  %v778_v54 = vadd.f32 %v1121_v23, %v681_v50  ;;  %v1060_v24 = vadd.f32 %v1059_v53, %v1058_v47  ;;  %v828_v49 = vld [vmem:[%s1491_s11 + $0x78] sm:$0xff] }
 0x118   : > { %v1061_v55 = vpop.f32.mrf.mxu0 }
 0x119   : > { %v836_v57 = vadd.f32 %v820_v51, %v778_v54  ;;  %v686_v58 = vadd.f32 %v1060_v24, %v1486_v52 }
 0x11a   : > { %v1062_v59 = vpop.f32.mrf.mxu0 }
 0x11b   : > { %852 = vst [vmem:[%s1499_s13 + $0x38] sm:$0xff] %v836_v57  ;;  %v1063_v61 = vadd.f32 %v1062_v59, %v1061_v55  ;;  %v783_v62 = vadd.f32 %v782_v48, %v686_v58 }
 0x11c   : > { %v1064_v63 = vpop.f32.mrf.mxu0 }
 0x11d   : > { %v837_v1 = vadd.f32 %v821_v60, %v783_v62  ;;  %v689_v2 = vadd.f32 %v1063_v61, %v1486_v52 }
 0x11e   : > { %v1065_v3 = vpop.f32.mrf.mxu0 }
 0x11f   : > { %853 = vst [vmem:[%s1499_s13 + $0x40] sm:$0xff] %v837_v1  ;;  %v1066_v5 = vadd.f32 %v1065_v3, %v1064_v63  ;;  %v786_v6 = vadd.f32 %v785_v0, %v689_v2 }
 0x120   : > { %v1067_v7 = vpop.f32.mrf.mxu0 }
 0x121   : > { %v694_v9 = vadd.f32 %v1066_v5, %v1486_v52  ;;  %v838_v10 = vadd.f32 %v822_v4, %v786_v6 }
 0x122   : > { %v1068_v12 = vpop.f32.mrf.mxu0 }
 0x123   : > { %v791_v13 = vadd.f32 %v1124_v40, %v694_v9  ;;  %854 = vst [vmem:[%s1499_s13 + $0x48] sm:$0xff] %v838_v10  ;;  %v1069_v14 = vadd.f32 %v1068_v12, %v1067_v7 }
 0x124   : > { %v1070_v15 = vpop.f32.mrf.mxu0 }
 0x125   : > { %v839_v17 = vadd.f32 %v823_v11, %v791_v13  ;;  %v697_v18 = vadd.f32 %v1069_v14, %v1486_v52 }
 0x126   : > { %v1071_v20 = vpop.f32.mrf.mxu0 }
 0x127   : > { %855 = vst [vmem:[%s1499_s13 + $0x50] sm:$0xff] %v839_v17  ;;  %v794_v21 = vadd.f32 %v1125_v56, %v697_v18  ;;  %v1072_v22 = vadd.f32 %v1071_v20, %v1070_v15 }
 0x128   : > { %v1073_v23 = vpop.f32.mrf.mxu0 }
 0x129   : > { %v840_v26 = vadd.f32 %v824_v19, %v794_v21  ;;  %v702_v27 = vadd.f32 %v1072_v22, %v1486_v52 }
 0x12a   : > { %v1074_v28 = vpop.f32.mrf.mxu0 }
 0x12b   : > { %856 = vst [vmem:[%s1499_s13 + $0x58] sm:$0xff] %v840_v26  ;;  %v1075_v30 = vadd.f32 %v1074_v28, %v1073_v23  ;;  %v799_v31 = vadd.f32 %v798_v16, %v702_v27 }
 0x12c   : > { %v1076_v32 = vpop.f32.mrf.mxu0 }
 0x12d   : > { %v841_v34 = vadd.f32 %v825_v29, %v799_v31  ;;  %v705_v35 = vadd.f32 %v1075_v30, %v1486_v52 }
 0x12e   : > { %v1077_v36 = vpop.f32.mrf.mxu0 }
 0x12f   : > { %857 = vst [vmem:[%s1499_s13 + $0x60] sm:$0xff] %v841_v34  ;;  %v1078_v38 = vadd.f32 %v1077_v36, %v1076_v32  ;;  %v802_v39 = vadd.f32 %v801_v33, %v705_v35 }
 0x130   : > { %v1079_v40 = vpop.f32.mrf.mxu0 }
 0x131   : > { %v710_v41 = vadd.f32 %v1078_v38, %v1486_v52  ;;  %v842_v42 = vadd.f32 %v826_v37, %v802_v39 }
 0x132   : > { %v1080_v44 = vpop.f32.mrf.mxu0 }
 0x133   : > { %v807_v45 = vadd.f32 %v1128_v8, %v710_v41  ;;  %858 = vst [vmem:[%s1499_s13 + $0x68] sm:$0xff] %v842_v42  ;;  %v1081_v46 = vadd.f32 %v1080_v44, %v1079_v40 }
 0x135   : > { %v843_v47 = vadd.f32 %v827_v43, %v807_v45  ;;  %v713_v48 = vadd.f32 %v1081_v46, %v1486_v52 }
 0x137   : > { %859 = vst [vmem:[%s1499_s13 + $0x70] sm:$0xff] %v843_v47  ;;  %v810_v50 = vadd.f32 %v1129_v25, %v713_v48 }
 0x139   : > { %v844_v51 = vadd.f32 %v828_v49, %v810_v50 }
 0x13b   : > { %860 = vst [vmem:[%s1499_s13 + $0x78] sm:$0xff] %v844_v51 }
 0x13c   : > { %1210 = shalt.err (!%p1207_p3)
}
 0x13d   : > { %s1211_s6 = scalar_lea.hbm %s1549_s27, 2048  ;;  %s1215_s9 = scalar_lea.hbm %s1600_s4, 4096 }
 0x13e   : > { %p1212_p4 = scmp.ne.s32.totalorder %s1549_s27, %s1211_s6  ;;  %p1216_p9 = scmp.lt.s32.totalorder %s1549_s27, %s1600_s4 }
 0x13f   : > { %p1217_p10 = scmp.lt.s32.totalorder %s1215_s9, %s1211_s6 }
 0x140   : > { %p1213_p7 = pnand %p1212_p4, %p1326_p5 }
 0x141   : > { %p1218_p11 = por %p1217_p10, %p1216_p9 }
 0x142   : > { %p1214_p8 = pneg %p1213_p7 }
 0x144   : > { %p1219_p12 = pnand %p1218_p11, %p1214_p8 }
 0x146   : > { %1222 = shalt.err (!%p1219_p12)
}
 0x147   : > { %s1261_s12 = smov 128   ;;  %s1262_s13 = smov 8  }
 0x148   : > { %1131 = dma.vmem_to_hbm [thread:$0]  (%p1326_p5), %s1551_s20, 2048, %s1549_s27, %s1556_s28, %s1261_s12, %s1261_s12, %s1262_s13  }
 0x149 PF: > { %p1137_p13 = scmp.ge.s32.totalorder %s1257_s18, 2  ;;  %s891_s14 = sand.u32 1, %s1245_s15  }
 0x14a   : > { %s892_s22 = scalar_lea.sflag [#allocation3], %s891_s14 }
 0x14b   : > { %p1134_p0 = pnand %p1137_p13, %p1330_p6 }
 0x14d   : > { %p1135_p1 = pneg %p1134_p0 }
 0x14f   : > { %1240 = dma.done.wait (%p1135_p1), %s892_s22, 2048  }
 0x150   : > { %1242 = vsyncadd (%p1135_p1), %s892_s22, 4294965248  ;;  %p14_p2 = scmp.ge.s32.totalorder %s1313_s21, 4   ;;  %s1603_s15 = smov %s1249_s16 }
 0x151   : > { %s1604_s16 = smov %s1253_s17  ;;  %s1605_s17 = smov %s1324_s24 }
 0x152   : > { %s1606_s18 = smov %s1313_s21  ;;  %16 = sbr.rel (!%p14_p2) target bundleno = 3 (0x3), region = 74 }
 0x157   :  { %897 = vsyncpa [#allocation3], 1 }
 0x158   :  { %899 = vsyncpa [#allocation3 + $0x1], 1 }

</bundles_post_ra>
